<compile_context>
chip_gen: v7x
topology: tpu7x:2x2x1
jax: 0.10.0
libtpu: 0.0.40
codegen_flags: <defaults>
</compile_context>

<pallas_src>
import functools

import jax
import jax.numpy as jnp
from jax.experimental import pallas as pl
from jax.experimental.pallas import tpu as pltpu


# ---------------------------------------------------------------------------
# cv1: pointwise (1x1) conv + folded BN + SiLU.  NCHW kept, spatial on lanes.
# ---------------------------------------------------------------------------
def _pw_conv_bn_silu_kernel(x_ref, w_ref, b_ref, o_ref):
    # x_ref: (1, C1, TS)   one batch, all input channels, TS spatial lanes
    # w_ref: (C_, C1)      1x1 conv weight with BN scale folded in
    # b_ref: (C_, 1)       folded BN bias (float32)
    # o_ref: (1, C_, TS)
    y = jnp.dot(w_ref[...], x_ref[0], preferred_element_type=jnp.float32)
    y = y + b_ref[...]
    o_ref[0] = (y * jax.nn.sigmoid(y)).astype(o_ref.dtype)       # SiLU


# ---------------------------------------------------------------------------
# cv2: depthwise 5x5 conv + folded BN + SiLU, fused with the channel concat.
# Writes the full GhostConv output block: [:C_] = y, [C_:] = SiLU(BN(dwconv)).
# ---------------------------------------------------------------------------
def _dw_conv_bn_silu_concat_kernel(yp_ref, w_ref, b_ref, o_ref):
    # yp_ref: (1, C_, H+4, W+4)  spatially padded cv1 output for one batch
    # w_ref:  (C_, 1, 25)        depthwise 5x5 weight, BN scale folded (f32)
    # b_ref:  (C_, 1, 1)         folded BN bias (f32)
    # o_ref:  (1, 2*C_, H, W)    concatenated GhostConv output for one batch
    c = w_ref.shape[0]
    H = o_ref.shape[2]
    W = o_ref.shape[3]

    ypt = yp_ref[0]                                   # (C_, H+4, W+4)
    # First half of the concat = y itself (crop the 2-pixel halo).
    o_ref[0, 0:c, :, :] = ypt[:, 2:2 + H, 2:2 + W].astype(o_ref.dtype)

    ypf = ypt.astype(jnp.float32)
    wmat = w_ref[...]                                 # (C_, 1, 25)
    acc = jnp.zeros((c, H, W), jnp.float32)
    for k in range(25):                               # unrolled 5x5 taps
        kh, kw = k // 5, k % 5
        acc = acc + ypf[:, kh:kh + H, kw:kw + W] * wmat[:, :, k:k + 1]
    z = acc + b_ref[...]
    o_ref[0, c:2 * c, :, :] = (z * jax.nn.sigmoid(z)).astype(o_ref.dtype)


# ---------------------------------------------------------------------------
# Wrapper
# ---------------------------------------------------------------------------
def _round_up(a, b):
    return ((a + b - 1) // b) * b


def _fold_bn(w, gamma, beta, mean, var, eps):
    scale = gamma / jnp.sqrt(var + eps)               # (Cout,)
    w_folded = w * scale.reshape((-1,) + (1,) * (w.ndim - 1))
    b_folded = beta - mean * scale
    return w_folded, b_folded


@functools.partial(jax.jit, static_argnames=("eps", "use_bf16"))
def ghost_conv_forward(x, w1, g1, b1, m1, v1, w2, g2, b2, m2, v2,
                       *, eps=1e-5, use_bf16=False):
    """GhostConv forward.  x: (N, C1, H, W); w1: (C_, C1, 1, 1); w2: (C_, 1, 5, 5)."""
    # TODO(synk): only the GhostConv default cv1 config (k=1, s=1, g=1) is
    # implemented; general k/s/groups for cv1 would need a different kernel.
    N, C1, H, W = x.shape
    C_ = w1.shape[0]
    out_dtype = x.dtype
    compute_dtype = jnp.bfloat16 if use_bf16 else x.dtype

    # ---- fold BatchNorm (inference) into conv weights / biases -----------
    w1f, b1f = _fold_bn(w1, g1, b1, m1, v1, eps)
    w2f, b2f = _fold_bn(w2, g2, b2, m2, v2, eps)
    w1m = w1f.reshape(C_, C1).astype(compute_dtype)   # (C_, C1)
    b1m = b1f.reshape(C_, 1).astype(jnp.float32)
    w2m = w2f.reshape(C_, 1, 25).astype(jnp.float32)  # (C_, 1, 25)
    b2m = b2f.reshape(C_, 1, 1).astype(jnp.float32)

    # ---- cv1: 1x1 conv as (C_,C1)@(C1,S) matmul, spatial on lanes --------
    S = H * W
    TS = min(2048, _round_up(S, 128))                 # lane-dense spatial tile
    S_pad = _round_up(S, TS)
    xm = x.reshape(N, C1, S).astype(compute_dtype)    # reshape only, no transpose
    if S_pad != S:
        xm = jnp.pad(xm, ((0, 0), (0, 0), (0, S_pad - S)))

    itemsize = jnp.dtype(compute_dtype).itemsize
    cost1 = pl.CostEstimate(
        flops=2 * N * S_pad * C1 * C_,
        transcendentals=N * S_pad * C_,
        bytes_accessed=(N * C1 * S_pad + C_ * C1 + N * C_ * S_pad) * itemsize)

    y = pl.pallas_call(
        _pw_conv_bn_silu_kernel,
        out_shape=jax.ShapeDtypeStruct((N, C_, S_pad), compute_dtype),
        grid_spec=pltpu.PrefetchScalarGridSpec(
            num_scalar_prefetch=0,
            grid=(N, S_pad // TS),
            in_specs=[
                pl.BlockSpec((1, C1, TS), lambda n, j: (n, 0, j)),
                pl.BlockSpec((C_, C1), lambda n, j: (0, 0)),
                pl.BlockSpec((C_, 1), lambda n, j: (0, 0)),
            ],
            out_specs=pl.BlockSpec((1, C_, TS), lambda n, j: (n, 0, j)),
        ),
        compiler_params=pltpu.CompilerParams(
            dimension_semantics=("parallel", "parallel"),
            vmem_limit_bytes=32 * 1024 * 1024),
        cost_estimate=cost1,
    )(xm, w1m, b1m)

    # ---- cv2: depthwise 5x5 + BN + SiLU, fused with channel concat -------
    y = y[:, :, :S].reshape(N, C_, H, W)
    y_pad = jnp.pad(y, ((0, 0), (0, 0), (2, 2), (2, 2)))     # halo for 5x5

    cost2 = pl.CostEstimate(
        flops=2 * N * C_ * H * W * 25,
        transcendentals=N * C_ * H * W,
        bytes_accessed=(N * C_ * (H + 4) * (W + 4) * itemsize
                        + C_ * 25 * 4
                        + N * 2 * C_ * H * W * jnp.dtype(out_dtype).itemsize))

    out = pl.pallas_call(
        _dw_conv_bn_silu_concat_kernel,
        out_shape=jax.ShapeDtypeStruct((N, 2 * C_, H, W), out_dtype),
        grid_spec=pltpu.PrefetchScalarGridSpec(
            num_scalar_prefetch=0,
            grid=(N,),
            in_specs=[
                pl.BlockSpec((1, C_, H + 4, W + 4), lambda n: (n, 0, 0, 0)),
                pl.BlockSpec((C_, 1, 25), lambda n: (0, 0, 0)),
                pl.BlockSpec((C_, 1, 1), lambda n: (0, 0, 0)),
            ],
            out_specs=pl.BlockSpec((1, 2 * C_, H, W), lambda n: (n, 0, 0, 0)),
        ),
        compiler_params=pltpu.CompilerParams(
            dimension_semantics=("parallel",),
            vmem_limit_bytes=32 * 1024 * 1024),
        cost_estimate=cost2,
    )(y_pad, w2m, b2m)

    return out


# ---------------------------------------------------------------------------
# Plain-JAX reference for validation
# ---------------------------------------------------------------------------
def _reference(x, w1, g1, b1, m1, v1, w2, g2, b2, m2, v2, eps=1e-5):
    C_ = w1.shape[0]
    H, W = x.shape[2], x.shape[3]
    s1 = g1 / jnp.sqrt(v1 + eps)
    y = jnp.einsum("nchw,oc->nohw", x, w1.reshape(C_, -1))
    y = y * s1[None, :, None, None] + (b1 - m1 * s1)[None, :, None, None]
    y = y * jax.nn.sigmoid(y)
    yp = jnp.pad(y, ((0, 0), (0, 0), (2, 2), (2, 2)))
    z = jnp.zeros_like(y)
    for kh in range(5):
        for kw in range(5):
            z = z + yp[:, :, kh:kh + H, kw:kw + W] * w2[:, 0, kh, kw][None, :, None, None]
    s2 = g2 / jnp.sqrt(v2 + eps)
    z = z * s2[None, :, None, None] + (b2 - m2 * s2)[None, :, None, None]
    z = z * jax.nn.sigmoid(z)
    return jnp.concatenate([y, z], axis=1)


if __name__ == "__main__":
    # GhostConv(c1=4, c2=8, k=1, s=1); input x: (2, 4, 16, 16)
    c1, c2 = 4, 8
    c_ = c2 // 2
    N, H, W = 2, 16, 16

    key = jax.random.PRNGKey(0)
    (kx, k1, k2, kg1, kb1, km1, kv1, kg2, kb2, km2, kv2) = jax.random.split(key, 11)

    x = jax.random.normal(kx, (N, c1, H, W), dtype=jnp.float32)
    # cv1: Conv2d(c1, c_, 1, 1, bias=False) weight (c_, c1, 1, 1)
    w1 = jax.random.normal(k1, (c_, c1, 1, 1), dtype=jnp.float32) * 0.5
    # cv2: Conv2d(c_, c_, 5, 1, p=2, groups=c_, bias=False) weight (c_, 1, 5, 5)
    w2 = jax.random.normal(k2, (c_, 1, 5, 5), dtype=jnp.float32) * 0.2

    def bn_params(kg, kb, km, kv, c):
        return (1.0 + 0.1 * jax.random.normal(kg, (c,), jnp.float32),
                0.1 * jax.random.normal(kb, (c,), jnp.float32),
                0.1 * jax.random.normal(km, (c,), jnp.float32),
                jnp.abs(1.0 + 0.1 * jax.random.normal(kv, (c,), jnp.float32)))

    g1, b1, m1, v1 = bn_params(kg1, kb1, km1, kv1, c_)
    g2, b2, m2, v2 = bn_params(kg2, kb2, km2, kv2, c_)

    out = ghost_conv_forward(x, w1, g1, b1, m1, v1, w2, g2, b2, m2, v2)
    jax.block_until_ready(out)

    ref = _reference(x, w1, g1, b1, m1, v1, w2, g2, b2, m2, v2)
    assert out.shape == (N, c2, H, W), out.shape
    assert jnp.allclose(out, ref, atol=3e-2, rtol=3e-2), "f32 mismatch vs reference"

    # bf16 DMA / matmul path (f32 accumulate + f32 epilogue), looser tolerance.
    out_bf16 = ghost_conv_forward(x, w1, g1, b1, m1, v1, w2, g2, b2, m2, v2,
                                  use_bf16=True)
    jax.block_until_ready(out_bf16)
    assert jnp.allclose(out_bf16, ref, atol=1e-1, rtol=1e-1), "bf16 mismatch vs reference"

    print("KERNEL_OK")
</pallas_src>

<mosaic_0001>
module attributes {stable_mosaic.version = 11 : i64} {
  func.func @_pw_conv_bn_silu_kernel(%arg0: i32, %arg1: i32, %arg2: memref<1x4x256xf32, #tpu.memory_space<vmem>>, %arg3: memref<4x4xf32, #tpu.memory_space<vmem>>, %arg4: memref<4x1xf32, #tpu.memory_space<vmem>>, %arg5: memref<1x4x256xf32, #tpu.memory_space<vmem>>) attributes {dimension_semantics = [#tpu.dimension_semantics<parallel>, #tpu.dimension_semantics<parallel>], iteration_bounds = array<i64: 2, 1>, scalar_prefetch = 0 : i64, scratch_operands = 0 : i64, tpu.core_type = #tpu.core_type<tc>, window_params = [{transform_indices = @transform_0, window_bounds = array<i64: 1, 4, 256>}, {pipeline_mode = #tpu.pipeline_mode<synchronous>, transform_indices = @transform_1, window_bounds = array<i64: 4, 4>}, {pipeline_mode = #tpu.pipeline_mode<synchronous>, transform_indices = @transform_2, window_bounds = array<i64: 4, 1>}, {transform_indices = @transform_3, window_bounds = array<i64: 1, 4, 256>}]} {
    %c0 = arith.constant 0 : index
    %c0_0 = arith.constant 0 : index
    %0 = vector.load %arg3[%c0, %c0_0] : memref<4x4xf32, #tpu.memory_space<vmem>>, vector<4x4xf32>
    %c0_1 = arith.constant 0 : index
    %c0_2 = arith.constant 0 : index
    %c0_3 = arith.constant 0 : index
    %1 = vector.load %arg2[%c0_1, %c0_2, %c0_3] : memref<1x4x256xf32, #tpu.memory_space<vmem>>, vector<1x4x256xf32>
    %2 = vector.shape_cast %1 : vector<1x4x256xf32> to vector<4x256xf32>
    %cst = arith.constant dense<0.000000e+00> : vector<4x256xf32>
    %3 = tpu.matmul %0, %2, %cst {dimension_numbers = #tpu.dot_dimension_numbers<[1], [0], [0], [1], [0, 0, 1, 1], [], []>} : vector<4x4xf32>, vector<4x256xf32>, vector<4x256xf32> -> vector<4x256xf32>
    %c0_4 = arith.constant 0 : index
    %c0_5 = arith.constant 0 : index
    %4 = vector.load %arg4[%c0_4, %c0_5] : memref<4x1xf32, #tpu.memory_space<vmem>>, vector<4x1xf32>
    %5 = vector.broadcast %4 : vector<4x1xf32> to vector<4x256xf32>
    %6 = arith.addf %3, %5 : vector<4x256xf32>
    %7 = arith.negf %6 : vector<4x256xf32>
    %8 = math.exp %7 : vector<4x256xf32>
    %cst_6 = arith.constant 1.000000e+00 : f32
    %9 = vector.broadcast %cst_6 : f32 to vector<4x256xf32>
    %10 = arith.addf %9, %8 : vector<4x256xf32>
    %11 = arith.divf %9, %10 : vector<4x256xf32>
    %12 = arith.mulf %6, %11 : vector<4x256xf32>
    %c0_7 = arith.constant 0 : index
    %c0_8 = arith.constant 0 : index
    %c0_9 = arith.constant 0 : index
    %13 = vector.load %arg5[%c0_7, %c0_8, %c0_9] : memref<1x4x256xf32, #tpu.memory_space<vmem>>, vector<1x4x256xf32>
    %14 = vector.shape_cast %13 : vector<1x4x256xf32> to vector<4x256xf32>
    %15 = vector.shape_cast %12 : vector<4x256xf32> to vector<1x4x256xf32>
    tpu.vector_store %arg5[%c0_7, %c0_8, %c0_9], %15 {strides = array<i32>} : memref<1x4x256xf32, #tpu.memory_space<vmem>>, vector<1x4x256xf32>,
    return
  }
  func.func @transform_0(%arg0: i32, %arg1: i32) -> (i32, i32, i32) {
    %c0_i32 = arith.constant 0 : i32
    %c0_i32_0 = arith.constant 0 : i32
    return %arg0, %c0_i32, %arg1 : i32, i32, i32
  }
  func.func @transform_1(%arg0: i32, %arg1: i32) -> (i32, i32) {
    %c0_i32 = arith.constant 0 : i32
    %c0_i32_0 = arith.constant 0 : i32
    %c0_i32_1 = arith.constant 0 : i32
    return %c0_i32, %c0_i32_0 : i32, i32
  }
  func.func @transform_2(%arg0: i32, %arg1: i32) -> (i32, i32) {
    %c0_i32 = arith.constant 0 : i32
    %c0_i32_0 = arith.constant 0 : i32
    %c0_i32_1 = arith.constant 0 : i32
    return %c0_i32, %c0_i32_0 : i32, i32
  }
  func.func @transform_3(%arg0: i32, %arg1: i32) -> (i32, i32, i32) {
    %c0_i32 = arith.constant 0 : i32
    %c0_i32_0 = arith.constant 0 : i32
    return %arg0, %c0_i32, %arg1 : i32, i32, i32
  }
}

module attributes {stable_mosaic.version = 11 : i64} {
  func.func @_dw_conv_bn_silu_concat_kernel(%arg0: i32, %arg1: memref<1x4x20x20xf32, #tpu.memory_space<vmem>>, %arg2: memref<4x1x25xf32, #tpu.memory_space<vmem>>, %arg3: memref<4x1x1xf32, #tpu.memory_space<vmem>>, %arg4: memref<1x8x16x16xf32, #tpu.memory_space<vmem>>) attributes {dimension_semantics = [#tpu.dimension_semantics<parallel>], iteration_bounds = array<i64: 2>, scalar_prefetch = 0 : i64, scratch_operands = 0 : i64, tpu.core_type = #tpu.core_type<tc>, window_params = [{transform_indices = @transform_0, window_bounds = array<i64: 1, 4, 20, 20>}, {pipeline_mode = #tpu.pipeline_mode<synchronous>, transform_indices = @transform_1, window_bounds = array<i64: 4, 1, 25>}, {pipeline_mode = #tpu.pipeline_mode<synchronous>, transform_indices = @transform_2, window_bounds = array<i64: 4, 1, 1>}, {transform_indices = @transform_3, window_bounds = array<i64: 1, 8, 16, 16>}]} {
    %c0 = arith.constant 0 : index
    %c0_0 = arith.constant 0 : index
    %c0_1 = arith.constant 0 : index
    %c0_2 = arith.constant 0 : index
    %0 = vector.load %arg1[%c0, %c0_0, %c0_1, %c0_2] : memref<1x4x20x20xf32, #tpu.memory_space<vmem>>, vector<1x4x20x20xf32>
    %1 = vector.shape_cast %0 : vector<1x4x20x20xf32> to vector<4x20x20xf32>
    %2 = vector.extract_strided_slice %1 {offsets = [0, 2, 2], sizes = [4, 16, 16], strides = [1, 1, 1]} : vector<4x20x20xf32> to vector<4x16x16xf32>
    %c0_3 = arith.constant 0 : index
    %c0_4 = arith.constant 0 : index
    %c0_5 = arith.constant 0 : index
    %c0_6 = arith.constant 0 : index
    %3 = vector.load %arg4[%c0_3, %c0_4, %c0_5, %c0_6] : memref<1x8x16x16xf32, #tpu.memory_space<vmem>>, vector<1x4x16x16xf32>
    %4 = vector.shape_cast %3 : vector<1x4x16x16xf32> to vector<4x16x16xf32>
    %5 = vector.shape_cast %2 : vector<4x16x16xf32> to vector<1x4x16x16xf32>
    tpu.vector_store %arg4[%c0_3, %c0_4, %c0_5, %c0_6], %5 {strides = array<i32>} : memref<1x8x16x16xf32, #tpu.memory_space<vmem>>, vector<1x4x16x16xf32>,
    %c0_7 = arith.constant 0 : index
    %c0_8 = arith.constant 0 : index
    %c0_9 = arith.constant 0 : index
    %6 = vector.load %arg2[%c0_7, %c0_8, %c0_9] : memref<4x1x25xf32, #tpu.memory_space<vmem>>, vector<4x1x25xf32>
    %cst = arith.constant 0.000000e+00 : f32
    %7 = vector.broadcast %cst : f32 to vector<4x16x16xf32>
    %8 = vector.extract_strided_slice %1 {offsets = [0, 0, 0], sizes = [4, 16, 16], strides = [1, 1, 1]} : vector<4x20x20xf32> to vector<4x16x16xf32>
    %9 = vector.extract_strided_slice %6 {offsets = [0, 0, 0], sizes = [4, 1, 1], strides = [1, 1, 1]} : vector<4x1x25xf32> to vector<4x1x1xf32>
    %10 = vector.broadcast %9 : vector<4x1x1xf32> to vector<4x16x16xf32>
    %11 = arith.mulf %8, %10 : vector<4x16x16xf32>
    %12 = arith.addf %7, %11 : vector<4x16x16xf32>
    %13 = vector.extract_strided_slice %1 {offsets = [0, 0, 1], sizes = [4, 16, 16], strides = [1, 1, 1]} : vector<4x20x20xf32> to vector<4x16x16xf32>
    %14 = vector.extract_strided_slice %6 {offsets = [0, 0, 1], sizes = [4, 1, 1], strides = [1, 1, 1]} : vector<4x1x25xf32> to vector<4x1x1xf32>
    %15 = vector.broadcast %14 : vector<4x1x1xf32> to vector<4x16x16xf32>
    %16 = arith.mulf %13, %15 : vector<4x16x16xf32>
    %17 = arith.addf %12, %16 : vector<4x16x16xf32>
    %18 = vector.extract_strided_slice %1 {offsets = [0, 0, 2], sizes = [4, 16, 16], strides = [1, 1, 1]} : vector<4x20x20xf32> to vector<4x16x16xf32>
    %19 = vector.extract_strided_slice %6 {offsets = [0, 0, 2], sizes = [4, 1, 1], strides = [1, 1, 1]} : vector<4x1x25xf32> to vector<4x1x1xf32>
    %20 = vector.broadcast %19 : vector<4x1x1xf32> to vector<4x16x16xf32>
    %21 = arith.mulf %18, %20 : vector<4x16x16xf32>
    %22 = arith.addf %17, %21 : vector<4x16x16xf32>
    %23 = vector.extract_strided_slice %1 {offsets = [0, 0, 3], sizes = [4, 16, 16], strides = [1, 1, 1]} : vector<4x20x20xf32> to vector<4x16x16xf32>
    %24 = vector.extract_strided_slice %6 {offsets = [0, 0, 3], sizes = [4, 1, 1], strides = [1, 1, 1]} : vector<4x1x25xf32> to vector<4x1x1xf32>
    %25 = vector.broadcast %24 : vector<4x1x1xf32> to vector<4x16x16xf32>
    %26 = arith.mulf %23, %25 : vector<4x16x16xf32>
    %27 = arith.addf %22, %26 : vector<4x16x16xf32>
    %28 = vector.extract_strided_slice %1 {offsets = [0, 0, 4], sizes = [4, 16, 16], strides = [1, 1, 1]} : vector<4x20x20xf32> to vector<4x16x16xf32>
    %29 = vector.extract_strided_slice %6 {offsets = [0, 0, 4], sizes = [4, 1, 1], strides = [1, 1, 1]} : vector<4x1x25xf32> to vector<4x1x1xf32>
    %30 = vector.broadcast %29 : vector<4x1x1xf32> to vector<4x16x16xf32>
    %31 = arith.mulf %28, %30 : vector<4x16x16xf32>
    %32 = arith.addf %27, %31 : vector<4x16x16xf32>
    %33 = vector.extract_strided_slice %1 {offsets = [0, 1, 0], sizes = [4, 16, 16], strides = [1, 1, 1]} : vector<4x20x20xf32> to vector<4x16x16xf32>
    %34 = vector.extract_strided_slice %6 {offsets = [0, 0, 5], sizes = [4, 1, 1], strides = [1, 1, 1]} : vector<4x1x25xf32> to vector<4x1x1xf32>
    %35 = vector.broadcast %34 : vector<4x1x1xf32> to vector<4x16x16xf32>
    %36 = arith.mulf %33, %35 : vector<4x16x16xf32>
    %37 = arith.addf %32, %36 : vector<4x16x16xf32>
    %38 = vector.extract_strided_slice %1 {offsets = [0, 1, 1], sizes = [4, 16, 16], strides = [1, 1, 1]} : vector<4x20x20xf32> to vector<4x16x16xf32>
    %39 = vector.extract_strided_slice %6 {offsets = [0, 0, 6], sizes = [4, 1, 1], strides = [1, 1, 1]} : vector<4x1x25xf32> to vector<4x1x1xf32>
    %40 = vector.broadcast %39 : vector<4x1x1xf32> to vector<4x16x16xf32>
    %41 = arith.mulf %38, %40 : vector<4x16x16xf32>
    %42 = arith.addf %37, %41 : vector<4x16x16xf32>
    %43 = vector.extract_strided_slice %1 {offsets = [0, 1, 2], sizes = [4, 16, 16], strides = [1, 1, 1]} : vector<4x20x20xf32> to vector<4x16x16xf32>
    %44 = vector.extract_strided_slice %6 {offsets = [0, 0, 7], sizes = [4, 1, 1], strides = [1, 1, 1]} : vector<4x1x25xf32> to vector<4x1x1xf32>
    %45 = vector.broadcast %44 : vector<4x1x1xf32> to vector<4x16x16xf32>
    %46 = arith.mulf %43, %45 : vector<4x16x16xf32>
    %47 = arith.addf %42, %46 : vector<4x16x16xf32>
    %48 = vector.extract_strided_slice %1 {offsets = [0, 1, 3], sizes = [4, 16, 16], strides = [1, 1, 1]} : vector<4x20x20xf32> to vector<4x16x16xf32>
    %49 = vector.extract_strided_slice %6 {offsets = [0, 0, 8], sizes = [4, 1, 1], strides = [1, 1, 1]} : vector<4x1x25xf32> to vector<4x1x1xf32>
    %50 = vector.broadcast %49 : vector<4x1x1xf32> to vector<4x16x16xf32>
    %51 = arith.mulf %48, %50 : vector<4x16x16xf32>
    %52 = arith.addf %47, %51 : vector<4x16x16xf32>
    %53 = vector.extract_strided_slice %1 {offsets = [0, 1, 4], sizes = [4, 16, 16], strides = [1, 1, 1]} : vector<4x20x20xf32> to vector<4x16x16xf32>
    %54 = vector.extract_strided_slice %6 {offsets = [0, 0, 9], sizes = [4, 1, 1], strides = [1, 1, 1]} : vector<4x1x25xf32> to vector<4x1x1xf32>
    %55 = vector.broadcast %54 : vector<4x1x1xf32> to vector<4x16x16xf32>
    %56 = arith.mulf %53, %55 : vector<4x16x16xf32>
    %57 = arith.addf %52, %56 : vector<4x16x16xf32>
    %58 = vector.extract_strided_slice %1 {offsets = [0, 2, 0], sizes = [4, 16, 16], strides = [1, 1, 1]} : vector<4x20x20xf32> to vector<4x16x16xf32>
    %59 = vector.extract_strided_slice %6 {offsets = [0, 0, 10], sizes = [4, 1, 1], strides = [1, 1, 1]} : vector<4x1x25xf32> to vector<4x1x1xf32>
    %60 = vector.broadcast %59 : vector<4x1x1xf32> to vector<4x16x16xf32>
    %61 = arith.mulf %58, %60 : vector<4x16x16xf32>
    %62 = arith.addf %57, %61 : vector<4x16x16xf32>
    %63 = vector.extract_strided_slice %1 {offsets = [0, 2, 1], sizes = [4, 16, 16], strides = [1, 1, 1]} : vector<4x20x20xf32> to vector<4x16x16xf32>
    %64 = vector.extract_strided_slice %6 {offsets = [0, 0, 11], sizes = [4, 1, 1], strides = [1, 1, 1]} : vector<4x1x25xf32> to vector<4x1x1xf32>
    %65 = vector.broadcast %64 : vector<4x1x1xf32> to vector<4x16x16xf32>
    %66 = arith.mulf %63, %65 : vector<4x16x16xf32>
    %67 = arith.addf %62, %66 : vector<4x16x16xf32>
    %68 = vector.extract_strided_slice %1 {offsets = [0, 2, 2], sizes = [4, 16, 16], strides = [1, 1, 1]} : vector<4x20x20xf32> to vector<4x16x16xf32>
    %69 = vector.extract_strided_slice %6 {offsets = [0, 0, 12], sizes = [4, 1, 1], strides = [1, 1, 1]} : vector<4x1x25xf32> to vector<4x1x1xf32>
    %70 = vector.broadcast %69 : vector<4x1x1xf32> to vector<4x16x16xf32>
    %71 = arith.mulf %68, %70 : vector<4x16x16xf32>
    %72 = arith.addf %67, %71 : vector<4x16x16xf32>
    %73 = vector.extract_strided_slice %1 {offsets = [0, 2, 3], sizes = [4, 16, 16], strides = [1, 1, 1]} : vector<4x20x20xf32> to vector<4x16x16xf32>
    %74 = vector.extract_strided_slice %6 {offsets = [0, 0, 13], sizes = [4, 1, 1], strides = [1, 1, 1]} : vector<4x1x25xf32> to vector<4x1x1xf32>
    %75 = vector.broadcast %74 : vector<4x1x1xf32> to vector<4x16x16xf32>
    %76 = arith.mulf %73, %75 : vector<4x16x16xf32>
    %77 = arith.addf %72, %76 : vector<4x16x16xf32>
    %78 = vector.extract_strided_slice %1 {offsets = [0, 2, 4], sizes = [4, 16, 16], strides = [1, 1, 1]} : vector<4x20x20xf32> to vector<4x16x16xf32>
    %79 = vector.extract_strided_slice %6 {offsets = [0, 0, 14], sizes = [4, 1, 1], strides = [1, 1, 1]} : vector<4x1x25xf32> to vector<4x1x1xf32>
    %80 = vector.broadcast %79 : vector<4x1x1xf32> to vector<4x16x16xf32>
    %81 = arith.mulf %78, %80 : vector<4x16x16xf32>
    %82 = arith.addf %77, %81 : vector<4x16x16xf32>
    %83 = vector.extract_strided_slice %1 {offsets = [0, 3, 0], sizes = [4, 16, 16], strides = [1, 1, 1]} : vector<4x20x20xf32> to vector<4x16x16xf32>
    %84 = vector.extract_strided_slice %6 {offsets = [0, 0, 15], sizes = [4, 1, 1], strides = [1, 1, 1]} : vector<4x1x25xf32> to vector<4x1x1xf32>
    %85 = vector.broadcast %84 : vector<4x1x1xf32> to vector<4x16x16xf32>
    %86 = arith.mulf %83, %85 : vector<4x16x16xf32>
    %87 = arith.addf %82, %86 : vector<4x16x16xf32>
    %88 = vector.extract_strided_slice %1 {offsets = [0, 3, 1], sizes = [4, 16, 16], strides = [1, 1, 1]} : vector<4x20x20xf32> to vector<4x16x16xf32>
    %89 = vector.extract_strided_slice %6 {offsets = [0, 0, 16], sizes = [4, 1, 1], strides = [1, 1, 1]} : vector<4x1x25xf32> to vector<4x1x1xf32>
    %90 = vector.broadcast %89 : vector<4x1x1xf32> to vector<4x16x16xf32>
    %91 = arith.mulf %88, %90 : vector<4x16x16xf32>
    %92 = arith.addf %87, %91 : vector<4x16x16xf32>
    %93 = vector.extract_strided_slice %1 {offsets = [0, 3, 2], sizes = [4, 16, 16], strides = [1, 1, 1]} : vector<4x20x20xf32> to vector<4x16x16xf32>
    %94 = vector.extract_strided_slice %6 {offsets = [0, 0, 17], sizes = [4, 1, 1], strides = [1, 1, 1]} : vector<4x1x25xf32> to vector<4x1x1xf32>
    %95 = vector.broadcast %94 : vector<4x1x1xf32> to vector<4x16x16xf32>
    %96 = arith.mulf %93, %95 : vector<4x16x16xf32>
    %97 = arith.addf %92, %96 : vector<4x16x16xf32>
    %98 = vector.extract_strided_slice %1 {offsets = [0, 3, 3], sizes = [4, 16, 16], strides = [1, 1, 1]} : vector<4x20x20xf32> to vector<4x16x16xf32>
    %99 = vector.extract_strided_slice %6 {offsets = [0, 0, 18], sizes = [4, 1, 1], strides = [1, 1, 1]} : vector<4x1x25xf32> to vector<4x1x1xf32>
    %100 = vector.broadcast %99 : vector<4x1x1xf32> to vector<4x16x16xf32>
    %101 = arith.mulf %98, %100 : vector<4x16x16xf32>
    %102 = arith.addf %97, %101 : vector<4x16x16xf32>
    %103 = vector.extract_strided_slice %1 {offsets = [0, 3, 4], sizes = [4, 16, 16], strides = [1, 1, 1]} : vector<4x20x20xf32> to vector<4x16x16xf32>
    %104 = vector.extract_strided_slice %6 {offsets = [0, 0, 19], sizes = [4, 1, 1], strides = [1, 1, 1]} : vector<4x1x25xf32> to vector<4x1x1xf32>
    %105 = vector.broadcast %104 : vector<4x1x1xf32> to vector<4x16x16xf32>
    %106 = arith.mulf %103, %105 : vector<4x16x16xf32>
    %107 = arith.addf %102, %106 : vector<4x16x16xf32>
    %108 = vector.extract_strided_slice %1 {offsets = [0, 4, 0], sizes = [4, 16, 16], strides = [1, 1, 1]} : vector<4x20x20xf32> to vector<4x16x16xf32>
    %109 = vector.extract_strided_slice %6 {offsets = [0, 0, 20], sizes = [4, 1, 1], strides = [1, 1, 1]} : vector<4x1x25xf32> to vector<4x1x1xf32>
    %110 = vector.broadcast %109 : vector<4x1x1xf32> to vector<4x16x16xf32>
    %111 = arith.mulf %108, %110 : vector<4x16x16xf32>
    %112 = arith.addf %107, %111 : vector<4x16x16xf32>
    %113 = vector.extract_strided_slice %1 {offsets = [0, 4, 1], sizes = [4, 16, 16], strides = [1, 1, 1]} : vector<4x20x20xf32> to vector<4x16x16xf32>
    %114 = vector.extract_strided_slice %6 {offsets = [0, 0, 21], sizes = [4, 1, 1], strides = [1, 1, 1]} : vector<4x1x25xf32> to vector<4x1x1xf32>
    %115 = vector.broadcast %114 : vector<4x1x1xf32> to vector<4x16x16xf32>
    %116 = arith.mulf %113, %115 : vector<4x16x16xf32>
    %117 = arith.addf %112, %116 : vector<4x16x16xf32>
    %118 = vector.extract_strided_slice %1 {offsets = [0, 4, 2], sizes = [4, 16, 16], strides = [1, 1, 1]} : vector<4x20x20xf32> to vector<4x16x16xf32>
    %119 = vector.extract_strided_slice %6 {offsets = [0, 0, 22], sizes = [4, 1, 1], strides = [1, 1, 1]} : vector<4x1x25xf32> to vector<4x1x1xf32>
    %120 = vector.broadcast %119 : vector<4x1x1xf32> to vector<4x16x16xf32>
    %121 = arith.mulf %118, %120 : vector<4x16x16xf32>
    %122 = arith.addf %117, %121 : vector<4x16x16xf32>
    %123 = vector.extract_strided_slice %1 {offsets = [0, 4, 3], sizes = [4, 16, 16], strides = [1, 1, 1]} : vector<4x20x20xf32> to vector<4x16x16xf32>
    %124 = vector.extract_strided_slice %6 {offsets = [0, 0, 23], sizes = [4, 1, 1], strides = [1, 1, 1]} : vector<4x1x25xf32> to vector<4x1x1xf32>
    %125 = vector.broadcast %124 : vector<4x1x1xf32> to vector<4x16x16xf32>
    %126 = arith.mulf %123, %125 : vector<4x16x16xf32>
    %127 = arith.addf %122, %126 : vector<4x16x16xf32>
    %128 = vector.extract_strided_slice %1 {offsets = [0, 4, 4], sizes = [4, 16, 16], strides = [1, 1, 1]} : vector<4x20x20xf32> to vector<4x16x16xf32>
    %129 = vector.extract_strided_slice %6 {offsets = [0, 0, 24], sizes = [4, 1, 1], strides = [1, 1, 1]} : vector<4x1x25xf32> to vector<4x1x1xf32>
    %130 = vector.broadcast %129 : vector<4x1x1xf32> to vector<4x16x16xf32>
    %131 = arith.mulf %128, %130 : vector<4x16x16xf32>
    %132 = arith.addf %127, %131 : vector<4x16x16xf32>
    %c0_10 = arith.constant 0 : index
    %c0_11 = arith.constant 0 : index
    %c0_12 = arith.constant 0 : index
    %133 = vector.load %arg3[%c0_10, %c0_11, %c0_12] : memref<4x1x1xf32, #tpu.memory_space<vmem>>, vector<4x1x1xf32>
    %134 = vector.broadcast %133 : vector<4x1x1xf32> to vector<4x16x16xf32>
    %135 = arith.addf %132, %134 : vector<4x16x16xf32>
    %136 = arith.negf %135 : vector<4x16x16xf32>
    %137 = math.exp %136 : vector<4x16x16xf32>
    %cst_13 = arith.constant 1.000000e+00 : f32
    %138 = vector.broadcast %cst_13 : f32 to vector<4x16x16xf32>
    %139 = arith.addf %138, %137 : vector<4x16x16xf32>
    %140 = arith.divf %138, %139 : vector<4x16x16xf32>
    %141 = arith.mulf %135, %140 : vector<4x16x16xf32>
    %c0_14 = arith.constant 0 : index
    %c4 = arith.constant 4 : index
    %c0_15 = arith.constant 0 : index
    %c0_16 = arith.constant 0 : index
    %142 = vector.load %arg4[%c0_14, %c4, %c0_15, %c0_16] : memref<1x8x16x16xf32, #tpu.memory_space<vmem>>, vector<1x4x16x16xf32>
    %143 = vector.shape_cast %142 : vector<1x4x16x16xf32> to vector<4x16x16xf32>
    %144 = vector.shape_cast %141 : vector<4x16x16xf32> to vector<1x4x16x16xf32>
    tpu.vector_store %arg4[%c0_14, %c4, %c0_15, %c0_16], %144 {strides = array<i32>} : memref<1x8x16x16xf32, #tpu.memory_space<vmem>>, vector<1x4x16x16xf32>,
    return
  }
  func.func @transform_0(%arg0: i32) -> (i32, i32, i32, i32) {
    %c0_i32 = arith.constant 0 : i32
    %c0_i32_0 = arith.constant 0 : i32
    %c0_i32_1 = arith.constant 0 : i32
    %c0_i32_2 = arith.constant 0 : i32
    return %arg0, %c0_i32, %c0_i32_0, %c0_i32_1 : i32, i32, i32, i32
  }
  func.func @transform_1(%arg0: i32) -> (i32, i32, i32) {
    %c0_i32 = arith.constant 0 : i32
    %c0_i32_0 = arith.constant 0 : i32
    %c0_i32_1 = arith.constant 0 : i32
    %c0_i32_2 = arith.constant 0 : i32
    return %c0_i32, %c0_i32_0, %c0_i32_1 : i32, i32, i32
  }
  func.func @transform_2(%arg0: i32) -> (i32, i32, i32) {
    %c0_i32 = arith.constant 0 : i32
    %c0_i32_0 = arith.constant 0 : i32
    %c0_i32_1 = arith.constant 0 : i32
    %c0_i32_2 = arith.constant 0 : i32
    return %c0_i32, %c0_i32_0, %c0_i32_1 : i32, i32, i32
  }
  func.func @transform_3(%arg0: i32) -> (i32, i32, i32, i32) {
    %c0_i32 = arith.constant 0 : i32
    %c0_i32_0 = arith.constant 0 : i32
    %c0_i32_1 = arith.constant 0 : i32
    %c0_i32_2 = arith.constant 0 : i32
    return %arg0, %c0_i32, %c0_i32_0, %c0_i32_1 : i32, i32, i32, i32
  }
}

</mosaic_0001>

<bundles_post_ra>
// kernel: ghost_conv_forward.2
= control target key start
LH: loop header
LB: loop body
LE: loop exit
PB: predicated region body
PF: predicated region fallthrough
CT: control target
= control target key end

     0   :  { %s506_s12 = smov 0   ;;  %s508_s13 = smov 0   ;;  %s552_s0 = inlined_call_operand.vmem [shape: f32[2,4,256], index: 0, kind: input, shape index: {}]   ;;  %s553_s1 = inlined_call_operand.vmem [shape: f32[4,4], index: 1, kind: input, shape index: {}]   ;;  %s554_s2 = inlined_call_operand.vmem [shape: f32[4,1], index: 2, kind: input, shape index: {}]   ;;  %s555_s3 = inlined_call_operand.vmem [shape: f32[2,4,256], index: 3, kind: output, shape index: {}]  }
   0x1   :  { %s510_s14 = smov 0  }
   0x2 LB: > { %s25_s15 = sadd.s32 1, %s478_s13  ;;  %p410_p0 = scmp.ge.s32.totalorder %s482_s14, 1  ;;  %s482_s14 = sphi %s510_s14, %s13_s14   ;;  %s478_s13 = sphi %s508_s13, %s557_s13   ;;  %s474_s12 = sphi %s506_s12, %s556_s12  }
   0x3   : > { %p27_p1 = scmp.ge.s32.totalorder %s25_s15, 2  ;;  %p158_p2 = scmp.lt.s32.totalorder %s482_s14, 3 }
   0x5   : > { %s559_s15 = smov (%p27_p1, %s25_s15), 0  ;;  %p159_p3 = pnand %p410_p0, %p158_p2 }
   0x6   : > { %p191_p4 = scmp.lt.s32.totalorder (!%p159_p3), %s474_s12, 1  ;;  %v484_v0 = vmov (!%p159_p3), 0.0   ;;  %v212_v1 = vld [vmem:[%s554_s2] sm:$0xf] (!%p159_p3)  ;;  %v485_v2 = vmov (!%p159_p3), 0   ;;  %vm224_vm0 = vcmask (!%p159_p3), 1043456  }
   0x7   : > { %162 = sbr.rel (%p159_p3) target bundleno = 268 (0x10c), region = 32  ;;  %293 = vmatprep.mubr.f32.mxu0 (!%p159_p3), %v484_v0  ;;  %450 = vset.pattern.permute.xlu0 (!%p159_p3), %v485_v2  ;;  %v210_v5 = vld [vmem:[%s553_s1] sm:$0xf] (!%p159_p3)  ;;  %vm220_vm1 = vcmask (!%p159_p3), 31744  }
   0x8   : > { %215 = vperm.xlu0 (!%p159_p3), %450, %v212_v1  }
   0xe   : > { %s561_s12 = smov (!%p191_p4, %s474_s12), 1 }
   0xf   : > { %s422_s18 = sshll.u32 %s561_s12, 3 }
  0x10   : > { %s198_s21 = scalar_lea.vmem %s552_s0, %s422_s18  ;;  %s208_s26 = scalar_lea.vmem %s555_s3, %s422_s18 }
  0x11   : > { %v211_v3 = vld [vmem:[%s198_s21] sm:$0xff] }
  0x12   : > { %v219_v4 = vcombine.high %v211_v3, %v211_v3 }
  0x14   : > { %415 = vmatprep.subr.msk.mxu0 %vm224_vm0, %v219_v4 }
  0x15   : > { %416 = vmatpush1.msk.msra.mxu0 %vm224_vm0, %v211_v3 }
  0x16   : > { %417 = vmatmul.mubr.msk.f32.vlgmr.msra.gmra.mrb[0].mxu0 %vm220_vm1, %v210_v5 }
  0x87   : > { %v216_v6 = vpop.permute.xlu0 %215 }
  0xe9   : > { %v295_v7 = vpop.f32.mrb[0].mxu0 }
  0xea   : > { %v296_v8 = vadd.f32 %v295_v7, %v216_v6  ;;  %v297_v9 = vpop.f32.mrb[1].mxu0 }
  0xeb   : > { %v298_v10 = vadd.f32 %v297_v9, %v216_v6 }
  0xec   : > { %v418_v11 = vmul.f32 -1.442695, %v296_v8 }
  0xed   : > { %v419_v12 = vmul.f32 -1.442695, %v298_v10 }
  0xee   : > { %452 = vpow2.f32 %v418_v11 }
  0xef   : > { %454 = vpow2.f32 %v419_v12 }
  0xf8   : > { %v453_v13 = vpop.eup %452 }
  0xf9   : > { %v455_v14 = vpop.eup %454  ;;  %v306_v15 = vadd.f32 1.0, %v453_v13 }
  0xfa   : > { %v307_v16 = vadd.f32 1.0, %v455_v14 }
  0xfb   : > { %456 = vrcp.f32 %v306_v15 }
  0xfc   : > { %458 = vrcp.f32 %v307_v16 }
 0x105   : > { %v457_v17 = vpop.eup %456 }
 0x106   : > { %v459_v18 = vpop.eup %458  ;;  %v312_v19 = vmul.f32 %v457_v17, %v296_v8 }
 0x107   : > { %v313_v20 = vmul.f32 %v459_v18, %v298_v10 }
 0x109   : > { %v316_v21 = vcombine.low %v312_v19, %v313_v20 }
 0x10b   : > { %318 = vst [vmem:[%s208_s26] sm:$0xff] %v316_v21 }
 0x10c PF: > { %s13_s14 = sadd.s32 1, %s482_s14   ;;  %s556_s12 = smov %s478_s13 }
 0x10d   : > { %p10_p5 = scmp.ge.s32.totalorder %s13_s14, 4   ;;  %s557_s13 = smov %s559_s15 }
 0x10f   :  { %12 = sbr.rel (!%p10_p5) target bundleno = 2 (0x2), region = 62 }

// kernel: ghost_conv_forward.3
= control target key start
LH: loop header
LB: loop body
LE: loop exit
PB: predicated region body
PF: predicated region fallthrough
CT: control target
= control target key end

     0   :  { %8 = vsyncpa [#allocation3], 0  ;;  %s4571_s0 = inlined_call_operand.vmem [shape: f32[2,4,20,20], index: 0, kind: input, shape index: {}]   ;;  %s4572_s1 = inlined_call_operand.vmem [shape: f32[4,1,25], index: 1, kind: input, shape index: {}]   ;;  %s4573_s2 = inlined_call_operand.vmem [shape: f32[4,1,1], index: 2, kind: input, shape index: {}]   ;;  %s4574_s3 = inlined_call_operand.hbm [shape: f32[2,8,16,16], index: 3, kind: output, shape index: {}]  }
   0x1   :  { %10 = vsyncpa [#allocation3 + $0x1], 0  ;;  %s2861_s12 = smov 0   ;;  %s2863_s13 = smov 0  }
   0x2   :  { %s2865_s14 = smov 0   ;;  %s2867_s15 = smov 0  }
   0x3 LB: > { %s2882_s16 = sadd.s32 4294967295, %s2807_s15   ;;  %s2525_s17 = sadd.s32 4294967294, %s2807_s15   ;;  %s2807_s15 = sphi %s2867_s15, %s4775_s15   ;;  %s2803_s14 = sphi %s2865_s14, %s4774_s14   ;;  %s2799_s13 = sphi %s2863_s13, %s4773_s13   ;;  %s2795_s12 = sphi %s2861_s12, %s4772_s12  }
   0x4   : > { %s2886_s18 = sadd.s32 1, %s2807_s15   ;;  %s91_s19 = sadd.s32 1, %s2803_s14 }
   0x5   : > { %s88_s20 = ssub.s32 %s2807_s15, %s2886_s18  ;;  %p101_p0 = scmp.ne.s32.totalorder %s2803_s14, %s2799_s13 }
   0x6   : > { %p89_p1 = scmp.eq.s32.totalorder %s88_s20, 0  ;;  %p102_p2 = scmp.eq.s32.totalorder %s2882_s16, 1 }
   0x7   : > { %p107_p3 = scmp.ne.s32.totalorder %s2799_s13, %s2795_s12  ;;  %p108_p4 = scmp.eq.s32.totalorder %s2525_s17, 1 }
   0x8   : > { %s2897_s21 = scalar_select %p89_p1, %s2803_s14, %s91_s19  }
   0x9   : > { %p2899_p5 = por %p102_p2, %p101_p0  ;;  %p2903_p6 = por %p108_p4, %p107_p3 }
   0xa   : > { %p2528_p7 = scmp.ge.s32.totalorder %s2807_s15, 1  ;;  %p140_p8 = scmp.lt.s32.totalorder %s2807_s15, 3 }
   0xc   : > { %p141_p9 = pnand %p2528_p7, %p140_p8 }
   0xe   : > { %144 = sbr.rel (%p141_p9) target bundleno = 2453 (0x995), region = 32 }
  0x15   : > { %p164_p10 = scmp.lt.s32.totalorder %s2882_s16, 1  ;;  %v4575_v0 = vmov 0   ;;  %v2810_v1 = vmov 1   ;;  %s2811_s29 = smov 126   ;;  %v2978_v14 = vld [vmem:[%s4572_s1 + $0x1] ss:$0 sm:$0xff] }
  0x16   : > { %2632 = vset.pattern.permute.xlu1 %v4575_v0  ;;  %2634 = vset.pattern.permute.xlu0 %v2810_v1  ;;  %v2986_v15 = vld [vmem:[%s4572_s1 + $0x2] ss:$0 sm:$0xff]  ;;  %v2993_v16 = vld [vmem:[%s4572_s1] ss:$0 sm:$0xff]  ;;  %v2812_v17 = vmov 2   ;;  %v2813_v19 = vmov 3  }
  0x17   : > { %s165_s24 = scalar_select %p164_p10, %s2882_s16, 1  ;;  %v3000_v18 = vld [vmem:[%s4572_s1 + $0x3] ss:$0 sm:$0xff]  ;;  %v2814_v20 = vmov 4   ;;  %v2815_v21 = vmov 5   ;;  %vm233_vm0 = vcmask 123904  }
  0x18   : > { %s161_s11 = sand.u32 1, %s2799_s13   ;;  %vm229_vm1 = vcmask 130050   ;;  %vm231_vm2 = vcmask 130048   ;;  %s2816_s20 = smov 127   ;;  %vm596_vm3 = vcmask 1046528   ;;  %vm1041_vm4 = vcmask 1045504  }
  0x19   : > { %s2561_s25 = smul.u32 96, %s165_s24  ;;  %s2529_s17 = sshll.u32 %s161_s11, 7  ;;  %vm1486_vm5 = vcmask 1044480   ;;  %vm1931_vm6 = vcmask 1043456  }
  0x1a   : > { %s3018_s19 = scalar_lea.vmem [#allocation2], %s2529_s17  ;;  %s2817_s24 = smov 125  }
  0x1b   : > { %s2915_s28 = scalar_lea.vmem %s4571_s0, %s2561_s25  ;;  %s2818_s25 = smov 124  }
  0x1c   : > { %v2918_v2 = vld [vmem:[%s2915_s28 + $0x10] sm:$0xf]  ;;  %v2923_v3 = vld [vmem:[%s2915_s28] sm:$0xff]  ;;  %v2926_v4 = vld [vmem:[%s2915_s28 + $0x18] sm:$0xff]  ;;  %s4530_s10 = scalar_lea.sflag [#allocation3], %s161_s11  ;;  %s2838_s17 = smov [#allocation2]  }
  0x1d   : > { %197 = vrot.lane.b32.xlu1 %v2918_v2, %s2811_s29  ;;  %193 = vrot.lane.b32.xlu0 %v2923_v3, %s2811_s29  ;;  %v2931_v5 = vld [vmem:[%s2915_s28 + $0x8] sm:$0xff]  ;;  %v2941_v7 = vld [vmem:[%s2915_s28 + $0x20] sm:$0xff]  ;;  %s2749_s26 = sshll.u32 %s2838_s17, 4  ;;  %s2750_s26 = int_to_ptr.vmem [resolvable:$false] %s2749_s26 }
  0x1e   : > { %v2936_v6 = vld [vmem:[%s2915_s28 + $0x28] sm:$0xf]  ;;  %v2946_v8 = vld [vmem:[%s2915_s28 + $0x38] sm:$0xff]  ;;  %v2951_v9 = vld [vmem:[%s2915_s28 + $0x30] sm:$0xff] }
  0x1f   : > { %v2956_v10 = vld [vmem:[%s2915_s28 + $0x48] sm:$0xff]  ;;  %v2961_v11 = vld [vmem:[%s2915_s28 + $0x40] sm:$0xf]  ;;  %v2966_v12 = vld [vmem:[%s2915_s28 + $0x58] sm:$0xf] }
  0x20   : > { %v2971_v13 = vld [vmem:[%s2915_s28 + $0x50] sm:$0xff] }
  0x21   : > { %199 = vrot.lane.b32.xlu1 %v2926_v4, %s2811_s29  ;;  %195 = vrot.lane.b32.xlu0 %v2931_v5, %s2811_s29 }
  0x25   : > { %203 = vrot.lane.b32.xlu1 %v2936_v6, %s2811_s29  ;;  %201 = vrot.lane.b32.xlu0 %v2941_v7, %s2811_s29 }
  0x29   : > { %207 = vrot.lane.b32.xlu1 %v2946_v8, %s2811_s29  ;;  %205 = vrot.lane.b32.xlu0 %v2951_v9, %s2811_s29 }
  0x2d   : > { %211 = vrot.lane.b32.xlu1 %v2956_v10, %s2811_s29  ;;  %209 = vrot.lane.b32.xlu0 %v2961_v11, %s2811_s29 }
  0x31   : > { %215 = vrot.lane.b32.xlu1 %v2966_v12, %s2811_s29  ;;  %213 = vrot.lane.b32.xlu0 %v2971_v13, %s2811_s29 }
  0x35   : > { %273 = vperm.xlu1 %2632, %v2978_v14   ;;  %305 = vperm.xlu0 %2634, %v2978_v14  }
  0x39   : > { %277 = vperm.xlu1 %2632, %v2986_v15   ;;  %2635 = vset.pattern.permute.xlu0 %v2812_v17 }
  0x3a   : > { %365 = vperm.xlu0 %2635, %v2993_v16  }
  0x3d   : > { %2633 = vset.pattern.permute.xlu1 %v2810_v1 }
  0x3e   : > { %301 = vperm.xlu1 %2633, %v2993_v16   ;;  %377 = vperm.xlu0 %2635, %v3000_v18  }
  0x42   : > { %309 = vperm.xlu1 %2633, %v2986_v15   ;;  %2638 = vset.pattern.permute.xlu0 %v2813_v19 }
  0x43   : > { %433 = vperm.xlu0 %2638, %v2978_v14  }
  0x46   : > { %313 = vperm.xlu1 %2633, %v3000_v18  }
  0x47   : > { %2639 = vset.pattern.permute.xlu0 %v2814_v20 }
  0x48   : > { %493 = vperm.xlu0 %2639, %v2993_v16  }
  0x4a   : > { %2636 = vset.pattern.permute.xlu1 %v2812_v17 }
  0x4b   : > { %369 = vperm.xlu1 %2636, %v2978_v14  }
  0x4c   : > { %505 = vperm.xlu0 %2639, %v3000_v18  }
  0x4f   : > { %373 = vperm.xlu1 %2636, %v2986_v15  }
  0x50   : > { %2642 = vset.pattern.permute.xlu0 %v2815_v21 }
  0x53   : > { %2637 = vset.pattern.permute.xlu1 %v2813_v19 }
  0x54   : > { %429 = vperm.xlu1 %2637, %v2993_v16  }
  0x58   : > { %437 = vperm.xlu1 %2637, %v2986_v15  }
  0x5c   : > { %441 = vperm.xlu1 %2637, %v3000_v18  }
  0x60   : > { %2640 = vset.pattern.permute.xlu1 %v2814_v20 }
  0x61   : > { %497 = vperm.xlu1 %2640, %v2978_v14  }
  0x65   : > { %501 = vperm.xlu1 %2640, %v2986_v15  }
  0x69   : > { %2641 = vset.pattern.permute.xlu1 %v2815_v21 }
  0x8f   : > { %v198_v22 = vpop.permute.xlu1 %197  ;;  %v194_v23 = vpop.permute.xlu0 %193 }
  0x90   : > { %234 = vst.msk [vmem:[%s3018_s19 + $0xe] sm:$0x3] %vm233_vm0, %v198_v22 }
  0x91   : > { %230 = vst.msk [vmem:[%s3018_s19 - $0x2] sm:$0xfc] %vm229_vm1, %v194_v23 }
  0x93   : > { %v200_v24 = vpop.permute.xlu1 %199  ;;  %v196_v25 = vpop.permute.xlu0 %195 }
  0x94   : > { %235 = vst.msk [vmem:[%s3018_s19 + $0xe] sm:$0xfc] %vm229_vm1, %v200_v24 }
  0x95   : > { %232 = vst.msk [vmem:[%s3018_s19 + $0x6] sm:$0xff] %vm231_vm2, %v196_v25 }
  0x97   : > { %v204_v26 = vpop.permute.xlu1 %203  ;;  %v202_v27 = vpop.permute.xlu0 %201 }
  0x98   : > { %237 = vst.msk [vmem:[%s3018_s19 + $0x1e] sm:$0x3] %vm233_vm0, %v204_v26 }
  0x99   : > { %236 = vst.msk [vmem:[%s3018_s19 + $0x16] sm:$0xff] %vm231_vm2, %v202_v27 }
  0x9b   : > { %v208_v28 = vpop.permute.xlu1 %207  ;;  %v206_v29 = vpop.permute.xlu0 %205 }
  0x9c   : > { %239 = vst.msk [vmem:[%s3018_s19 + $0x26] sm:$0xff] %vm231_vm2, %v208_v28 }
  0x9d   : > { %238 = vst.msk [vmem:[%s3018_s19 + $0x1e] sm:$0xfc] %vm229_vm1, %v206_v29 }
  0x9f   : > { %v212_v30 = vpop.permute.xlu1 %211  ;;  %v210_v31 = vpop.permute.xlu0 %209 }
  0xa0   : > { %241 = vst.msk [vmem:[%s3018_s19 + $0x2e] sm:$0xfc] %vm229_vm1, %v212_v30 }
  0xa1   : > { %240 = vst.msk [vmem:[%s3018_s19 + $0x2e] sm:$0x3] %vm233_vm0, %v210_v31 }
  0xa3   : > { %v216_v32 = vpop.permute.xlu1 %215  ;;  %v214_v33 = vpop.permute.xlu0 %213 }
  0xa4   : > { %243 = vst.msk [vmem:[%s3018_s19 + $0x3e] sm:$0x3] %vm233_vm0, %v216_v32 }
  0xa5   : > { %242 = vst.msk [vmem:[%s3018_s19 + $0x36] sm:$0xff] %vm231_vm2, %v214_v33 }
  0xb4   : > { %v3044_v34 = vpop.permute.xlu1 %273  ;;  %v306_v37 = vpop.permute.xlu0 %305 }
  0xb5   : > { %v318_v40 = vmul.f32 %v306_v37, %v2926_v4  ;;  %v319_v41 = vmul.f32 %v306_v37, %v2941_v7 }
  0xb8   : > { %v3046_v35 = vpop.permute.xlu1 %277 }
  0xb9   : > { %v366_v48 = vpop.permute.xlu0 %365 }
  0xba   : > { %v380_v49 = vmul.f32 %v366_v48, %v2923_v3  ;;  %v381_v50 = vmul.f32 %v366_v48, %v2931_v5 }
  0xbd   : > { %v302_v36 = vpop.permute.xlu1 %301  ;;  %v378_v57 = vpop.permute.xlu0 %377 }
  0xbe   : > { %v316_v38 = vmul.f32 %v302_v36, %v2923_v3  ;;  %v317_v39 = vmul.f32 %v302_v36, %v2931_v5  ;;  %v386_v58 = vmul.f32 %v378_v57, %v2956_v10  ;;  %v387_v59 = vmul.f32 %v378_v57, %v2971_v13 }
  0xc0   : > { %334 = vrot.lane.b32.xlu1 %v317_v39, %s2816_s20  ;;  %332 = vrot.lane.b32.xlu0 %v316_v38, %s2816_s20  ;;  %v2819_v39 = vmov 6  }
  0xc1   : > { %v310_v42 = vpop.permute.xlu1 %309 }
  0xc2   : > { %v320_v43 = vmul.f32 %v310_v42, %v2951_v9  ;;  %v321_v44 = vmul.f32 %v310_v42, %v2946_v8  ;;  %v434_v63 = vpop.permute.xlu0 %433 }
  0xc3   : > { %v446_v1 = vmul.f32 %v434_v63, %v2926_v4  ;;  %v447_v17 = vmul.f32 %v434_v63, %v2941_v7 }
  0xc4   : > { %338 = vrot.lane.b32.xlu1 %v319_v41, %s2816_s20  ;;  %336 = vrot.lane.b32.xlu0 %v318_v40, %s2816_s20  ;;  %v2820_v40 = vmov 7  }
  0xc5   : > { %v314_v45 = vpop.permute.xlu1 %313 }
  0xc6   : > { %v322_v46 = vmul.f32 %v314_v45, %v2956_v10  ;;  %v323_v47 = vmul.f32 %v314_v45, %v2971_v13 }
  0xc7   : > { %v494_v25 = vpop.permute.xlu0 %493 }
  0xc8   : > { %342 = vrot.lane.b32.xlu1 %v321_v44, %s2816_s20  ;;  %340 = vrot.lane.b32.xlu0 %v320_v43, %s2816_s20  ;;  %v508_v26 = vmul.f32 %v494_v25, %v2923_v3  ;;  %v509_v27 = vmul.f32 %v494_v25, %v2931_v5 }
  0xca   : > { %v370_v51 = vpop.permute.xlu1 %369 }
  0xcb   : > { %v382_v52 = vmul.f32 %v370_v51, %v2926_v4  ;;  %v383_v53 = vmul.f32 %v370_v51, %v2941_v7  ;;  %v506_v36 = vpop.permute.xlu0 %505 }
  0xcc   : > { %346 = vrot.lane.b32.xlu1 %v323_v47, %s2816_s20  ;;  %344 = vrot.lane.b32.xlu0 %v322_v46, %s2816_s20  ;;  %v514_v37 = vmul.f32 %v506_v36, %v2956_v10  ;;  %v515_v38 = vmul.f32 %v506_v36, %v2971_v13 }
  0xce   : > { %v374_v54 = vpop.permute.xlu1 %373 }
  0xcf   : > { %v384_v55 = vmul.f32 %v374_v54, %v2951_v9  ;;  %v385_v56 = vmul.f32 %v374_v54, %v2946_v8 }
  0xd0   : > { %396 = vrot.lane.b32.xlu1 %v380_v49, %s2811_s29  ;;  %398 = vrot.lane.b32.xlu0 %v381_v50, %s2811_s29 }
  0xd3   : > { %v430_v60 = vpop.permute.xlu1 %429 }
  0xd4   : > { %400 = vrot.lane.b32.xlu1 %v382_v52, %s2811_s29  ;;  %402 = vrot.lane.b32.xlu0 %v383_v53, %s2811_s29  ;;  %v444_v61 = vmul.f32 %v430_v60, %v2923_v3  ;;  %v445_v62 = vmul.f32 %v430_v60, %v2931_v5 }
  0xd7   : > { %v438_v19 = vpop.permute.xlu1 %437 }
  0xd8   : > { %404 = vrot.lane.b32.xlu1 %v384_v55, %s2811_s29  ;;  %406 = vrot.lane.b32.xlu0 %v385_v56, %s2811_s29  ;;  %v448_v20 = vmul.f32 %v438_v19, %v2951_v9  ;;  %v449_v21 = vmul.f32 %v438_v19, %v2946_v8 }
  0xdb   : > { %v442_v22 = vpop.permute.xlu1 %441 }
  0xdc   : > { %408 = vrot.lane.b32.xlu1 %v386_v58, %s2811_s29  ;;  %410 = vrot.lane.b32.xlu0 %v387_v59, %s2811_s29  ;;  %v450_v23 = vmul.f32 %v442_v22, %v2956_v10  ;;  %v451_v24 = vmul.f32 %v442_v22, %v2971_v13 }
  0xe0   : > { %462 = vrot.lane.b32.xlu1 %v445_v62, %s2817_s24  ;;  %460 = vrot.lane.b32.xlu0 %v444_v61, %s2817_s24  ;;  %v498_v28 = vpop.permute.xlu1 %497 }
  0xe1   : > { %v510_v29 = vmul.f32 %v498_v28, %v2926_v4  ;;  %v511_v30 = vmul.f32 %v498_v28, %v2941_v7 }
  0xe4   : > { %466 = vrot.lane.b32.xlu1 %v447_v17, %s2817_s24  ;;  %464 = vrot.lane.b32.xlu0 %v446_v1, %s2817_s24  ;;  %v502_v31 = vpop.permute.xlu1 %501 }
  0xe5   : > { %v512_v32 = vmul.f32 %v502_v31, %v2951_v9  ;;  %v513_v33 = vmul.f32 %v502_v31, %v2946_v8 }
  0xe8   : > { %470 = vrot.lane.b32.xlu1 %v449_v21, %s2817_s24  ;;  %468 = vrot.lane.b32.xlu0 %v448_v20, %s2817_s24 }
  0xec   : > { %474 = vrot.lane.b32.xlu1 %v451_v24, %s2817_s24  ;;  %472 = vrot.lane.b32.xlu0 %v450_v23, %s2817_s24 }
  0xf0   : > { %524 = vrot.lane.b32.xlu1 %v508_v26, %s2818_s25  ;;  %526 = vrot.lane.b32.xlu0 %v509_v27, %s2818_s25 }
  0xf4   : > { %528 = vrot.lane.b32.xlu1 %v510_v29, %s2818_s25  ;;  %530 = vrot.lane.b32.xlu0 %v511_v30, %s2818_s25 }
  0xf8   : > { %532 = vrot.lane.b32.xlu1 %v512_v32, %s2818_s25  ;;  %534 = vrot.lane.b32.xlu0 %v513_v33, %s2818_s25 }
  0xfc   : > { %536 = vrot.lane.b32.xlu1 %v514_v37, %s2818_s25  ;;  %561 = vperm.xlu0 %2642, %v2978_v14  }
 0x100   : > { %557 = vperm.xlu1 %2641, %v2993_v16   ;;  %538 = vrot.lane.b32.xlu0 %v515_v38, %s2818_s25 }
 0x101   : > { %2643 = vset.pattern.permute.xlu0 %v2819_v39 }
 0x104   : > { %565 = vperm.xlu1 %2641, %v2986_v15   ;;  %634 = vperm.xlu0 %2643, %v2993_v16  }
 0x108   : > { %569 = vperm.xlu1 %2641, %v3000_v18   ;;  %646 = vperm.xlu0 %2643, %v3000_v18  }
 0x10c   : > { %2644 = vset.pattern.permute.xlu1 %v2819_v39  ;;  %2646 = vset.pattern.permute.xlu0 %v2820_v40 }
 0x10d   : > { %638 = vperm.xlu1 %2644, %v2978_v14  }
 0x111   : > { %642 = vperm.xlu1 %2644, %v2986_v15  }
 0x115   : > { %2645 = vset.pattern.permute.xlu1 %v2820_v40 }
 0x132   : > { %v3120_v41 = vpop.permute.xlu1 %334  ;;  %v3122_v42 = vpop.permute.xlu0 %332 }
 0x133   : > { %4588 = vst [vmem:[#allocation5_spill] sm:$0xff] %v3120_v41  ;;  %4589 = vst [vmem:[#allocation6_spill] sm:$0xff] %v3122_v42 }
 0x136   : > { %v3124_v43 = vpop.permute.xlu1 %338  ;;  %v3126_v44 = vpop.permute.xlu0 %336 }
 0x137   : > { %4590 = vst [vmem:[#allocation7_spill] sm:$0xff] %v3126_v44 }
 0x13a   : > { %v3128_v45 = vpop.permute.xlu1 %342  ;;  %v3130_v46 = vpop.permute.xlu0 %340 }
 0x13b   : > { %4591 = vst [vmem:[#allocation8_spill] sm:$0xff] %v3130_v46 }
 0x13e   : > { %v3132_v47 = vpop.permute.xlu1 %346  ;;  %v3134_v48 = vpop.permute.xlu0 %344 }
 0x13f   : > { %4592 = vst [vmem:[#allocation9_spill] sm:$0xff] %v3132_v47  ;;  %4593 = vst [vmem:[#allocation10_spill] sm:$0xff] %v3134_v48 }
 0x142   : > { %v3136_v49 = vpop.permute.xlu1 %396  ;;  %v3138_v50 = vpop.permute.xlu0 %398 }
 0x143   : > { %4594 = vst [vmem:[#allocation11_spill] sm:$0xff] %v3136_v49  ;;  %4595 = vst [vmem:[#allocation12_spill] sm:$0xff] %v3138_v50 }
 0x146   : > { %v3140_v51 = vpop.permute.xlu1 %400  ;;  %v3142_v52 = vpop.permute.xlu0 %402 }
 0x147   : > { %4596 = vst [vmem:[#allocation13_spill] sm:$0xff] %v3140_v51 }
 0x14a   : > { %v3144_v53 = vpop.permute.xlu1 %404  ;;  %v3146_v54 = vpop.permute.xlu0 %406 }
 0x14b   : > { %4597 = vst [vmem:[#allocation14_spill] sm:$0xff] %v3144_v53 }
 0x14e   : > { %v3148_v55 = vpop.permute.xlu1 %408  ;;  %v3150_v56 = vpop.permute.xlu0 %410 }
 0x14f   : > { %4598 = vst [vmem:[#allocation15_spill] sm:$0xff] %v3148_v55  ;;  %4599 = vst [vmem:[#allocation16_spill] sm:$0xff] %v3150_v56 }
 0x152   : > { %v3152_v57 = vpop.permute.xlu1 %462  ;;  %v3154_v58 = vpop.permute.xlu0 %460 }
 0x153   : > { %4600 = vst [vmem:[#allocation17_spill] sm:$0xff] %v3152_v57  ;;  %4601 = vst [vmem:[#allocation18_spill] sm:$0xff] %v3154_v58 }
 0x156   : > { %v3156_v59 = vpop.permute.xlu1 %466  ;;  %v3158_v60 = vpop.permute.xlu0 %464 }
 0x157   : > { %4602 = vst [vmem:[#allocation19_spill] sm:$0xff] %v3158_v60 }
 0x15a   : > { %v3160_v61 = vpop.permute.xlu1 %470  ;;  %v3162_v62 = vpop.permute.xlu0 %468 }
 0x15b   : > { %4603 = vst [vmem:[#allocation20_spill] sm:$0xff] %v3162_v62 }
 0x15e   : > { %v3164_v63 = vpop.permute.xlu1 %474  ;;  %v3166_v1 = vpop.permute.xlu0 %472 }
 0x15f   : > { %4604 = vst [vmem:[#allocation21_spill] sm:$0xff] %v3164_v63  ;;  %4605 = vst [vmem:[#allocation22_spill] sm:$0xff] %v3166_v1 }
 0x162   : > { %v3168_v17 = vpop.permute.xlu1 %524  ;;  %v3170_v19 = vpop.permute.xlu0 %526 }
 0x163   : > { %4606 = vst [vmem:[#allocation23_spill] sm:$0xff] %v3168_v17  ;;  %4607 = vst [vmem:[#allocation24_spill] sm:$0xff] %v3170_v19 }
 0x166   : > { %v3172_v20 = vpop.permute.xlu1 %528  ;;  %v3174_v21 = vpop.permute.xlu0 %530 }
 0x167   : > { %4608 = vst [vmem:[#allocation25_spill] sm:$0xff] %v3172_v20 }
 0x16a   : > { %v3176_v22 = vpop.permute.xlu1 %532  ;;  %v3178_v23 = vpop.permute.xlu0 %534 }
 0x16b   : > { %4609 = vst [vmem:[#allocation26_spill] sm:$0xff] %v3176_v22 }
 0x16e   : > { %v3180_v24 = vpop.permute.xlu1 %536 }
 0x16f   : > { %4610 = vst [vmem:[#allocation27_spill] sm:$0xff] %v3180_v24 }
 0x17b   : > { %v3182_v25 = vpop.permute.xlu0 %561 }
 0x17f   : > { %v3184_v26 = vpop.permute.xlu1 %557  ;;  %v3186_v27 = vpop.permute.xlu0 %538 }
 0x180   : > { %4611 = vst [vmem:[#allocation28_spill] sm:$0xff] %v3184_v26  ;;  %4612 = vst [vmem:[#allocation29_spill] sm:$0xff] %v3186_v27 }
 0x183   : > { %v3188_v28 = vpop.permute.xlu1 %565  ;;  %v635_v29 = vpop.permute.xlu0 %634 }
 0x184   : > { %v649_v30 = vmul.f32 %v635_v29, %v2923_v3  ;;  %v650_v31 = vmul.f32 %v635_v29, %v2931_v5  ;;  %v651_v32 = vmul.f32 %v635_v29, %v2918_v2 }
 0x186   : > { %v674_v36 = vrot.slane %v650_v31, 1  ;;  %v676_v37 = vrot.slane %v651_v32, 1  ;;  %v673_v38 = vrot.slane %v649_v30, 1 }
 0x187   : > { %v3193_v33 = vpop.permute.xlu1 %569  ;;  %v647_v24 = vpop.permute.xlu0 %646 }
 0x188   : > { %4613 = vst [vmem:[#allocation30_spill] sm:$0xff] %v3193_v33  ;;  %v677_v39 = vsel %vm596_vm3, %v674_v36, %v676_v37  ;;  %v675_v40 = vsel %vm596_vm3, %v673_v38, %v674_v36  ;;  %v659_v57 = vmul.f32 %v647_v24, %v2971_v13  ;;  %v660_v37 = vmul.f32 %v647_v24, %v2966_v12 }
 0x189   : > { %695 = vrot.lane.b32.xlu0 %v677_v39, %s2816_s20  ;;  %693 = vrot.lane.b32.xlu1 %v675_v40, %s2816_s20  ;;  %v658_v17 = vmul.f32 %v647_v24, %v2956_v10 }
 0x18a   : > { %v689_v58 = vrot.slane %v659_v57, 1  ;;  %v691_v41 = vrot.slane %v660_v37, 1 }
 0x18c   : > { %v639_v0 = vpop.permute.xlu1 %638 }
 0x18d   : > { %v652_v19 = vmul.f32 %v639_v0, %v2926_v4  ;;  %v653_v29 = vmul.f32 %v639_v0, %v2941_v7  ;;  %v654_v1 = vmul.f32 %v639_v0, %v2936_v6 }
 0x18f   : > { %v679_v31 = vrot.slane %v653_v29, 1  ;;  %v681_v32 = vrot.slane %v654_v1, 1  ;;  %v678_v30 = vrot.slane %v652_v19, 1 }
 0x190   : > { %v643_v36 = vpop.permute.xlu1 %642 }
 0x191   : > { %v655_v38 = vmul.f32 %v643_v36, %v2951_v9  ;;  %v656_v39 = vmul.f32 %v643_v36, %v2946_v8  ;;  %v657_v40 = vmul.f32 %v643_v36, %v2961_v11  ;;  %v682_v55 = vsel %vm596_vm3, %v679_v31, %v681_v32 }
 0x192   : > { %699 = vrot.lane.b32.xlu0 %v682_v55, %s2816_s20  ;;  %v680_v0 = vsel %vm596_vm3, %v678_v30, %v679_v31  ;;  %v688_v32 = vrot.slane %v658_v17, 1  ;;  %v692_v55 = vsel %vm596_vm3, %v689_v58, %v691_v41 }
 0x193   : > { %697 = vrot.lane.b32.xlu1 %v680_v0, %s2816_s20  ;;  %v684_v1 = vrot.slane %v656_v39, 1  ;;  %v686_v19 = vrot.slane %v657_v40, 1  ;;  %v683_v29 = vrot.slane %v655_v38, 1 }
 0x194   : > { %v690_v24 = vsel %vm596_vm3, %v688_v32, %v689_v58 }
 0x195   : > { %v687_v50 = vsel %vm596_vm3, %v684_v1, %v686_v19  ;;  %v685_v48 = vsel %vm596_vm3, %v683_v29, %v684_v1 }
 0x196   : > { %703 = vrot.lane.b32.xlu0 %v687_v50, %s2816_s20  ;;  %v2821_v50 = vmov 8  }
 0x197   : > { %701 = vrot.lane.b32.xlu1 %v685_v48, %s2816_s20 }
 0x19a   : > { %707 = vrot.lane.b32.xlu0 %v692_v55, %s2816_s20 }
 0x19b   : > { %705 = vrot.lane.b32.xlu1 %v690_v24, %s2816_s20 }
 0x19e   : > { %730 = vperm.xlu0 %2646, %v2978_v14  }
 0x19f   : > { %726 = vperm.xlu1 %2645, %v2993_v16  }
 0x1a2   : > { %2647 = vset.pattern.permute.xlu0 %v2821_v50 }
 0x1a3   : > { %734 = vperm.xlu1 %2645, %v2986_v15  }
 0x1a7   : > { %738 = vperm.xlu1 %2645, %v3000_v18  }
 0x1ab   : > { %2648 = vset.pattern.permute.xlu1 %v2821_v50 }
 0x1fb   : > { %v3224_v48 = vpop.permute.xlu0 %695  ;;  %v3226_v41 = vpop.permute.xlu1 %693 }
 0x1fc   : > { %4614 = vst [vmem:[#allocation31_spill] sm:$0xff] %v3224_v48  ;;  %4615 = vst [vmem:[#allocation32_spill] sm:$0xff] %v3226_v41 }
 0x204   : > { %v3228_v57 = vpop.permute.xlu0 %699 }
 0x205   : > { %v3230_v58 = vpop.permute.xlu1 %697 }
 0x206   : > { %4616 = vst [vmem:[#allocation33_spill] sm:$0xff] %v3230_v58 }
 0x208   : > { %v3232_v17 = vpop.permute.xlu0 %703 }
 0x209   : > { %v3234_v31 = vpop.permute.xlu1 %701 }
 0x20a   : > { %4617 = vst [vmem:[#allocation34_spill] sm:$0xff] %v3234_v31 }
 0x20c   : > { %v3236_v30 = vpop.permute.xlu0 %707 }
 0x20d   : > { %4618 = vst [vmem:[#allocation35_spill] sm:$0xff] %v3236_v30  ;;  %v3238_v37 = vpop.permute.xlu1 %705 }
 0x20e   : > { %4619 = vst [vmem:[#allocation36_spill] sm:$0xff] %v3238_v37 }
 0x21d   : > { %v731_v36 = vpop.permute.xlu0 %730 }
 0x21e   : > { %v727_v38 = vpop.permute.xlu1 %726  ;;  %v744_v39 = vmul.f32 %v731_v36, %v2926_v4  ;;  %v745_v40 = vmul.f32 %v731_v36, %v2941_v7  ;;  %v746_v0 = vmul.f32 %v731_v36, %v2936_v6 }
 0x21f   : > { %v741_v1 = vmul.f32 %v727_v38, %v2923_v3  ;;  %v742_v19 = vmul.f32 %v727_v38, %v2931_v5  ;;  %v743_v29 = vmul.f32 %v727_v38, %v2918_v2 }
 0x220   : > { %v771_v32 = vrot.slane %v745_v40, 1  ;;  %v773_v48 = vrot.slane %v746_v0, 1  ;;  %v770_v41 = vrot.slane %v744_v39, 1 }
 0x221   : > { %v766_v55 = vrot.slane %v742_v19, 1  ;;  %v768_v24 = vrot.slane %v743_v29, 1  ;;  %v765_v50 = vrot.slane %v741_v1, 1 }
 0x222   : > { %v735_v37 = vpop.permute.xlu1 %734  ;;  %v774_v38 = vsel %vm596_vm3, %v771_v32, %v773_v48  ;;  %v772_v0 = vsel %vm596_vm3, %v770_v41, %v771_v32 }
 0x223   : > { %v748_v26 = vmul.f32 %v735_v37, %v2946_v8  ;;  %v749_v49 = vmul.f32 %v735_v37, %v2961_v11  ;;  %v769_v42 = vsel %vm596_vm3, %v766_v55, %v768_v24  ;;  %v747_v36 = vmul.f32 %v735_v37, %v2951_v9 }
 0x224   : > { %787 = vrot.lane.b32.xlu1 %v769_v42, %s2811_s29  ;;  %v767_v30 = vsel %vm596_vm3, %v765_v50, %v766_v55  ;;  %v2822_v55 = vmov 9  }
 0x225   : > { %785 = vrot.lane.b32.xlu0 %v767_v30, %s2811_s29  ;;  %v776_v19 = vrot.slane %v748_v26, 1  ;;  %v778_v29 = vrot.slane %v749_v49, 1  ;;  %v775_v42 = vrot.slane %v747_v36, 1 }
 0x226   : > { %v739_v40 = vpop.permute.xlu1 %738 }
 0x227   : > { %v751_v39 = vmul.f32 %v739_v40, %v2971_v13  ;;  %v752_v1 = vmul.f32 %v739_v40, %v2966_v12  ;;  %v750_v24 = vmul.f32 %v739_v40, %v2956_v10  ;;  %v779_v48 = vsel %vm596_vm3, %v776_v19, %v778_v29 }
 0x228   : > { %791 = vrot.lane.b32.xlu1 %v774_v38, %s2811_s29  ;;  %v777_v41 = vsel %vm596_vm3, %v775_v42, %v776_v19 }
 0x229   : > { %789 = vrot.lane.b32.xlu0 %v772_v0, %s2811_s29  ;;  %v781_v37 = vrot.slane %v751_v39, 1  ;;  %v783_v30 = vrot.slane %v752_v1, 1  ;;  %v780_v32 = vrot.slane %v750_v24, 1 }
 0x22b   : > { %v784_v49 = vsel %vm596_vm3, %v781_v37, %v783_v30  ;;  %v782_v26 = vsel %vm596_vm3, %v780_v32, %v781_v37 }
 0x22c   : > { %795 = vrot.lane.b32.xlu1 %v779_v48, %s2811_s29 }
 0x22d   : > { %793 = vrot.lane.b32.xlu0 %v777_v41, %s2811_s29 }
 0x230   : > { %799 = vrot.lane.b32.xlu1 %v784_v49, %s2811_s29 }
 0x231   : > { %797 = vrot.lane.b32.xlu0 %v782_v26, %s2811_s29 }
 0x234   : > { %822 = vperm.xlu1 %2648, %v2978_v14  }
 0x235   : > { %818 = vperm.xlu0 %2647, %v2993_v16  }
 0x238   : > { %826 = vperm.xlu1 %2648, %v2986_v15  }
 0x239   : > { %830 = vperm.xlu0 %2647, %v3000_v18  }
 0x23c   : > { %2649 = vset.pattern.permute.xlu1 %v2822_v55 }
 0x23d   : > { %2650 = vset.pattern.permute.xlu0 %v2822_v55 }
 0x296   : > { %v3272_v50 = vpop.permute.xlu1 %787 }
 0x297   : > { %4620 = vst [vmem:[#allocation37_spill] sm:$0xff] %v3272_v50  ;;  %v3274_v36 = vpop.permute.xlu0 %785 }
 0x298   : > { %4621 = vst [vmem:[#allocation38_spill] sm:$0xff] %v3274_v36 }
 0x29a   : > { %v3276_v38 = vpop.permute.xlu1 %791 }
 0x29b   : > { %v3278_v40 = vpop.permute.xlu0 %789 }
 0x29c   : > { %4622 = vst [vmem:[#allocation39_spill] sm:$0xff] %v3278_v40 }
 0x29e   : > { %v3280_v0 = vpop.permute.xlu1 %795 }
 0x29f   : > { %v3282_v39 = vpop.permute.xlu0 %793 }
 0x2a0   : > { %4623 = vst [vmem:[#allocation40_spill] sm:$0xff] %v3282_v39 }
 0x2a2   : > { %v3284_v1 = vpop.permute.xlu1 %799 }
 0x2a3   : > { %4624 = vst [vmem:[#allocation41_spill] sm:$0xff] %v3284_v1  ;;  %v3286_v19 = vpop.permute.xlu0 %797 }
 0x2a4   : > { %4625 = vst [vmem:[#allocation42_spill] sm:$0xff] %v3286_v19 }
 0x2b3   : > { %v823_v29 = vpop.permute.xlu1 %822 }
 0x2b4   : > { %v836_v24 = vmul.f32 %v823_v29, %v2926_v4  ;;  %v837_v42 = vmul.f32 %v823_v29, %v2941_v7  ;;  %v838_v37 = vmul.f32 %v823_v29, %v2936_v6  ;;  %v819_v30 = vpop.permute.xlu0 %818 }
 0x2b5   : > { %v833_v48 = vmul.f32 %v819_v30, %v2923_v3  ;;  %v834_v41 = vmul.f32 %v819_v30, %v2931_v5  ;;  %v835_v32 = vmul.f32 %v819_v30, %v2918_v2 }
 0x2b6   : > { %v863_v49 = vrot.slane %v837_v42, 1  ;;  %v865_v19 = vrot.slane %v838_v37, 1  ;;  %v862_v1 = vrot.slane %v836_v24, 1 }
 0x2b7   : > { %v857_v26 = vrot.slane %v833_v48, 1  ;;  %v827_v55 = vpop.permute.xlu1 %826  ;;  %v858_v50 = vrot.slane %v834_v41, 1  ;;  %v860_v36 = vrot.slane %v835_v32, 1 }
 0x2b8   : > { %v840_v27 = vmul.f32 %v827_v55, %v2946_v8  ;;  %v841_v63 = vmul.f32 %v827_v55, %v2961_v11  ;;  %v839_v56 = vmul.f32 %v827_v55, %v2951_v9  ;;  %v831_v47 = vpop.permute.xlu0 %830  ;;  %v866_v42 = vsel %vm596_vm3, %v863_v49, %v865_v19 }
 0x2b9   : > { %v861_v29 = vsel %vm596_vm3, %v858_v50, %v860_v36  ;;  %v859_v30 = vsel %vm596_vm3, %v857_v26, %v858_v50  ;;  %v864_v37 = vsel %vm596_vm3, %v862_v1, %v863_v49  ;;  %v843_v24 = vmul.f32 %v831_v47, %v2971_v13 }
 0x2ba   : > { %879 = vrot.lane.b32.xlu0 %v861_v29, %s2817_s24  ;;  %877 = vrot.lane.b32.xlu1 %v859_v30, %s2817_s24  ;;  %v844_v48 = vmul.f32 %v831_v47, %v2966_v12  ;;  %v868_v41 = vrot.slane %v840_v27, 1  ;;  %v870_v32 = vrot.slane %v841_v63, 1  ;;  %v867_v36 = vrot.slane %v839_v56, 1 }
 0x2bb   : > { %v842_v55 = vmul.f32 %v831_v47, %v2956_v10  ;;  %v873_v26 = vrot.slane %v843_v24, 1  ;;  %v2823_v56 = vmov 10  }
 0x2bc   : > { %v871_v50 = vsel %vm596_vm3, %v868_v41, %v870_v32  ;;  %v875_v29 = vrot.slane %v844_v48, 1  ;;  %v869_v1 = vsel %vm596_vm3, %v867_v36, %v868_v41 }
 0x2bd   : > { %v872_v19 = vrot.slane %v842_v55, 1 }
 0x2be   : > { %883 = vrot.lane.b32.xlu0 %v866_v42, %s2817_s24  ;;  %881 = vrot.lane.b32.xlu1 %v864_v37, %s2817_s24  ;;  %v876_v63 = vsel %vm596_vm3, %v873_v26, %v875_v29 }
 0x2bf   : > { %v874_v47 = vsel %vm596_vm3, %v872_v19, %v873_v26 }
 0x2c2   : > { %887 = vrot.lane.b32.xlu0 %v871_v50, %s2817_s24  ;;  %885 = vrot.lane.b32.xlu1 %v869_v1, %s2817_s24 }
 0x2c6   : > { %891 = vrot.lane.b32.xlu0 %v876_v63, %s2817_s24  ;;  %889 = vrot.lane.b32.xlu1 %v874_v47, %s2817_s24 }
 0x2ca   : > { %914 = vperm.xlu0 %2650, %v2978_v14   ;;  %910 = vperm.xlu1 %2649, %v2993_v16  }
 0x2ce   : > { %918 = vperm.xlu1 %2649, %v2986_v15   ;;  %2651 = vset.pattern.permute.xlu0 %v2823_v56 }
 0x2d2   : > { %922 = vperm.xlu1 %2649, %v3000_v18  }
 0x2d6   : > { %2652 = vset.pattern.permute.xlu1 %v2823_v56 }
 0x32c   : > { %v3320_v27 = vpop.permute.xlu0 %879  ;;  %v3322_v49 = vpop.permute.xlu1 %877 }
 0x32d   : > { %4626 = vst [vmem:[#allocation43_spill] sm:$0xff] %v3320_v27  ;;  %4627 = vst [vmem:[#allocation44_spill] sm:$0xff] %v3322_v49 }
 0x330   : > { %v3324_v30 = vpop.permute.xlu0 %883  ;;  %v3326_v42 = vpop.permute.xlu1 %881 }
 0x331   : > { %4628 = vst [vmem:[#allocation45_spill] sm:$0xff] %v3326_v42 }
 0x334   : > { %v3328_v37 = vpop.permute.xlu0 %887  ;;  %v3330_v24 = vpop.permute.xlu1 %885 }
 0x335   : > { %4629 = vst [vmem:[#allocation46_spill] sm:$0xff] %v3330_v24 }
 0x338   : > { %v3332_v48 = vpop.permute.xlu0 %891  ;;  %v3334_v41 = vpop.permute.xlu1 %889 }
 0x339   : > { %4630 = vst [vmem:[#allocation47_spill] sm:$0xff] %v3332_v48  ;;  %4631 = vst [vmem:[#allocation48_spill] sm:$0xff] %v3334_v41 }
 0x349   : > { %v915_v32 = vpop.permute.xlu0 %914  ;;  %v911_v36 = vpop.permute.xlu1 %910 }
 0x34a   : > { %v928_v55 = vmul.f32 %v915_v32, %v2926_v4  ;;  %v929_v50 = vmul.f32 %v915_v32, %v2941_v7  ;;  %v930_v26 = vmul.f32 %v915_v32, %v2936_v6  ;;  %v925_v29 = vmul.f32 %v911_v36, %v2923_v3 }
 0x34b   : > { %v926_v19 = vmul.f32 %v911_v36, %v2931_v5  ;;  %v927_v1 = vmul.f32 %v911_v36, %v2918_v2 }
 0x34c   : > { %v955_v63 = vrot.slane %v929_v50, 1  ;;  %v957_v27 = vrot.slane %v930_v26, 1  ;;  %v949_v49 = vrot.slane %v925_v29, 1  ;;  %v954_v48 = vrot.slane %v928_v55, 1 }
 0x34d   : > { %v950_v47 = vrot.slane %v926_v19, 1  ;;  %v952_v56 = vrot.slane %v927_v1, 1  ;;  %v919_v41 = vpop.permute.xlu1 %918 }
 0x34e   : > { %v932_v33 = vmul.f32 %v919_v41, %v2946_v8  ;;  %v933_v24 = vmul.f32 %v919_v41, %v2961_v11  ;;  %v931_v32 = vmul.f32 %v919_v41, %v2951_v9  ;;  %v958_v36 = vsel %vm596_vm3, %v955_v63, %v957_v27 }
 0x34f   : > { %v953_v39 = vsel %vm596_vm3, %v950_v47, %v952_v56  ;;  %v951_v42 = vsel %vm596_vm3, %v949_v49, %v950_v47  ;;  %v956_v26 = vsel %vm596_vm3, %v954_v48, %v955_v63  ;;  %v2824_v63 = vmov 11  }
 0x350   : > { %971 = vrot.lane.b32.xlu1 %v953_v39, %s2818_s25  ;;  %969 = vrot.lane.b32.xlu0 %v951_v42, %s2818_s25  ;;  %v960_v55 = vrot.slane %v932_v33, 1  ;;  %v962_v29 = vrot.slane %v933_v24, 1  ;;  %v959_v56 = vrot.slane %v931_v32, 1  ;;  %v2825_v47 = vmov 12  }
 0x351   : > { %v923_v50 = vpop.permute.xlu1 %922 }
 0x352   : > { %v935_v19 = vmul.f32 %v923_v50, %v2971_v13  ;;  %v936_v1 = vmul.f32 %v923_v50, %v2966_v12  ;;  %v934_v41 = vmul.f32 %v923_v50, %v2956_v10  ;;  %v963_v27 = vsel %vm596_vm3, %v960_v55, %v962_v29 }
 0x353   : > { %v961_v33 = vsel %vm596_vm3, %v959_v56, %v960_v55 }
 0x354   : > { %975 = vrot.lane.b32.xlu1 %v958_v36, %s2818_s25  ;;  %973 = vrot.lane.b32.xlu0 %v956_v26, %s2818_s25  ;;  %v965_v39 = vrot.slane %v935_v19, 1  ;;  %v967_v49 = vrot.slane %v936_v1, 1  ;;  %v964_v42 = vrot.slane %v934_v41, 1 }
 0x356   : > { %v968_v24 = vsel %vm596_vm3, %v965_v39, %v967_v49  ;;  %v966_v48 = vsel %vm596_vm3, %v964_v42, %v965_v39 }
 0x358   : > { %979 = vrot.lane.b32.xlu1 %v963_v27, %s2818_s25  ;;  %977 = vrot.lane.b32.xlu0 %v961_v33, %s2818_s25 }
 0x35c   : > { %983 = vrot.lane.b32.xlu1 %v968_v24, %s2818_s25  ;;  %981 = vrot.lane.b32.xlu0 %v966_v48, %s2818_s25 }
 0x360   : > { %1006 = vperm.xlu1 %2652, %v2978_v14   ;;  %1002 = vperm.xlu0 %2651, %v2993_v16  }
 0x364   : > { %1010 = vperm.xlu1 %2652, %v2986_v15   ;;  %1014 = vperm.xlu0 %2651, %v3000_v18  }
 0x368   : > { %2653 = vset.pattern.permute.xlu1 %v2824_v63  ;;  %2654 = vset.pattern.permute.xlu0 %v2824_v63 }
 0x369   : > { %1079 = vperm.xlu1 %2653, %v2993_v16   ;;  %1083 = vperm.xlu0 %2654, %v2978_v14  }
 0x36d   : > { %1087 = vperm.xlu1 %2653, %v2986_v15   ;;  %2655 = vset.pattern.permute.xlu0 %v2825_v47 }
 0x371   : > { %1091 = vperm.xlu1 %2653, %v3000_v18  }
 0x375   : > { %2656 = vset.pattern.permute.xlu1 %v2825_v47 }
 0x3c2   : > { %v3372_v32 = vpop.permute.xlu1 %971  ;;  %v3374_v36 = vpop.permute.xlu0 %969 }
 0x3c3   : > { %4632 = vst [vmem:[#allocation49_spill] sm:$0xff] %v3372_v32  ;;  %4633 = vst [vmem:[#allocation50_spill] sm:$0xff] %v3374_v36 }
 0x3c6   : > { %v3376_v50 = vpop.permute.xlu1 %975  ;;  %v3378_v26 = vpop.permute.xlu0 %973 }
 0x3c7   : > { %4634 = vst [vmem:[#allocation51_spill] sm:$0xff] %v3378_v26 }
 0x3ca   : > { %v3380_v55 = vpop.permute.xlu1 %979  ;;  %v3382_v29 = vpop.permute.xlu0 %977 }
 0x3cb   : > { %4635 = vst [vmem:[#allocation52_spill] sm:$0xff] %v3382_v29 }
 0x3ce   : > { %v3384_v19 = vpop.permute.xlu1 %983  ;;  %v3386_v1 = vpop.permute.xlu0 %981 }
 0x3cf   : > { %4636 = vst [vmem:[#allocation53_spill] sm:$0xff] %v3384_v19  ;;  %4637 = vst [vmem:[#allocation54_spill] sm:$0xff] %v3386_v1 }
 0x3df   : > { %v3388_v56 = vpop.permute.xlu1 %1006  ;;  %v3390_v41 = vpop.permute.xlu0 %1002 }
 0x3e0   : > { %4638 = vst [vmem:[#allocation55_spill] sm:$0xff] %v3390_v41 }
 0x3e3   : > { %v3392_v39 = vpop.permute.xlu1 %1010  ;;  %v3394_v49 = vpop.permute.xlu0 %1014 }
 0x3e4   : > { %4639 = vst [vmem:[#allocation56_spill] sm:$0xff] %v3394_v49 }
 0x3e8   : > { %v1080_v27 = vpop.permute.xlu1 %1079  ;;  %v1084_v48 = vpop.permute.xlu0 %1083 }
 0x3e9   : > { %v1094_v42 = vmul.f32 %v1080_v27, %v2923_v3  ;;  %v1095_v33 = vmul.f32 %v1080_v27, %v2931_v5  ;;  %v1096_v24 = vmul.f32 %v1080_v27, %v2918_v2  ;;  %v1097_v63 = vmul.f32 %v1084_v48, %v2926_v4 }
 0x3ea   : > { %v1098_v47 = vmul.f32 %v1084_v48, %v2941_v7  ;;  %v1099_v1 = vmul.f32 %v1084_v48, %v2936_v6 }
 0x3eb   : > { %v1118_v32 = vrot.slane %v1094_v42, 2  ;;  %v1119_v36 = vrot.slane %v1095_v33, 2  ;;  %v1121_v41 = vrot.slane %v1096_v24, 2  ;;  %v1123_v49 = vrot.slane %v1097_v63, 2 }
 0x3ec   : > { %v1088_v19 = vpop.permute.xlu1 %1087  ;;  %v1124_v29 = vrot.slane %v1098_v47, 2  ;;  %v1126_v26 = vrot.slane %v1099_v1, 2 }
 0x3ed   : > { %v1101_v3 = vmul.f32 %v1088_v19, %v2946_v8  ;;  %v1102_v5 = vmul.f32 %v1088_v19, %v2961_v11  ;;  %v1122_v2 = vsel %vm1041_vm4, %v1119_v36, %v1121_v41  ;;  %v1100_v4 = vmul.f32 %v1088_v19, %v2951_v9 }
 0x3ee   : > { %1140 = vrot.lane.b32.xlu1 %v1122_v2, %s2816_s20  ;;  %v1120_v6 = vsel %vm1041_vm4, %v1118_v32, %v1119_v36  ;;  %v1127_v7 = vsel %vm1041_vm4, %v1124_v29, %v1126_v26  ;;  %v1125_v42 = vsel %vm1041_vm4, %v1123_v49, %v1124_v29  ;;  %v3449_v2 = vld [vmem:[%s2915_s28 + $0x20] sm:$0xff] }
 0x3ef   : > { %1138 = vrot.lane.b32.xlu0 %v1120_v6, %s2816_s20  ;;  %v1129_v1 = vrot.slane %v1101_v3, 2  ;;  %v1131_v33 = vrot.slane %v1102_v5, 2  ;;  %v1128_v41 = vrot.slane %v1100_v4, 2  ;;  %v3445_v3 = vld [vmem:[%s2915_s28 + $0x18] sm:$0xff]  ;;  %v3453_v6 = vld [vmem:[%s2915_s28 + $0x28] sm:$0xf] }
 0x3f0   : > { %v1092_v27 = vpop.permute.xlu1 %1091 }
 0x3f1   : > { %v1104_v8 = vmul.f32 %v1092_v27, %v2971_v13  ;;  %v1105_v11 = vmul.f32 %v1092_v27, %v2966_v12  ;;  %v1103_v9 = vmul.f32 %v1092_v27, %v2956_v10  ;;  %v1132_v26 = vsel %vm1041_vm4, %v1129_v1, %v1131_v33  ;;  %v3461_v33 = vld [vmem:[%s2915_s28 + $0x8] sm:$0xff] }
 0x3f2   : > { %1144 = vrot.lane.b32.xlu1 %v1127_v7, %s2816_s20  ;;  %v1130_v29 = vsel %vm1041_vm4, %v1128_v41, %v1129_v1  ;;  %v2826_v13 = vmov 13   ;;  %4646 = vst [vmem:[#allocation63_spill] sm:$0xff] %v3461_v33 }
 0x3f3   : > { %1142 = vrot.lane.b32.xlu0 %v1125_v42, %s2816_s20  ;;  %v1134_v32 = vrot.slane %v1104_v8, 2  ;;  %v1136_v36 = vrot.slane %v1105_v11, 2  ;;  %v1133_v19 = vrot.slane %v1103_v9, 2  ;;  %v3457_v42 = vld [vmem:[%s2915_s28] sm:$0xff]  ;;  %v3465_v11 = vld [vmem:[%s2915_s28 + $0x10] sm:$0xf] }
 0x3f5   : > { %v1137_v12 = vsel %vm1041_vm4, %v1134_v32, %v1136_v36  ;;  %v1135_v10 = vsel %vm1041_vm4, %v1133_v19, %v1134_v32 }
 0x3f6   : > { %1148 = vrot.lane.b32.xlu1 %v1132_v26, %s2816_s20 }
 0x3f7   : > { %1146 = vrot.lane.b32.xlu0 %v1130_v29, %s2816_s20 }
 0x3fa   : > { %1152 = vrot.lane.b32.xlu1 %v1137_v12, %s2816_s20 }
 0x3fb   : > { %1150 = vrot.lane.b32.xlu0 %v1135_v10, %s2816_s20  ;;  %v3469_v10 = vld [vmem:[%s2915_s28 + $0x38] sm:$0xff] }
 0x3fe   : > { %1175 = vperm.xlu1 %2656, %v2978_v14  }
 0x3ff   : > { %1171 = vperm.xlu0 %2655, %v2993_v16  }
 0x402   : > { %1179 = vperm.xlu1 %2656, %v2986_v15  }
 0x403   : > { %1183 = vperm.xlu0 %2655, %v3000_v18  }
 0x406   : > { %2657 = vset.pattern.permute.xlu1 %v2826_v13 }
 0x407   : > { %2658 = vset.pattern.permute.xlu0 %v2826_v13 }
 0x460   : > { %v3428_v49 = vpop.permute.xlu1 %1140 }
 0x461   : > { %4640 = vst [vmem:[#allocation57_spill] sm:$0xff] %v3428_v49  ;;  %v3430_v24 = vpop.permute.xlu0 %1138 }
 0x462   : > { %4641 = vst [vmem:[#allocation58_spill] sm:$0xff] %v3430_v24 }
 0x464   : > { %v3432_v48 = vpop.permute.xlu1 %1144 }
 0x465   : > { %v3434_v14 = vpop.permute.xlu0 %1142 }
 0x466   : > { %4642 = vst [vmem:[#allocation59_spill] sm:$0xff] %v3434_v14 }
 0x468   : > { %v3436_v16 = vpop.permute.xlu1 %1148 }
 0x469   : > { %v3438_v15 = vpop.permute.xlu0 %1146 }
 0x46a   : > { %4643 = vst [vmem:[#allocation60_spill] sm:$0xff] %v3438_v15  ;;  %v3491_v15 = vld [vmem:[%s2915_s28 + $0x58] sm:$0xf] }
 0x46c   : > { %v3440_v18 = vpop.permute.xlu1 %1152 }
 0x46d   : > { %4644 = vst [vmem:[#allocation61_spill] sm:$0xff] %v3440_v18  ;;  %v3442_v63 = vpop.permute.xlu0 %1150  ;;  %v3487_v18 = vld [vmem:[%s2915_s28 + $0x50] sm:$0xff] }
 0x46e   : > { %4645 = vst [vmem:[#allocation62_spill] sm:$0xff] %v3442_v63 }
 0x47d   : > { %v1176_v47 = vpop.permute.xlu1 %1175 }
 0x47e   : > { %v1189_v5 = vmul.f32 %v3445_v3, %v1176_v47  ;;  %v1190_v4 = vmul.f32 %v3449_v2, %v1176_v47  ;;  %v1191_v7 = vmul.f32 %v3453_v6, %v1176_v47  ;;  %v1172_v27 = vpop.permute.xlu0 %1171  ;;  %v3473_v47 = vld [vmem:[%s2915_s28 + $0x40] sm:$0xf] }
 0x47f   : > { %v1186_v1 = vmul.f32 %v3457_v42, %v1172_v27  ;;  %v1187_v8 = vmul.f32 %v3461_v33, %v1172_v27  ;;  %v1188_v41 = vmul.f32 %v3465_v11, %v1172_v27 }
 0x480   : > { %v1216_v9 = vrot.slane %v1190_v4, 2  ;;  %v1218_v32 = vrot.slane %v1191_v7, 2  ;;  %v1215_v12 = vrot.slane %v1189_v5, 2  ;;  %v3478_v4 = vld [vmem:[%s2915_s28 + $0x30] sm:$0xff] }
 0x481   : > { %v1210_v36 = vrot.slane %v1186_v1, 2  ;;  %v1211_v26 = vrot.slane %v1187_v8, 2  ;;  %v1213_v19 = vrot.slane %v1188_v41, 2  ;;  %v1180_v29 = vpop.permute.xlu1 %1179 }
 0x482   : > { %v1193_v13 = vmul.f32 %v3469_v10, %v1180_v29  ;;  %v1194_v63 = vmul.f32 %v3473_v47, %v1180_v29  ;;  %v1192_v7 = vmul.f32 %v3478_v4, %v1180_v29  ;;  %v1184_v27 = vpop.permute.xlu0 %1183  ;;  %v1219_v1 = vsel %vm1041_vm4, %v1216_v9, %v1218_v32 }
 0x483   : > { %v1214_v49 = vsel %vm1041_vm4, %v1211_v26, %v1213_v19  ;;  %v1212_v5 = vsel %vm1041_vm4, %v1210_v36, %v1211_v26  ;;  %v1217_v8 = vsel %vm1041_vm4, %v1215_v12, %v1216_v9  ;;  %v1196_v19 = vmul.f32 %v3487_v18, %v1184_v27 }
 0x484   : > { %1232 = vrot.lane.b32.xlu0 %v1214_v49, %s2811_s29  ;;  %1230 = vrot.lane.b32.xlu1 %v1212_v5, %s2811_s29  ;;  %v1221_v41 = vrot.slane %v1193_v13, 2  ;;  %v1223_v24 = vrot.slane %v1194_v63, 2  ;;  %v1197_v29 = vmul.f32 %v3491_v15, %v1184_v27  ;;  %v1220_v14 = vrot.slane %v1192_v7, 2  ;;  %v3495_v49 = vld [vmem:[%s2915_s28 + $0x48] sm:$0xff]  ;;  %v3529_v5 = vld [vmem:[%s4572_s1 + $0x3] ss:$0 sm:$0xff] }
 0x485   : > { %v1195_v36 = vmul.f32 %v3495_v49, %v1184_v27  ;;  %v1226_v9 = vrot.slane %v1196_v19, 2  ;;  %v3511_v27 = vld [vmem:[%s4572_s1 + $0x1] ss:$0 sm:$0xff] }
 0x486   : > { %v1228_v32 = vrot.slane %v1197_v29, 2  ;;  %v1224_v63 = vsel %vm1041_vm4, %v1221_v41, %v1223_v24  ;;  %v1222_v12 = vsel %vm1041_vm4, %v1220_v14, %v1221_v41  ;;  %v3517_v24 = vld [vmem:[%s4572_s1] ss:$0 sm:$0xff]  ;;  %v3523_v14 = vld [vmem:[%s4572_s1 + $0x2] ss:$0 sm:$0xff] }
 0x487   : > { %v1225_v26 = vrot.slane %v1195_v36, 2 }
 0x488   : > { %1236 = vrot.lane.b32.xlu0 %v1219_v1, %s2811_s29  ;;  %1234 = vrot.lane.b32.xlu1 %v1217_v8, %s2811_s29  ;;  %v1229_v13 = vsel %vm1041_vm4, %v1226_v9, %v1228_v32  ;;  %v2827_v1 = vmov 14  }
 0x489   : > { %v1227_v7 = vsel %vm1041_vm4, %v1225_v26, %v1226_v9 }
 0x48c   : > { %1240 = vrot.lane.b32.xlu0 %v1224_v63, %s2811_s29  ;;  %1238 = vrot.lane.b32.xlu1 %v1222_v12, %s2811_s29 }
 0x490   : > { %1244 = vrot.lane.b32.xlu0 %v1229_v13, %s2811_s29  ;;  %1242 = vrot.lane.b32.xlu1 %v1227_v7, %s2811_s29 }
 0x494   : > { %1267 = vperm.xlu0 %2658, %v3511_v27   ;;  %1263 = vperm.xlu1 %2657, %v3517_v24  }
 0x498   : > { %1271 = vperm.xlu1 %2657, %v3523_v14   ;;  %2659 = vset.pattern.permute.xlu0 %v2827_v1 }
 0x49c   : > { %1275 = vperm.xlu1 %2657, %v3529_v5  }
 0x4a0   : > { %2660 = vset.pattern.permute.xlu1 %v2827_v1 }
 0x4f6   : > { %v3532_v8 = vpop.permute.xlu0 %1232  ;;  %v3534_v41 = vpop.permute.xlu1 %1230 }
 0x4f7   : > { %4647 = vst [vmem:[#allocation64_spill] sm:$0xff] %v3532_v8  ;;  %4648 = vst [vmem:[#allocation65_spill] sm:$0xff] %v3534_v41 }
 0x4fa   : > { %v3536_v19 = vpop.permute.xlu0 %1236  ;;  %v3538_v29 = vpop.permute.xlu1 %1234 }
 0x4fb   : > { %4649 = vst [vmem:[#allocation66_spill] sm:$0xff] %v3538_v29 }
 0x4fe   : > { %v3540_v36 = vpop.permute.xlu0 %1240  ;;  %v3542_v9 = vpop.permute.xlu1 %1238 }
 0x4ff   : > { %4650 = vst [vmem:[#allocation67_spill] sm:$0xff] %v3540_v36  ;;  %4651 = vst [vmem:[#allocation68_spill] sm:$0xff] %v3542_v9 }
 0x502   : > { %v3544_v32 = vpop.permute.xlu0 %1244  ;;  %v3546_v63 = vpop.permute.xlu1 %1242 }
 0x503   : > { %4652 = vst [vmem:[#allocation69_spill] sm:$0xff] %v3544_v32  ;;  %4653 = vst [vmem:[#allocation70_spill] sm:$0xff] %v3546_v63 }
 0x513   : > { %v1268_v26 = vpop.permute.xlu0 %1267  ;;  %v1264_v12 = vpop.permute.xlu1 %1263 }
 0x514   : > { %v1281_v13 = vmul.f32 %v3445_v3, %v1268_v26  ;;  %v1282_v7 = vmul.f32 %v3449_v2, %v1268_v26  ;;  %v1283_v1 = vmul.f32 %v3453_v6, %v1268_v26  ;;  %v1278_v8 = vmul.f32 %v3457_v42, %v1264_v12 }
 0x515   : > { %v1279_v41 = vmul.f32 %v3461_v33, %v1264_v12  ;;  %v1280_v29 = vmul.f32 %v3465_v11, %v1264_v12 }
 0x516   : > { %v1308_v31 = vrot.slane %v1282_v7, 2  ;;  %v1302_v9 = vrot.slane %v1278_v8, 2  ;;  %v1310_v58 = vrot.slane %v1283_v1, 2  ;;  %v1307_v22 = vrot.slane %v1281_v13, 2 }
 0x517   : > { %v1303_v40 = vrot.slane %v1279_v41, 2  ;;  %v1305_v32 = vrot.slane %v1280_v29, 2  ;;  %v1272_v63 = vpop.permute.xlu1 %1271 }
 0x518   : > { %v1285_v62 = vmul.f32 %v3469_v10, %v1272_v63  ;;  %v1286_v20 = vmul.f32 %v3473_v47, %v1272_v63  ;;  %v1284_v26 = vmul.f32 %v3478_v4, %v1272_v63  ;;  %v1311_v8 = vsel %vm1041_vm4, %v1308_v31, %v1310_v58 }
 0x519   : > { %v1306_v53 = vsel %vm1041_vm4, %v1303_v40, %v1305_v32  ;;  %v1304_v60 = vsel %vm1041_vm4, %v1302_v9, %v1303_v40  ;;  %v1309_v29 = vsel %vm1041_vm4, %v1307_v22, %v1308_v31  ;;  %v2828_v31 = vmov 15  }
 0x51a   : > { %1324 = vrot.lane.b32.xlu1 %v1306_v53, %s2817_s24  ;;  %1322 = vrot.lane.b32.xlu0 %v1304_v60, %s2817_s24  ;;  %v1313_v12 = vrot.slane %v1285_v62, 2  ;;  %v1315_v13 = vrot.slane %v1286_v20, 2  ;;  %v1312_v32 = vrot.slane %v1284_v26, 2 }
 0x51b   : > { %v1276_v41 = vpop.permute.xlu1 %1275 }
 0x51c   : > { %v1288_v7 = vmul.f32 %v3487_v18, %v1276_v41  ;;  %v1289_v1 = vmul.f32 %v3491_v15, %v1276_v41  ;;  %v1287_v63 = vmul.f32 %v3495_v49, %v1276_v41  ;;  %v1316_v58 = vsel %vm1041_vm4, %v1313_v12, %v1315_v13 }
 0x51d   : > { %v1314_v62 = vsel %vm1041_vm4, %v1312_v32, %v1313_v12 }
 0x51e   : > { %1328 = vrot.lane.b32.xlu1 %v1311_v8, %s2817_s24  ;;  %1326 = vrot.lane.b32.xlu0 %v1309_v29, %s2817_s24  ;;  %v1318_v53 = vrot.slane %v1288_v7, 2  ;;  %v1320_v60 = vrot.slane %v1289_v1, 2  ;;  %v1317_v40 = vrot.slane %v1287_v63, 2 }
 0x520   : > { %v1321_v20 = vsel %vm1041_vm4, %v1318_v53, %v1320_v60  ;;  %v1319_v22 = vsel %vm1041_vm4, %v1317_v40, %v1318_v53 }
 0x522   : > { %1332 = vrot.lane.b32.xlu1 %v1316_v58, %s2817_s24  ;;  %1330 = vrot.lane.b32.xlu0 %v1314_v62, %s2817_s24 }
 0x526   : > { %1336 = vrot.lane.b32.xlu1 %v1321_v20, %s2817_s24  ;;  %1334 = vrot.lane.b32.xlu0 %v1319_v22, %s2817_s24 }
 0x52a   : > { %1359 = vperm.xlu1 %2660, %v3511_v27   ;;  %1355 = vperm.xlu0 %2659, %v3517_v24  }
 0x52e   : > { %1363 = vperm.xlu1 %2660, %v3523_v14   ;;  %1367 = vperm.xlu0 %2659, %v3529_v5  }
 0x532   : > { %2661 = vset.pattern.permute.xlu1 %v2828_v31  ;;  %2662 = vset.pattern.permute.xlu0 %v2828_v31 }
 0x58c   : > { %v3580_v9 = vpop.permute.xlu1 %1324  ;;  %v3582_v26 = vpop.permute.xlu0 %1322 }
 0x58d   : > { %4654 = vst [vmem:[#allocation71_spill] sm:$0xff] %v3580_v9  ;;  %4655 = vst [vmem:[#allocation72_spill] sm:$0xff] %v3582_v26 }
 0x590   : > { %v3584_v8 = vpop.permute.xlu1 %1328  ;;  %v3586_v41 = vpop.permute.xlu0 %1326 }
 0x591   : > { %4656 = vst [vmem:[#allocation73_spill] sm:$0xff] %v3586_v41 }
 0x594   : > { %v3588_v29 = vpop.permute.xlu1 %1332  ;;  %v3590_v12 = vpop.permute.xlu0 %1330 }
 0x595   : > { %4657 = vst [vmem:[#allocation74_spill] sm:$0xff] %v3588_v29  ;;  %4658 = vst [vmem:[#allocation75_spill] sm:$0xff] %v3590_v12 }
 0x598   : > { %v3592_v13 = vpop.permute.xlu1 %1336  ;;  %v3594_v7 = vpop.permute.xlu0 %1334 }
 0x599   : > { %4659 = vst [vmem:[#allocation76_spill] sm:$0xff] %v3592_v13  ;;  %4660 = vst [vmem:[#allocation77_spill] sm:$0xff] %v3594_v7 }
 0x5a9   : > { %v1360_v1 = vpop.permute.xlu1 %1359  ;;  %v1356_v60 = vpop.permute.xlu0 %1355 }
 0x5aa   : > { %v1373_v32 = vmul.f32 %v3445_v3, %v1360_v1  ;;  %v1374_v63 = vmul.f32 %v3449_v2, %v1360_v1  ;;  %v1375_v53 = vmul.f32 %v3453_v6, %v1360_v1  ;;  %v1370_v58 = vmul.f32 %v3457_v42, %v1356_v60 }
 0x5ab   : > { %v1371_v40 = vmul.f32 %v3461_v33, %v1356_v60  ;;  %v1372_v62 = vmul.f32 %v3465_v11, %v1356_v60 }
 0x5ac   : > { %v1400_v20 = vrot.slane %v1374_v63, 2  ;;  %v1402_v22 = vrot.slane %v1375_v53, 2  ;;  %v1394_v31 = vrot.slane %v1370_v58, 2  ;;  %v1399_v13 = vrot.slane %v1373_v32, 2 }
 0x5ad   : > { %v1395_v9 = vrot.slane %v1371_v40, 2  ;;  %v1397_v26 = vrot.slane %v1372_v62, 2  ;;  %v1364_v7 = vpop.permute.xlu1 %1363  ;;  %v1368_v51 = vpop.permute.xlu0 %1367 }
 0x5ae   : > { %v1377_v12 = vmul.f32 %v3469_v10, %v1364_v7  ;;  %v1378_v41 = vmul.f32 %v3473_v47, %v1364_v7  ;;  %v1376_v46 = vmul.f32 %v3478_v4, %v1364_v7  ;;  %v1403_v63 = vsel %vm1041_vm4, %v1400_v20, %v1402_v22 }
 0x5af   : > { %v1398_v1 = vsel %vm1041_vm4, %v1395_v9, %v1397_v26  ;;  %v1396_v60 = vsel %vm1041_vm4, %v1394_v31, %v1395_v9  ;;  %v1401_v53 = vsel %vm1041_vm4, %v1399_v13, %v1400_v20  ;;  %v1380_v40 = vmul.f32 %v3487_v18, %v1368_v51 }
 0x5b0   : > { %1416 = vrot.lane.b32.xlu0 %v1398_v1, %s2818_s25  ;;  %1414 = vrot.lane.b32.xlu1 %v1396_v60, %s2818_s25  ;;  %v1405_v32 = vrot.slane %v1377_v12, 2  ;;  %v1407_v58 = vrot.slane %v1378_v41, 2  ;;  %v1381_v62 = vmul.f32 %v3491_v15, %v1368_v51  ;;  %v1404_v26 = vrot.slane %v1376_v46, 2 }
 0x5b1   : > { %v1379_v7 = vmul.f32 %v3495_v49, %v1368_v51  ;;  %v1410_v9 = vrot.slane %v1380_v40, 2  ;;  %v2829_v51 = vmov 16   ;;  %v2830_v13 = vmov 17  }
 0x5b2   : > { %v1412_v31 = vrot.slane %v1381_v62, 2  ;;  %v1408_v1 = vsel %vm1041_vm4, %v1405_v32, %v1407_v58  ;;  %v1406_v41 = vsel %vm1041_vm4, %v1404_v26, %v1405_v32 }
 0x5b3   : > { %v1409_v22 = vrot.slane %v1379_v7, 2 }
 0x5b4   : > { %1420 = vrot.lane.b32.xlu0 %v1403_v63, %s2818_s25  ;;  %1418 = vrot.lane.b32.xlu1 %v1401_v53, %s2818_s25  ;;  %v1413_v12 = vsel %vm1041_vm4, %v1410_v9, %v1412_v31 }
 0x5b5   : > { %v1411_v46 = vsel %vm1041_vm4, %v1409_v22, %v1410_v9 }
 0x5b8   : > { %1424 = vrot.lane.b32.xlu0 %v1408_v1, %s2818_s25  ;;  %1422 = vrot.lane.b32.xlu1 %v1406_v41, %s2818_s25 }
 0x5bc   : > { %1428 = vrot.lane.b32.xlu0 %v1413_v12, %s2818_s25  ;;  %1426 = vrot.lane.b32.xlu1 %v1411_v46, %s2818_s25 }
 0x5c0   : > { %1451 = vperm.xlu0 %2662, %v3511_v27   ;;  %1447 = vperm.xlu1 %2661, %v3517_v24  }
 0x5c4   : > { %2663 = vset.pattern.permute.xlu0 %v2829_v51  ;;  %1455 = vperm.xlu1 %2661, %v3523_v14  }
 0x5c5   : > { %1524 = vperm.xlu0 %2663, %v3517_v24  }
 0x5c8   : > { %1459 = vperm.xlu1 %2661, %v3529_v5  }
 0x5c9   : > { %1536 = vperm.xlu0 %2663, %v3529_v5  }
 0x5cc   : > { %2664 = vset.pattern.permute.xlu1 %v2829_v51 }
 0x5cd   : > { %1528 = vperm.xlu1 %2664, %v3511_v27   ;;  %2666 = vset.pattern.permute.xlu0 %v2830_v13 }
 0x5d1   : > { %1532 = vperm.xlu1 %2664, %v3523_v14  }
 0x5d5   : > { %2665 = vset.pattern.permute.xlu1 %v2830_v13 }
 0x622   : > { %v3632_v20 = vpop.permute.xlu0 %1416  ;;  %v3634_v60 = vpop.permute.xlu1 %1414 }
 0x623   : > { %4661 = vst [vmem:[#allocation78_spill] sm:$0xff] %v3632_v20  ;;  %4662 = vst [vmem:[#allocation79_spill] sm:$0xff] %v3634_v60 }
 0x626   : > { %v3636_v63 = vpop.permute.xlu0 %1420  ;;  %v3638_v53 = vpop.permute.xlu1 %1418 }
 0x627   : > { %4663 = vst [vmem:[#allocation80_spill] sm:$0xff] %v3636_v63  ;;  %4664 = vst [vmem:[#allocation81_spill] sm:$0xff] %v3638_v53 }
 0x62a   : > { %v3640_v32 = vpop.permute.xlu0 %1424  ;;  %v3642_v58 = vpop.permute.xlu1 %1422 }
 0x62b   : > { %4665 = vst [vmem:[#allocation82_spill] sm:$0xff] %v3640_v32  ;;  %4666 = vst [vmem:[#allocation83_spill] sm:$0xff] %v3642_v58 }
 0x62e   : > { %v3644_v40 = vpop.permute.xlu0 %1428  ;;  %v3646_v62 = vpop.permute.xlu1 %1426 }
 0x62f   : > { %4667 = vst [vmem:[#allocation84_spill] sm:$0xff] %v3644_v40  ;;  %4668 = vst [vmem:[#allocation85_spill] sm:$0xff] %v3646_v62 }
 0x63f   : > { %v3648_v26 = vpop.permute.xlu0 %1451  ;;  %v3650_v7 = vpop.permute.xlu1 %1447 }
 0x640   : > { %4669 = vst [vmem:[#allocation86_spill] sm:$0xff] %v3650_v7 }
 0x643   : > { %v3652_v9 = vpop.permute.xlu1 %1455 }
 0x644   : > { %v1525_v31 = vpop.permute.xlu0 %1524 }
 0x645   : > { %v1539_v1 = vmul.f32 %v3457_v42, %v1525_v31  ;;  %v1540_v22 = vmul.f32 %v3461_v33, %v1525_v31  ;;  %v1541_v41 = vmul.f32 %v3465_v11, %v1525_v31 }
 0x647   : > { %v1563_v12 = vrot.slane %v1539_v1, 3  ;;  %v1564_v46 = vrot.slane %v1540_v22, 3  ;;  %v1566_v51 = vrot.slane %v1541_v41, 3  ;;  %v3657_v13 = vpop.permute.xlu1 %1459 }
 0x648   : > { %4670 = vst [vmem:[#allocation87_spill] sm:$0xff] %v3657_v13  ;;  %v1537_v7 = vpop.permute.xlu0 %1536 }
 0x649   : > { %v1567_v62 = vsel %vm1486_vm5, %v1564_v46, %v1566_v51  ;;  %v1565_v20 = vsel %vm1486_vm5, %v1563_v12, %v1564_v46  ;;  %v1549_v58 = vmul.f32 %v3487_v18, %v1537_v7  ;;  %v1550_v51 = vmul.f32 %v3491_v15, %v1537_v7 }
 0x64a   : > { %1585 = vrot.lane.b32.xlu0 %v1567_v62, %s2816_s20  ;;  %1583 = vrot.lane.b32.xlu1 %v1565_v20, %s2816_s20  ;;  %v1548_v44 = vmul.f32 %v3495_v49, %v1537_v7 }
 0x64b   : > { %v1579_v32 = vrot.slane %v1549_v58, 3  ;;  %v1581_v29 = vrot.slane %v1550_v51, 3 }
 0x64c   : > { %v1529_v60 = vpop.permute.xlu1 %1528 }
 0x64d   : > { %v1542_v40 = vmul.f32 %v3445_v3, %v1529_v60  ;;  %v1543_v31 = vmul.f32 %v3449_v2, %v1529_v60  ;;  %v1544_v1 = vmul.f32 %v3453_v6, %v1529_v60 }
 0x64f   : > { %v1568_v22 = vrot.slane %v1542_v40, 3  ;;  %v1569_v41 = vrot.slane %v1543_v31, 3  ;;  %v1571_v13 = vrot.slane %v1544_v1, 3 }
 0x650   : > { %v1533_v12 = vpop.permute.xlu1 %1532 }
 0x651   : > { %v1545_v62 = vmul.f32 %v3478_v4, %v1533_v12  ;;  %v1546_v20 = vmul.f32 %v3469_v10, %v1533_v12  ;;  %v1547_v46 = vmul.f32 %v3473_v47, %v1533_v12  ;;  %v1572_v53 = vsel %vm1486_vm5, %v1569_v41, %v1571_v13 }
 0x652   : > { %1589 = vrot.lane.b32.xlu0 %v1572_v53, %s2816_s20  ;;  %v1570_v60 = vsel %vm1486_vm5, %v1568_v22, %v1569_v41  ;;  %v1578_v12 = vrot.slane %v1548_v44, 3  ;;  %v1582_v53 = vsel %vm1486_vm5, %v1579_v32, %v1581_v29  ;;  %v2831_v44 = vmov 18  }
 0x653   : > { %v1573_v40 = vrot.slane %v1545_v62, 3  ;;  %v1574_v31 = vrot.slane %v1546_v20, 3  ;;  %v1576_v1 = vrot.slane %v1547_v46, 3  ;;  %1587 = vrot.lane.b32.xlu1 %v1570_v60, %s2816_s20 }
 0x654   : > { %v1580_v7 = vsel %vm1486_vm5, %v1578_v12, %v1579_v32 }
 0x655   : > { %v1577_v63 = vsel %vm1486_vm5, %v1574_v31, %v1576_v1  ;;  %v1575_v36 = vsel %vm1486_vm5, %v1573_v40, %v1574_v31 }
 0x656   : > { %1593 = vrot.lane.b32.xlu0 %v1577_v63, %s2816_s20 }
 0x657   : > { %1591 = vrot.lane.b32.xlu1 %v1575_v36, %s2816_s20 }
 0x65a   : > { %1597 = vrot.lane.b32.xlu0 %v1582_v53, %s2816_s20 }
 0x65b   : > { %1595 = vrot.lane.b32.xlu1 %v1580_v7, %s2816_s20 }
 0x65e   : > { %1620 = vperm.xlu0 %2666, %v3511_v27  }
 0x65f   : > { %1616 = vperm.xlu1 %2665, %v3517_v24  }
 0x662   : > { %2667 = vset.pattern.permute.xlu0 %v2831_v44 }
 0x663   : > { %1624 = vperm.xlu1 %2665, %v3523_v14  }
 0x667   : > { %1628 = vperm.xlu1 %2665, %v3529_v5  }
 0x66b   : > { %2668 = vset.pattern.permute.xlu1 %v2831_v44 }
 0x6bc   : > { %v3688_v36 = vpop.permute.xlu0 %1585  ;;  %v3690_v29 = vpop.permute.xlu1 %1583 }
 0x6bd   : > { %4671 = vst [vmem:[#allocation88_spill] sm:$0xff] %v3688_v36  ;;  %4672 = vst [vmem:[#allocation89_spill] sm:$0xff] %v3690_v29 }
 0x6c4   : > { %v3692_v63 = vpop.permute.xlu0 %1589 }
 0x6c5   : > { %v3694_v32 = vpop.permute.xlu1 %1587 }
 0x6c6   : > { %4673 = vst [vmem:[#allocation90_spill] sm:$0xff] %v3694_v32 }
 0x6c8   : > { %v3696_v58 = vpop.permute.xlu0 %1593 }
 0x6c9   : > { %v3698_v13 = vpop.permute.xlu1 %1591 }
 0x6ca   : > { %4674 = vst [vmem:[#allocation91_spill] sm:$0xff] %v3698_v13 }
 0x6cc   : > { %v3700_v22 = vpop.permute.xlu0 %1597 }
 0x6cd   : > { %4675 = vst [vmem:[#allocation92_spill] sm:$0xff] %v3700_v22  ;;  %v3702_v41 = vpop.permute.xlu1 %1595 }
 0x6ce   : > { %4676 = vst [vmem:[#allocation93_spill] sm:$0xff] %v3702_v41 }
 0x6dd   : > { %v1621_v51 = vpop.permute.xlu0 %1620 }
 0x6de   : > { %v1617_v62 = vpop.permute.xlu1 %1616  ;;  %v1634_v20 = vmul.f32 %v3445_v3, %v1621_v51  ;;  %v1635_v46 = vmul.f32 %v3449_v2, %v1621_v51  ;;  %v1636_v60 = vmul.f32 %v3453_v6, %v1621_v51 }
 0x6df   : > { %v1631_v40 = vmul.f32 %v3457_v42, %v1617_v62  ;;  %v1632_v31 = vmul.f32 %v3461_v33, %v1617_v62  ;;  %v1633_v1 = vmul.f32 %v3465_v11, %v1617_v62 }
 0x6e0   : > { %v1661_v12 = vrot.slane %v1635_v46, 3  ;;  %v1663_v36 = vrot.slane %v1636_v60, 3  ;;  %v1660_v29 = vrot.slane %v1634_v20, 3 }
 0x6e1   : > { %v1655_v53 = vrot.slane %v1631_v40, 3  ;;  %v1656_v7 = vrot.slane %v1632_v31, 3  ;;  %v1658_v44 = vrot.slane %v1633_v1, 3 }
 0x6e2   : > { %v1625_v41 = vpop.permute.xlu1 %1624  ;;  %v1664_v62 = vsel %vm1486_vm5, %v1661_v12, %v1663_v36  ;;  %v1662_v60 = vsel %vm1486_vm5, %v1660_v29, %v1661_v12  ;;  %v2832_v12 = vmov 19  }
 0x6e3   : > { %v1638_v22 = vmul.f32 %v3469_v10, %v1625_v41  ;;  %v1639_v13 = vmul.f32 %v3473_v47, %v1625_v41  ;;  %v1659_v32 = vsel %vm1486_vm5, %v1656_v7, %v1658_v44  ;;  %v1637_v51 = vmul.f32 %v3478_v4, %v1625_v41 }
 0x6e4   : > { %1677 = vrot.lane.b32.xlu1 %v1659_v32, %s2811_s29  ;;  %v1657_v33 = vsel %vm1486_vm5, %v1655_v53, %v1656_v7  ;;  %v3738_v7 = vmul.f32 %v3449_v2, %v3182_v25 }
 0x6e5   : > { %1675 = vrot.lane.b32.xlu0 %v1657_v33, %s2811_s29  ;;  %v1666_v20 = vrot.slane %v1638_v22, 3  ;;  %v1668_v40 = vrot.slane %v1639_v13, 3  ;;  %v1665_v44 = vrot.slane %v1637_v51, 3  ;;  %v577_v51 = vmul.f32 %v3453_v6, %v3182_v25 }
 0x6e6   : > { %v1629_v46 = vpop.permute.xlu1 %1628 }
 0x6e7   : > { %v1641_v31 = vmul.f32 %v3487_v18, %v1629_v46  ;;  %v1642_v1 = vmul.f32 %v3491_v15, %v1629_v46  ;;  %v1640_v41 = vmul.f32 %v3495_v49, %v1629_v46  ;;  %v1669_v36 = vsel %vm1486_vm5, %v1666_v20, %v1668_v40 }
 0x6e8   : > { %1681 = vrot.lane.b32.xlu1 %v1664_v62, %s2811_s29  ;;  %v1667_v29 = vsel %vm1486_vm5, %v1665_v44, %v1666_v20  ;;  %v287_v62 = vmul.f32 %v3449_v2, %v3044_v34  ;;  %v605_v20 = vrot.slane %v577_v51, 1  ;;  %v3748_v40 = vmul.f32 %v3469_v10, %v3188_v28 }
 0x6e9   : > { %1679 = vrot.lane.b32.xlu0 %v1662_v60, %s2811_s29  ;;  %v1671_v32 = vrot.slane %v1641_v31, 3  ;;  %v1673_v33 = vrot.slane %v1642_v1, 3  ;;  %v1670_v53 = vrot.slane %v1640_v41, 3  ;;  %v603_v60 = vrot.slane %v3738_v7, 1 }
 0x6ea   : > { %v359_v46 = vadd.f32 %v3124_v43, %v287_v62  ;;  %v580_v31 = vmul.f32 %v3473_v47, %v3188_v28  ;;  %v289_v1 = vmul.f32 %v3469_v10, %v3046_v35  ;;  %v608_v43 = vrot.slane %v3748_v40, 1 }
 0x6eb   : > { %v1674_v13 = vsel %vm1486_vm5, %v1671_v32, %v1673_v33  ;;  %v1672_v22 = vsel %vm1486_vm5, %v1670_v53, %v1671_v32  ;;  %v3778_v62 = vmul.f32 %v3469_v10, %v3392_v39 }
 0x6ec   : > { %1685 = vrot.lane.b32.xlu1 %v1669_v36, %s2811_s29  ;;  %v423_v44 = vadd.f32 %v3142_v52, %v359_v46  ;;  %v361_v41 = vadd.f32 %v3128_v45, %v289_v1  ;;  %v610_v33 = vrot.slane %v580_v31, 1  ;;  %v606_v36 = vsel %vm596_vm3, %v603_v60, %v605_v20 }
 0x6ed   : > { %1683 = vrot.lane.b32.xlu0 %v1667_v29, %s2811_s29  ;;  %v1022_v45 = vmul.f32 %v3453_v6, %v3388_v56  ;;  %v1025_v46 = vmul.f32 %v3473_v47, %v3392_v39 }
 0x6ee   : > { %v487_v32 = vadd.f32 %v3156_v59, %v423_v44  ;;  %v425_v53 = vadd.f32 %v3146_v54, %v361_v41 }
 0x6ef   : > { %v1050_v51 = vrot.slane %v1022_v45, 2  ;;  %v3806_v45 = vmul.f32 %v3469_v10, %v3652_v9 }
 0x6f0   : > { %1689 = vrot.lane.b32.xlu1 %v1674_v13, %s2811_s29  ;;  %v551_v29 = vadd.f32 %v3174_v21, %v487_v32  ;;  %v3765_v13 = vmul.f32 %v3449_v2, %v3388_v56  ;;  %v489_v52 = vadd.f32 %v3160_v61, %v425_v53 }
 0x6f1   : > { %1687 = vrot.lane.b32.xlu0 %v1672_v22, %s2811_s29  ;;  %v611_v22 = vsel %vm596_vm3, %v608_v43, %v610_v33  ;;  %v3793_v33 = vmul.f32 %v3449_v2, %v3648_v26 }
 0x6f2   : > { %v628_v59 = vadd.f32 %v606_v36, %v551_v29  ;;  %v1048_v21 = vrot.slane %v3765_v13, 2 }
 0x6f4   : > { %1712 = vperm.xlu1 %2668, %v3511_v27   ;;  %v720_v54 = vadd.f32 %v3228_v57, %v628_v59  ;;  %v1055_v57 = vrot.slane %v1025_v46, 2  ;;  %v1051_v44 = vsel %vm1041_vm4, %v1048_v21, %v1050_v51  ;;  %v4677_v51 = vld [vmem:[#allocation67_spill] sm:$0xff] }
 0x6f5   : > { %1708 = vperm.xlu0 %2667, %v3517_v24  }
 0x6f6   : > { %v812_v20 = vadd.f32 %v3276_v38, %v720_v54 }
 0x6f8   : > { %1716 = vperm.xlu1 %2668, %v3523_v14   ;;  %v904_v1 = vadd.f32 %v3324_v30, %v812_v20 }
 0x6f9   : > { %1720 = vperm.xlu0 %2667, %v3529_v5  }
 0x6fa   : > { %v996_v32 = vadd.f32 %v3376_v50, %v904_v1  ;;  %v1493_v50 = vrot.slane %v3793_v33, 3  ;;  %v4679_v1 = vld [vmem:[#allocation74_spill] sm:$0xff] }
 0x6fb   : > { %v4706_v33 = vld [vmem:[#allocation90_spill] sm:$0xff] }
 0x6fc   : > { %2669 = vset.pattern.permute.xlu1 %v2832_v12  ;;  %v1073_v30 = vadd.f32 %v1051_v44, %v996_v32 }
 0x6fd   : > { %2670 = vset.pattern.permute.xlu0 %v2832_v12  ;;  %v553_v12 = vadd.f32 %v3178_v23, %v489_v52  ;;  %v1053_v23 = vrot.slane %v3778_v62, 2  ;;  %v1470_v52 = vmul.f32 %v3473_v47, %v3652_v9 }
 0x6ff   : > { %v630_v61 = vadd.f32 %v611_v22, %v553_v12  ;;  %v1056_v36 = vsel %vm1041_vm4, %v1053_v23, %v1055_v57 }
 0x701   : > { %v722_v31 = vadd.f32 %v3232_v17, %v630_v61  ;;  %v1467_v17 = vmul.f32 %v3453_v6, %v3648_v26  ;;  %v4678_v61 = vld [vmem:[#allocation80_spill] sm:$0xff] }
 0x703   : > { %v814_v41 = vadd.f32 %v3280_v0, %v722_v31  ;;  %v1165_v0 = vadd.f32 %v3432_v48, %v1073_v30  ;;  %v1495_v29 = vrot.slane %v1467_v17, 3  ;;  %v1500_v48 = vrot.slane %v1470_v52, 3 }
 0x705   : > { %v906_v38 = vadd.f32 %v3328_v37, %v814_v41  ;;  %v1257_v59 = vadd.f32 %v3536_v19, %v1165_v0  ;;  %v1496_v54 = vsel %vm1486_vm5, %v1493_v50, %v1495_v29 }
 0x707   : > { %v998_v53 = vadd.f32 %v3380_v55, %v906_v38  ;;  %v1349_v12 = vadd.f32 %v3584_v8, %v1257_v59  ;;  %v1498_v55 = vrot.slane %v3806_v45, 3  ;;  %v4680_v8 = vld [vmem:[#allocation82_spill] sm:$0xff] }
 0x709   : > { %v1075_v37 = vadd.f32 %v1056_v36, %v998_v53  ;;  %v1441_v20 = vadd.f32 %v4678_v61, %v1349_v12 }
 0x70b   : > { %v1167_v22 = vadd.f32 %v3436_v16, %v1075_v37  ;;  %v1518_v19 = vadd.f32 %v1496_v54, %v1441_v20  ;;  %v1501_v16 = vsel %vm1486_vm5, %v1498_v55, %v1500_v48 }
 0x70d   : > { %v1259_v46 = vadd.f32 %v4677_v51, %v1167_v22  ;;  %v1610_v41 = vadd.f32 %v3692_v63, %v1518_v19  ;;  %v4681_v51 = vld [vmem:[#allocation63_spill] sm:$0xff] }
 0x70f   : > { %v1351_v57 = vadd.f32 %v4679_v1, %v1259_v46 }
 0x711   : > { %v1443_v44 = vadd.f32 %v4680_v8, %v1351_v57 }
 0x713   : > { %v1520_v17 = vadd.f32 %v1501_v16, %v1443_v44 }
 0x715   : > { %v1612_v30 = vadd.f32 %v3696_v58, %v1520_v17 }
 0x756   : > { %v3819_v31 = vpop.permute.xlu1 %1677 }
 0x757   : > { %v3830_v36 = vpop.permute.xlu0 %1675 }
 0x75a   : > { %v1682_v32 = vpop.permute.xlu1 %1681 }
 0x75b   : > { %v3827_v38 = vadd.f32 %v1682_v32, %v1610_v41  ;;  %v3834_v29 = vpop.permute.xlu0 %1679 }
 0x75e   : > { %v1686_v53 = vpop.permute.xlu1 %1685 }
 0x75f   : > { %v3832_v0 = vadd.f32 %v1686_v53, %v1612_v30  ;;  %v3836_v52 = vpop.permute.xlu0 %1683 }
 0x762   : > { %v3838_v37 = vpop.permute.xlu1 %1689 }
 0x763   : > { %v3840_v59 = vpop.permute.xlu0 %1687 }
 0x773   : > { %v1713_v63 = vpop.permute.xlu1 %1712 }
 0x774   : > { %v1726_v22 = vmul.f32 %v3445_v3, %v1713_v63  ;;  %v1727_v12 = vmul.f32 %v3449_v2, %v1713_v63  ;;  %v1728_v58 = vmul.f32 %v3453_v6, %v1713_v63  ;;  %v1709_v48 = vpop.permute.xlu0 %1708 }
 0x775   : > { %v1723_v54 = vmul.f32 %v3457_v42, %v1709_v48  ;;  %v1724_v46 = vmul.f32 %v4681_v51, %v1709_v48  ;;  %v1725_v61 = vmul.f32 %v3465_v11, %v1709_v48 }
 0x776   : > { %v1753_v20 = vrot.slane %v1727_v12, 3  ;;  %v1755_v1 = vrot.slane %v1728_v58, 3  ;;  %v1752_v44 = vrot.slane %v1726_v22, 3 }
 0x777   : > { %v1747_v57 = vrot.slane %v1723_v54, 3  ;;  %v1748_v19 = vrot.slane %v1724_v46, 3  ;;  %v1750_v16 = vrot.slane %v1725_v61, 3  ;;  %v1717_v8 = vpop.permute.xlu1 %1716 }
 0x778   : > { %v1730_v41 = vmul.f32 %v3469_v10, %v1717_v8  ;;  %v1731_v32 = vmul.f32 %v3473_v47, %v1717_v8  ;;  %v1729_v30 = vmul.f32 %v3478_v4, %v1717_v8  ;;  %v1721_v53 = vpop.permute.xlu0 %1720  ;;  %v1756_v12 = vsel %vm1486_vm5, %v1753_v20, %v1755_v1 }
 0x779   : > { %v1751_v17 = vsel %vm1486_vm5, %v1748_v19, %v1750_v16  ;;  %v1749_v63 = vsel %vm1486_vm5, %v1747_v57, %v1748_v19  ;;  %v1754_v58 = vsel %vm1486_vm5, %v1752_v44, %v1753_v20  ;;  %v1733_v54 = vmul.f32 %v3487_v18, %v1721_v53 }
 0x77a   : > { %1769 = vrot.lane.b32.xlu0 %v1751_v17, %s2817_s24  ;;  %1767 = vrot.lane.b32.xlu1 %v1749_v63, %s2817_s24  ;;  %v1758_v22 = vrot.slane %v1730_v41, 3  ;;  %v1760_v48 = vrot.slane %v1731_v32, 3  ;;  %v1734_v47 = vmul.f32 %v3491_v15, %v1721_v53  ;;  %v1757_v46 = vrot.slane %v1729_v30, 3  ;;  %v4682_v41 = vld [vmem:[#allocation7_spill] sm:$0xff]  ;;  %v4683_v63 = vld [vmem:[#allocation13_spill] sm:$0xff] }
 0x77b   : > { %v1732_v61 = vmul.f32 %v3495_v49, %v1721_v53  ;;  %v1763_v57 = vrot.slane %v1733_v54, 3  ;;  %v2833_v49 = vmov 21   ;;  %v575_v8 = vmul.f32 %v3445_v3, %v3182_v25  ;;  %v4686_v25 = vld [vmem:[#allocation14_spill] sm:$0xff] }
 0x77c   : > { %v1765_v19 = vrot.slane %v1734_v47, 3  ;;  %v1761_v16 = vsel %vm1486_vm5, %v1758_v22, %v1760_v48  ;;  %v1759_v20 = vsel %vm1486_vm5, %v1757_v46, %v1758_v22  ;;  %v286_v44 = vmul.f32 %v3445_v3, %v3044_v34  ;;  %v4685_v48 = vld [vmem:[#allocation19_spill] sm:$0xff] }
 0x77d   : > { %v1762_v1 = vrot.slane %v1732_v61, 3  ;;  %v602_v17 = vrot.slane %v575_v8, 1  ;;  %v578_v30 = vmul.f32 %v3478_v4, %v3188_v28  ;;  %v288_v53 = vmul.f32 %v3478_v4, %v3046_v35  ;;  %v4687_v61 = vld [vmem:[#allocation25_spill] sm:$0xff] }
 0x77e   : > { %1773 = vrot.lane.b32.xlu0 %v1756_v12, %s2817_s24  ;;  %1771 = vrot.lane.b32.xlu1 %v1754_v58, %s2817_s24  ;;  %v1766_v15 = vsel %vm1486_vm5, %v1763_v57, %v1765_v19  ;;  %v358_v32 = vadd.f32 %v4682_v41, %v286_v44  ;;  %v4684_v58 = vld [vmem:[#allocation8_spill] sm:$0xff]  ;;  %v1020_v28 = vmul.f32 %v3445_v3, %v3388_v56  ;;  %v4691_v44 = vld [vmem:[#allocation39_spill] sm:$0xff] }
 0x77f   : > { %v1764_v18 = vsel %vm1486_vm5, %v1762_v1, %v1763_v57  ;;  %v360_v22 = vadd.f32 %v4684_v58, %v288_v53  ;;  %v607_v47 = vrot.slane %v578_v30, 1  ;;  %v604_v34 = vsel %vm596_vm3, %v602_v17, %v603_v60  ;;  %v4688_v19 = vld [vmem:[#allocation20_spill] sm:$0xff]  ;;  %v4693_v17 = vld [vmem:[#allocation45_spill] sm:$0xff] }
 0x780   : > { %v422_v12 = vadd.f32 %v4683_v63, %v358_v32  ;;  %v1023_v60 = vmul.f32 %v3478_v4, %v3392_v39  ;;  %v4692_v32 = vld [vmem:[#allocation34_spill] sm:$0xff] }
 0x781   : > { %v424_v46 = vadd.f32 %v4686_v25, %v360_v22  ;;  %v609_v1 = vsel %vm596_vm3, %v607_v47, %v608_v43  ;;  %v4694_v43 = vld [vmem:[#allocation40_spill] sm:$0xff]  ;;  %v1465_v22 = vmul.f32 %v3445_v3, %v3648_v26  ;;  %v4696_v39 = vld [vmem:[#allocation46_spill] sm:$0xff] }
 0x782   : > { %1777 = vrot.lane.b32.xlu0 %v1761_v16, %s2817_s24  ;;  %1775 = vrot.lane.b32.xlu1 %v1759_v20, %s2817_s24  ;;  %v486_v54 = vadd.f32 %v4685_v48, %v422_v12  ;;  %v4689_v20 = vld [vmem:[#allocation26_spill] sm:$0xff]  ;;  %v1052_v53 = vrot.slane %v1023_v60, 2  ;;  %v4695_v12 = vld [vmem:[#allocation51_spill] sm:$0xff] }
 0x783   : > { %v488_v35 = vadd.f32 %v4688_v19, %v424_v46  ;;  %v4698_v46 = vld [vmem:[#allocation59_spill] sm:$0xff] }
 0x784   : > { %v550_v57 = vadd.f32 %v4687_v61, %v486_v54  ;;  %v1054_v47 = vsel %vm1041_vm4, %v1052_v53, %v1053_v23  ;;  %v1492_v61 = vrot.slane %v1465_v22, 3  ;;  %v4702_v23 = vld [vmem:[#allocation68_spill] sm:$0xff] }
 0x786   : > { %1781 = vrot.lane.b32.xlu0 %v1766_v15, %s2817_s24  ;;  %1779 = vrot.lane.b32.xlu1 %v1764_v18, %s2817_s24  ;;  %v627_v16 = vadd.f32 %v604_v34, %v550_v57  ;;  %v552_v15 = vadd.f32 %v4689_v20, %v488_v35  ;;  %v4690_v18 = vld [vmem:[#allocation33_spill] sm:$0xff]  ;;  %v4697_v34 = vld [vmem:[#allocation52_spill] sm:$0xff]  ;;  %v1494_v62 = vsel %vm1486_vm5, %v1492_v61, %v1493_v50 }
 0x787   : > { %v4700_v35 = vld [vmem:[#allocation60_spill] sm:$0xff] }
 0x788   : > { %v719_v7 = vadd.f32 %v4690_v18, %v627_v16  ;;  %v629_v8 = vadd.f32 %v609_v1, %v552_v15  ;;  %v4701_v16 = vld [vmem:[#allocation73_spill] sm:$0xff] }
 0x789   : > { %v4703_v18 = vld [vmem:[#allocation81_spill] sm:$0xff] }
 0x78a   : > { %1804 = vperm.xlu0 %2670, %v3511_v27   ;;  %1800 = vperm.xlu1 %2669, %v3517_v24   ;;  %v811_v41 = vadd.f32 %v4691_v44, %v719_v7  ;;  %v721_v56 = vadd.f32 %v4692_v32, %v629_v8  ;;  %v4705_v32 = vld [vmem:[#allocation83_spill] sm:$0xff] }
 0x78c   : > { %v903_v30 = vadd.f32 %v4693_v17, %v811_v41  ;;  %v813_v63 = vadd.f32 %v4694_v43, %v721_v56 }
 0x78e   : > { %1808 = vperm.xlu1 %2669, %v3523_v14   ;;  %2672 = vset.pattern.permute.xlu0 %v2833_v49  ;;  %v995_v58 = vadd.f32 %v4695_v12, %v903_v30  ;;  %v905_v48 = vadd.f32 %v4696_v39, %v813_v63  ;;  %v4707_v63 = vld [vmem:[#allocation91_spill] sm:$0xff] }
 0x790   : > { %v997_v25 = vadd.f32 %v4697_v34, %v905_v48 }
 0x792   : > { %1812 = vperm.xlu1 %2669, %v3529_v5   ;;  %v1074_v57 = vadd.f32 %v1054_v47, %v997_v25 }
 0x794   : > { %v1166_v26 = vadd.f32 %v4700_v35, %v1074_v57 }
 0x796   : > { %2671 = vset.pattern.permute.xlu1 %v2833_v49  ;;  %v1047_v49 = vrot.slane %v1020_v28, 2  ;;  %v4699_v28 = vld [vmem:[#allocation66_spill] sm:$0xff]  ;;  %v1258_v15 = vadd.f32 %v4702_v23, %v1166_v26  ;;  %v2837_v23 = vmov 20  }
 0x798   : > { %v1049_v40 = vsel %vm1041_vm4, %v1047_v49, %v1048_v21  ;;  %v1468_v21 = vmul.f32 %v3478_v4, %v3652_v9  ;;  %v4704_v49 = vld [vmem:[#allocation75_spill] sm:$0xff] }
 0x799   : > { %v1072_v54 = vadd.f32 %v1049_v40, %v995_v58  ;;  %v1350_v60 = vadd.f32 %v4704_v49, %v1258_v15  ;;  %v3989_v15 = vld [vmem:[%s2915_s28 + $0x40] sm:$0xf] }
 0x79a   : > { %v1497_v20 = vrot.slane %v1468_v21, 3 }
 0x79b   : > { %v1164_v13 = vadd.f32 %v4698_v46, %v1072_v54  ;;  %v1442_v56 = vadd.f32 %v4705_v32, %v1350_v60  ;;  %v4000_v32 = vld [vmem:[%s2915_s28 + $0x58] sm:$0xf] }
 0x79c   : > { %v1499_v44 = vsel %vm1486_vm5, %v1497_v20, %v1498_v55  ;;  %v2835_v20 = vmov 23  }
 0x79d   : > { %v1256_v19 = vadd.f32 %v4699_v28, %v1164_v13  ;;  %v1519_v50 = vadd.f32 %v1499_v44, %v1442_v56 }
 0x79f   : > { %v1348_v1 = vadd.f32 %v4701_v16, %v1256_v19  ;;  %v1611_v12 = vadd.f32 %v4707_v63, %v1519_v50 }
 0x7a1   : > { %v1440_v7 = vadd.f32 %v4703_v18, %v1348_v1  ;;  %v1703_v45 = vadd.f32 %v3836_v52, %v1611_v12 }
 0x7a3   : > { %v1517_v8 = vadd.f32 %v1494_v62, %v1440_v7  ;;  %v2836_v62 = vmov 24   ;;  %v4708_v7 = vmov 0  }
 0x7a5   : > { %v1609_v17 = vadd.f32 %v4706_v33, %v1517_v8  ;;  %v3996_v8 = vld [vmem:[%s2915_s28 + $0x50] sm:$0xff] }
 0x7a7   : > { %v1701_v30 = vadd.f32 %v3834_v29, %v1609_v17 }
 0x7ec   : > { %v3928_v9 = vpop.permute.xlu0 %1769  ;;  %v3933_v41 = vpop.permute.xlu1 %1767 }
 0x7f0   : > { %v1774_v53 = vpop.permute.xlu0 %1773  ;;  %v1772_v40 = vpop.permute.xlu1 %1771 }
 0x7f1   : > { %v3939_v43 = vadd.f32 %v1774_v53, %v3827_v38  ;;  %v3942_v58 = vadd.f32 %v1772_v40, %v1701_v30  ;;  %v2735_v30 = vld [vmem:[%s4572_s1 + $0x2] ss:$0 sm:$0xff]  ;;  %v2736_v53 = vld [vmem:[%s4572_s1 + $0x3] ss:$0 sm:$0xff] }
 0x7f4   : > { %v1778_v55 = vpop.permute.xlu0 %1777  ;;  %v1776_v22 = vpop.permute.xlu1 %1775 }
 0x7f5   : > { %v3946_v39 = vadd.f32 %v1778_v55, %v3832_v0  ;;  %v3948_v48 = vadd.f32 %v1776_v22, %v1703_v45 }
 0x7f8   : > { %v3950_v54 = vpop.permute.xlu0 %1781  ;;  %v3952_v29 = vpop.permute.xlu1 %1779 }
 0x809   : > { %v1805_v47 = vpop.permute.xlu0 %1804  ;;  %v1801_v38 = vpop.permute.xlu1 %1800 }
 0x80a   : > { %v1818_v34 = vmul.f32 %v3445_v3, %v1805_v47  ;;  %v1819_v25 = vmul.f32 %v3449_v2, %v1805_v47  ;;  %v1820_v46 = vmul.f32 %v3453_v6, %v1805_v47  ;;  %v1815_v52 = vmul.f32 %v3457_v42, %v1801_v38 }
 0x80b   : > { %v1816_v13 = vmul.f32 %v4681_v51, %v1801_v38  ;;  %v1817_v0 = vmul.f32 %v3465_v11, %v1801_v38 }
 0x80c   : > { %v1845_v61 = vrot.slane %v1819_v25, 3  ;;  %v1839_v21 = vrot.slane %v1815_v52, 3  ;;  %v1847_v19 = vrot.slane %v1820_v46, 3  ;;  %v1844_v26 = vrot.slane %v1818_v34, 3  ;;  %v4036_v46 = vld [vmem:[%s2915_s28] sm:$0xff] }
 0x80d   : > { %v1840_v57 = vrot.slane %v1816_v13, 3  ;;  %v1842_v28 = vrot.slane %v1817_v0, 3  ;;  %v1809_v35 = vpop.permute.xlu1 %1808  ;;  %v4040_v13 = vld [vmem:[%s2915_s28 + $0x8] sm:$0xff]  ;;  %v4044_v0 = vld [vmem:[%s2915_s28 + $0x10] sm:$0xf] }
 0x80e   : > { %v1821_v3 = vmul.f32 %v3478_v4, %v1809_v35  ;;  %v1822_v2 = vmul.f32 %v3469_v10, %v1809_v35  ;;  %v1848_v42 = vsel %vm1486_vm5, %v1845_v61, %v1847_v19  ;;  %v1846_v11 = vsel %vm1486_vm5, %v1844_v26, %v1845_v61 }
 0x80f   : > { %v1843_v16 = vsel %vm1486_vm5, %v1840_v57, %v1842_v28  ;;  %v1841_v6 = vsel %vm1486_vm5, %v1839_v21, %v1840_v57  ;;  %v2834_v4 = vmov 22   ;;  %v1823_v18 = vmul.f32 %v3989_v15, %v1809_v35  ;;  %v4048_v28 = vld [vmem:[%s2915_s28 + $0x30] sm:$0xff]  ;;  %v4052_v35 = vld [vmem:[%s2915_s28 + $0x38] sm:$0xff] }
 0x810   : > { %1861 = vrot.lane.b32.xlu1 %v1843_v16, %s2818_s25  ;;  %1859 = vrot.lane.b32.xlu0 %v1841_v6, %s2818_s25  ;;  %v1849_v51 = vrot.slane %v1821_v3, 3  ;;  %v1850_v1 = vrot.slane %v1822_v2, 3  ;;  %v4058_v6 = vld [vmem:[%s2915_s28 + $0x18] sm:$0xff] }
 0x811   : > { %v1813_v49 = vpop.permute.xlu1 %1812  ;;  %v1852_v60 = vrot.slane %v1823_v18, 3 }
 0x812   : > { %v1851_v10 = vsel %vm1486_vm5, %v1849_v51, %v1850_v1  ;;  %v1825_v44 = vmul.f32 %v3996_v8, %v1813_v49 }
 0x813   : > { %v1853_v17 = vsel %vm1486_vm5, %v1850_v1, %v1852_v60  ;;  %v4066_v1 = vld [vmem:[%s2915_s28 + $0x28] sm:$0xf] }
 0x814   : > { %1865 = vrot.lane.b32.xlu1 %v1848_v42, %s2818_s25  ;;  %1863 = vrot.lane.b32.xlu0 %v1846_v11, %s2818_s25  ;;  %v1855_v56 = vrot.slane %v1825_v44, 3  ;;  %v4062_v11 = vld [vmem:[%s2915_s28 + $0x20] sm:$0xff] }
 0x818   : > { %1969 = vperm.xlu1 %2671, %v3517_v24   ;;  %1867 = vrot.lane.b32.xlu0 %v1851_v10, %s2818_s25 }
 0x81c   : > { %1977 = vperm.xlu1 %2671, %v3523_v14   ;;  %1973 = vperm.xlu0 %2672, %v3511_v27  }
 0x820   : > { %1981 = vperm.xlu1 %2671, %v3529_v5   ;;  %2673 = vset.pattern.permute.xlu0 %v2834_v4 }
 0x821   : > { %2061 = vperm.xlu0 %2673, %v3517_v24  }
 0x824   : > { %2674 = vset.pattern.permute.xlu1 %v2834_v4 }
 0x825   : > { %2065 = vperm.xlu1 %2674, %v3511_v27   ;;  %2073 = vperm.xlu0 %2673, %v3529_v5  }
 0x829   : > { %2069 = vperm.xlu1 %2674, %v3523_v14   ;;  %2676 = vset.pattern.permute.xlu0 %v2835_v20 }
 0x82a   : > { %2157 = vperm.xlu0 %2676, %v3511_v27  }
 0x82d   : > { %2675 = vset.pattern.permute.xlu1 %v2835_v20 }
 0x82e   : > { %2153 = vperm.xlu1 %2675, %v3517_v24   ;;  %2677 = vset.pattern.permute.xlu0 %v2836_v62 }
 0x82f   : > { %2245 = vperm.xlu0 %2677, %v3517_v24  }
 0x832   : > { %2161 = vperm.xlu1 %2675, %v3523_v14  }
 0x833   : > { %2257 = vperm.xlu0 %2677, %v3529_v5  }
 0x836   : > { %2165 = vperm.xlu1 %2675, %v3529_v5  }
 0x837   : > { %2680 = vset.pattern.permute.xlu0 %v2837_v23 }
 0x838   : > { %1896 = vperm.xlu0 %2680, %v3511_v27  }
 0x83a   : > { %2678 = vset.pattern.permute.xlu1 %v2836_v62 }
 0x83b   : > { %2249 = vperm.xlu1 %2678, %v3511_v27   ;;  %v1826_v27 = vmul.f32 %v4000_v32, %v1813_v49 }
 0x83c   : > { %2681 = vset.pattern.permute.xlu0 %v4708_v7 }
 0x83d   : > { %269 = vperm.xlu0 %2681, %v3517_v24   ;;  %v1857_v33 = vrot.slane %v1826_v27, 3 }
 0x83f   : > { %2253 = vperm.xlu1 %2678, %v3523_v14   ;;  %v4008_v14 = vld [vmem:[%s2915_s28 + $0x48] sm:$0xff]  ;;  %s2751_s28 = scalar_lea.vmem %s2750_s26, 4096 }
 0x840   : > { %v1824_v50 = vmul.f32 %v4008_v14, %v1813_v49 }
 0x841   : > { %281 = vperm.xlu0 %2681, %v3529_v5   ;;  %v1858_v5 = vsel %vm1486_vm5, %v1855_v56, %v1857_v33 }
 0x843   : > { %2679 = vset.pattern.permute.xlu1 %v2837_v23 }
 0x844   : > { %1892 = vperm.xlu1 %2679, %v3517_v24   ;;  %v1854_v24 = vrot.slane %v1824_v50, 3 }
 0x845   : > { %1869 = vrot.lane.b32.xlu0 %v1853_v17, %s2818_s25 }
 0x846   : > { %v1856_v40 = vsel %vm1486_vm5, %v1854_v24, %v1855_v56 }
 0x848   : > { %1900 = vperm.xlu1 %2679, %v2735_v30  }
 0x849   : > { %1873 = vrot.lane.b32.xlu0 %v1858_v5, %s2818_s25 }
 0x84c   : > { %1904 = vperm.xlu1 %2679, %v2736_v53  }
 0x850   : > { %1871 = vrot.lane.b32.xlu1 %v1856_v40, %s2818_s25 }
 0x851   : > { %2682 = vset.pattern.permute.xlu1 %v4708_v7 }
 0x882   : > { %v4022_v63 = vpop.permute.xlu1 %1861  ;;  %v4024_v12 = vpop.permute.xlu0 %1859 }
 0x886   : > { %v1866_v45 = vpop.permute.xlu1 %1865  ;;  %v1864_v22 = vpop.permute.xlu0 %1863 }
 0x887   : > { %v4027_v55 = vadd.f32 %v1866_v45, %v3939_v43  ;;  %v4030_v47 = vadd.f32 %v1864_v22, %v3942_v58 }
 0x88a   : > { %v1868_v38 = vpop.permute.xlu0 %1867 }
 0x88b   : > { %v4033_v34 = vadd.f32 %v1868_v38, %v3948_v48 }
 0x897   : > { %v1970_v25 = vpop.permute.xlu1 %1969 }
 0x898   : > { %v1984_v52 = vmul.f32 %v4036_v46, %v1970_v25  ;;  %v1985_v43 = vmul.f32 %v4040_v13, %v1970_v25  ;;  %v1986_v58 = vmul.f32 %v4044_v0, %v1970_v25 }
 0x89a   : > { %v2008_v61 = vrot.slane %v1984_v52, 4  ;;  %v2009_v48 = vrot.slane %v1985_v43, 4  ;;  %v2011_v21 = vrot.slane %v1986_v58, 4 }
 0x89b   : > { %v1978_v57 = vpop.permute.xlu1 %1977  ;;  %v1974_v3 = vpop.permute.xlu0 %1973 }
 0x89c   : > { %v1990_v19 = vmul.f32 %v4048_v28, %v1978_v57  ;;  %v1991_v26 = vmul.f32 %v4052_v35, %v1978_v57  ;;  %v1992_v16 = vmul.f32 %v3989_v15, %v1978_v57  ;;  %v2010_v2 = vsel %vm1931_vm6, %v2008_v61, %v2009_v48 }
 0x89d   : > { %v1987_v42 = vmul.f32 %v4058_v6, %v1974_v3  ;;  %v1988_v51 = vmul.f32 %v4062_v11, %v1974_v3  ;;  %v1989_v10 = vmul.f32 %v4066_v1, %v1974_v3  ;;  %2028 = vrot.lane.b32.xlu1 %v2010_v2, %s2816_s20  ;;  %v2012_v4 = vsel %vm1931_vm6, %v2009_v48, %v2011_v21 }
 0x89e   : > { %2030 = vrot.lane.b32.xlu0 %v2012_v4, %s2816_s20  ;;  %v2018_v7 = vrot.slane %v1990_v19, 4  ;;  %v2019_v49 = vrot.slane %v1991_v26, 4  ;;  %v2021_v60 = vrot.slane %v1992_v16, 4  ;;  %v2536_v26 = vld [vmem:[%s4573_s2 + $0x1] ss:$0 sm:$0xff] }
 0x89f   : > { %v2013_v20 = vrot.slane %v1987_v42, 4  ;;  %v2014_v62 = vrot.slane %v1988_v51, 4  ;;  %v2016_v23 = vrot.slane %v1989_v10, 4  ;;  %v1982_v18 = vpop.permute.xlu1 %1981  ;;  %v2535_v16 = vld [vmem:[%s4573_s2] ss:$0 sm:$0xff] }
 0x8a0   : > { %v1993_v44 = vmul.f32 %v4008_v14, %v1982_v18  ;;  %v1994_v27 = vmul.f32 %v3996_v8, %v1982_v18  ;;  %v1995_v56 = vmul.f32 %v4000_v32, %v1982_v18  ;;  %v2062_v50 = vpop.permute.xlu0 %2061  ;;  %v2022_v30 = vsel %vm1931_vm6, %v2019_v49, %v2021_v60 }
 0x8a1   : > { %v2017_v33 = vsel %vm1931_vm6, %v2014_v62, %v2016_v23  ;;  %v2015_v17 = vsel %vm1931_vm6, %v2013_v20, %v2014_v62  ;;  %v2020_v45 = vsel %vm1931_vm6, %v2018_v7, %v2019_v49  ;;  %v2076_v38 = vmul.f32 %v4036_v46, %v2062_v50  ;;  %v2537_v62 = vld [vmem:[%s4573_s2 + $0x2] ss:$0 sm:$0xff] }
 0x8a2   : > { %2034 = vrot.lane.b32.xlu0 %v2017_v33, %s2816_s20  ;;  %2032 = vrot.lane.b32.xlu1 %v2015_v17, %s2816_s20  ;;  %v2023_v24 = vrot.slane %v1993_v44, 4  ;;  %v2024_v53 = vrot.slane %v1994_v27, 4  ;;  %v2026_v40 = vrot.slane %v1995_v56, 4  ;;  %v2077_v25 = vmul.f32 %v4040_v13, %v2062_v50  ;;  %v2538_v17 = vld [vmem:[%s4573_s2 + $0x3] ss:$0 sm:$0xff] }
 0x8a3   : > { %v2100_v21 = vrot.slane %v2076_v38, 4  ;;  %v2078_v2 = vmul.f32 %v4044_v0, %v2062_v50 }
 0x8a4   : > { %v2066_v5 = vpop.permute.xlu1 %2065  ;;  %v2074_v22 = vpop.permute.xlu0 %2073  ;;  %v2027_v43 = vsel %vm1931_vm6, %v2024_v53, %v2026_v40  ;;  %v2025_v58 = vsel %vm1931_vm6, %v2023_v24, %v2024_v53  ;;  %v2101_v57 = vrot.slane %v2077_v25, 4 }
 0x8a5   : > { %v2079_v61 = vmul.f32 %v4058_v6, %v2066_v5  ;;  %v2080_v19 = vmul.f32 %v4062_v11, %v2066_v5  ;;  %v2081_v7 = vmul.f32 %v4066_v1, %v2066_v5  ;;  %v2085_v49 = vmul.f32 %v4008_v14, %v2074_v22 }
 0x8a6   : > { %2038 = vrot.lane.b32.xlu0 %v2022_v30, %s2816_s20  ;;  %2036 = vrot.lane.b32.xlu1 %v2020_v45, %s2816_s20  ;;  %v2102_v23 = vsel %vm1931_vm6, %v2100_v21, %v2101_v57  ;;  %v4115_v60 = vmul.f32 %v3996_v8, %v2074_v22  ;;  %v2103_v44 = vrot.slane %v2078_v2, 4 }
 0x8a7   : > { %v2105_v42 = vrot.slane %v2079_v61, 4  ;;  %v2106_v51 = vrot.slane %v2080_v19, 4  ;;  %v2108_v5 = vrot.slane %v2081_v7, 4  ;;  %v2115_v24 = vrot.slane %v2085_v49, 4  ;;  %v4709_v49 = vld [vmem:[#allocation30_spill] sm:$0xff] }
 0x8a8   : > { %v2070_v52 = vpop.permute.xlu1 %2069  ;;  %v2116_v53 = vrot.slane %v4115_v60, 4  ;;  %v2104_v45 = vsel %vm1931_vm6, %v2101_v57, %v2103_v44  ;;  %v2087_v61 = vmul.f32 %v4000_v32, %v2074_v22  ;;  %v4156_v60 = vmul.f32 %v3996_v8, %v4709_v49 }
 0x8a9   : > { %v4090_v48 = vpop.permute.xlu0 %2157  ;;  %v2082_v10 = vmul.f32 %v4048_v28, %v2070_v52  ;;  %v2083_v4 = vmul.f32 %v4052_v35, %v2070_v52  ;;  %v2107_v50 = vsel %vm1931_vm6, %v2105_v42, %v2106_v51  ;;  %v2084_v40 = vmul.f32 %v3989_v15, %v2070_v52 }
 0x8aa   : > { %2042 = vrot.lane.b32.xlu0 %v2027_v43, %s2816_s20  ;;  %2040 = vrot.lane.b32.xlu1 %v2025_v58, %s2816_s20  ;;  %v2171_v57 = vmul.f32 %v4058_v6, %v4090_v48  ;;  %v2109_v2 = vsel %vm1931_vm6, %v2106_v51, %v2108_v5  ;;  %v2117_v22 = vsel %vm1931_vm6, %v2115_v24, %v2116_v53 }
 0x8ab   : > { %v2110_v27 = vrot.slane %v2082_v10, 4  ;;  %v2111_v56 = vrot.slane %v2083_v4, 4  ;;  %v4151_v42 = vmul.f32 %v4062_v11, %v4090_v48  ;;  %v583_v51 = vmul.f32 %v4000_v32, %v4709_v49 }
 0x8ac   : > { %v2197_v5 = vrot.slane %v2171_v57, 4 }
 0x8ad   : > { %v4099_v3 = vpop.permute.xlu1 %2153  ;;  %v2112_v38 = vsel %vm1931_vm6, %v2110_v27, %v2111_v56 }
 0x8ae   : > { %2365 = vperm.xlu0 %2681, %v2536_v26   ;;  %2361 = vperm.xlu1 %2682, %v2535_v16   ;;  %v4104_v20 = vpop.permute.xlu0 %2245  ;;  %v2168_v25 = vmul.f32 %v4036_v46, %v4099_v3  ;;  %v4135_v43 = vmul.f32 %v4040_v13, %v4099_v3  ;;  %v2113_v26 = vrot.slane %v2084_v40, 4 }
 0x8b0   : > { %v2193_v7 = vrot.slane %v4135_v43, 4  ;;  %v2114_v40 = vsel %vm1931_vm6, %v2111_v56, %v2113_v26  ;;  %v4585_v56 = vrot.slane %v4156_v60, 1 }
 0x8b1   : > { %v4110_v18 = vpop.permute.xlu1 %2161 }
 0x8b2   : > { %2369 = vperm.xlu1 %2682, %v2537_v62   ;;  %2120 = vrot.lane.b32.xlu0 %v2102_v23, %s2811_s29  ;;  %v4118_v33 = vpop.permute.xlu0 %2257  ;;  %v2192_v23 = vrot.slane %v2168_v25, 4  ;;  %v2174_v25 = vmul.f32 %v4048_v28, %v4110_v18 }
 0x8b4   : > { %v2202_v57 = vrot.slane %v2174_v25, 4 }
 0x8b5   : > { %v4124_v30 = vpop.permute.xlu1 %2165 }
 0x8b6   : > { %2373 = vperm.xlu1 %2682, %v2538_v17   ;;  %2124 = vrot.lane.b32.xlu0 %v2107_v50, %s2811_s29  ;;  %v2118_v50 = vrot.slane %v2087_v61, 4  ;;  %v2194_v61 = vsel %vm1931_vm6, %v2192_v23, %v2193_v7 }
 0x8b7   : > { %v1897_v58 = vpop.permute.xlu0 %1896 }
 0x8b8   : > { %v1910_v21 = vmul.f32 %v4058_v6, %v1897_v58  ;;  %v1911_v52 = vmul.f32 %v4062_v11, %v1897_v58  ;;  %v1912_v19 = vmul.f32 %v4066_v1, %v1897_v58  ;;  %v4179_v58 = vmul.f32 %v4052_v35, %v4110_v18 }
 0x8ba   : > { %2122 = vrot.lane.b32.xlu1 %v2104_v45, %s2811_s29  ;;  %v4144_v16 = vpop.permute.xlu1 %2249  ;;  %2128 = vrot.lane.b32.xlu0 %v2112_v38, %s2811_s29  ;;  %v1937_v10 = vrot.slane %v1910_v21, 4  ;;  %v1938_v4 = vrot.slane %v1911_v52, 4  ;;  %v1940_v62 = vrot.slane %v1912_v19, 4  ;;  %v2198_v45 = vrot.slane %v4151_v42, 4 }
 0x8bb   : > { %v2170_v38 = vmul.f32 %v4044_v0, %v4099_v3  ;;  %v615_v21 = vrot.slane %v583_v51, 1  ;;  %v2173_v3 = vmul.f32 %v4066_v1, %v4090_v48  ;;  %v2177_v48 = vmul.f32 %v4008_v14, %v4124_v30 }
 0x8bc   : > { %v4160_v44 = vpop.permute.xlu0 %269  ;;  %v1939_v27 = vsel %vm1931_vm6, %v1937_v10, %v1938_v4  ;;  %v1941_v17 = vsel %vm1931_vm6, %v1938_v4, %v1940_v62  ;;  %v2199_v42 = vsel %vm1931_vm6, %v2197_v5, %v2198_v45  ;;  %v4203_v10 = vmul.f32 %v3996_v8, %v4124_v30  ;;  %v4712_v4 = vld [vmem:[#allocation9_spill] sm:$0xff] }
 0x8bd   : > { %v4175_v43 = vadd.f32 %v1939_v27, %v4030_v47  ;;  %v4186_v19 = vadd.f32 %v1941_v17, %v4027_v55  ;;  %v2195_v26 = vrot.slane %v2170_v38, 4  ;;  %v2203_v55 = vrot.slane %v4179_v58, 4  ;;  %v4713_v27 = vld [vmem:[#allocation56_spill] sm:$0xff] }
 0x8be   : > { %2126 = vrot.lane.b32.xlu1 %v2109_v2, %s2811_s29  ;;  %v4165_v24 = vpop.permute.xlu1 %2253  ;;  %2132 = vrot.lane.b32.xlu0 %v2117_v22, %s2811_s29  ;;  %v2119_v22 = vsel %vm1931_vm6, %v2116_v53, %v2118_v50  ;;  %v616_v23 = vsel %vm596_vm3, %v4585_v56, %v615_v21  ;;  %v2260_v53 = vmul.f32 %v4036_v46, %v4104_v20  ;;  %v2200_v58 = vrot.slane %v2173_v3, 4 }
 0x8bf   : > { %4710 = vst [vmem:[#allocation67_spill] sm:$0xff] %v4175_v43  ;;  %4711 = vst [vmem:[#allocation80_spill] sm:$0xff] %v4186_v19  ;;  %v4213_v17 = vmul.f32 %v3996_v8, %v4713_v27  ;;  %v4217_v50 = vmul.f32 %v4040_v13, %v4104_v20  ;;  %v2176_v5 = vmul.f32 %v3989_v15, %v4110_v18  ;;  %v2208_v56 = vrot.slane %v4203_v10, 4  ;;  %v4715_v18 = vld [vmem:[#allocation21_spill] sm:$0xff] }
 0x8c0   : > { %v4183_v52 = vpop.permute.xlu0 %281  ;;  %v4225_v25 = vmul.f32 %v4000_v32, %v4713_v27 }
 0x8c1   : > { %v291_v47 = vmul.f32 %v3996_v8, %v4183_v52 }
 0x8c2   : > { %2130 = vrot.lane.b32.xlu1 %v2114_v40, %s2811_s29  ;;  %2212 = vrot.lane.b32.xlu0 %v2194_v61, %s2817_s24  ;;  %v4714_v40 = vld [vmem:[#allocation16_spill] sm:$0xff] }
 0x8c3   : > { %v4193_v2 = vpop.permute.xlu1 %1892  ;;  %v363_v62 = vadd.f32 %v4712_v4, %v291_v47  ;;  %v2196_v47 = vsel %vm1931_vm6, %v2193_v7, %v2195_v26  ;;  %v2207_v4 = vrot.slane %v2177_v48, 4  ;;  %v2179_v7 = vmul.f32 %v4000_v32, %v4124_v30  ;;  %v4716_v26 = vld [vmem:[#allocation29_spill] sm:$0xff] }
 0x8c4   : > { %v1870_v51 = vpop.permute.xlu0 %1869 }
 0x8c5   : > { %v427_v38 = vadd.f32 %v4714_v40, %v363_v62  ;;  %v1888_v61 = vadd.f32 %v1870_v51, %v3946_v39  ;;  %v2204_v62 = vsel %vm1931_vm6, %v2202_v57, %v2203_v55  ;;  %v2285_v39 = vrot.slane %v4217_v50, 4 }
 0x8c6   : > { %2134 = vrot.lane.b32.xlu1 %v2119_v22, %s2811_s29  ;;  %2216 = vrot.lane.b32.xlu0 %v2199_v42, %s2817_s24  ;;  %v2284_v22 = vrot.slane %v2260_v53, 4  ;;  %v2205_v51 = vrot.slane %v2176_v5, 4  ;;  %v2263_v57 = vmul.f32 %v4058_v6, %v4144_v16  ;;  %v2201_v53 = vsel %vm1931_vm6, %v2198_v45, %v2200_v58  ;;  %s2560_s29 = sshll.u32 %s2882_s16, 11 }
 0x8c7   : > { %v1901_v21 = vpop.permute.xlu1 %1900  ;;  %v491_v19 = vadd.f32 %v4715_v18, %v427_v38  ;;  %v2262_v50 = vmul.f32 %v4044_v0, %v4104_v20  ;;  %v2264_v5 = vmul.f32 %v4062_v11, %v4144_v16  ;;  %v2210_v58 = vrot.slane %v2179_v7, 4  ;;  %v4717_v20 = vld [vmem:[#allocation35_spill] sm:$0xff]  ;;  %s4522_s9 = scalar_lea.hbm %s4574_s3, %s2560_s29 }
 0x8c8   : > { %v1913_v40 = vmul.f32 %v4048_v28, %v1901_v21  ;;  %v1914_v43 = vmul.f32 %v4052_v35, %v1901_v21  ;;  %v1915_v3 = vmul.f32 %v3989_v15, %v1901_v21  ;;  %v2206_v11 = vsel %vm1931_vm6, %v2203_v55, %v2205_v51 }
 0x8c9   : > { %v555_v42 = vadd.f32 %v4716_v26, %v491_v19  ;;  %v2209_v19 = vsel %vm1931_vm6, %v2207_v4, %v2208_v56  ;;  %v2289_v4 = vrot.slane %v2263_v57, 4  ;;  %v2266_v7 = vmul.f32 %v4048_v28, %v4165_v24  ;;  %v4719_v28 = vld [vmem:[#allocation47_spill] sm:$0xff] }
 0x8ca   : > { %2214 = vrot.lane.b32.xlu1 %v2196_v47, %s2817_s24  ;;  %v1942_v48 = vrot.slane %v1913_v40, 4  ;;  %v1943_v10 = vrot.slane %v1914_v43, 4  ;;  %2220 = vrot.lane.b32.xlu0 %v2204_v62, %s2817_s24  ;;  %v1945_v21 = vrot.slane %v1915_v3, 4  ;;  %v2290_v3 = vrot.slane %v2264_v5, 4 }
 0x8cb   : > { %v632_v30 = vadd.f32 %v616_v23, %v555_v42  ;;  %v4249_v38 = vpop.permute.xlu1 %1904  ;;  %v2286_v23 = vsel %vm1931_vm6, %v2284_v22, %v2285_v39  ;;  %v2267_v26 = vmul.f32 %v4052_v35, %v4165_v24  ;;  %v4718_v42 = vld [vmem:[#allocation41_spill] sm:$0xff]  ;;  %v1058_v22 = vrot.slane %v4213_v17, 2  ;;  %v4759_v17 = vld [vmem:[#allocation62_spill] sm:$0xff] }
 0x8cc   : > { %v4254_v6 = vmul.f32 %v3996_v8, %v4249_v38  ;;  %v1918_v45 = vmul.f32 %v4000_v32, %v4249_v38  ;;  %v1944_v43 = vsel %vm1931_vm6, %v1942_v48, %v1943_v10  ;;  %v1060_v51 = vrot.slane %v4225_v25, 2 }
 0x8cd   : > { %v724_v47 = vadd.f32 %v4717_v20, %v632_v30  ;;  %v4266_v40 = vadd.f32 %v1944_v43, %v4033_v34  ;;  %v1946_v57 = vsel %vm1931_vm6, %v1943_v10, %v1945_v21  ;;  %v2287_v48 = vrot.slane %v2262_v50, 4  ;;  %v4720_v21 = vld [vmem:[#allocation53_spill] sm:$0xff] }
 0x8ce   : > { %2218 = vrot.lane.b32.xlu1 %v2201_v53, %s2817_s24  ;;  %v1948_v18 = vrot.slane %v4254_v6, 4  ;;  %v1950_v62 = vrot.slane %v1918_v45, 4  ;;  %2224 = vrot.lane.b32.xlu0 %v2209_v19, %s2817_s24  ;;  %v2269_v53 = vmul.f32 %v4008_v14, %v4118_v33  ;;  %v2270_v35 = vmul.f32 %v3996_v8, %v4118_v33 }
 0x8cf   : > { %v816_v55 = vadd.f32 %v4718_v42, %v724_v47  ;;  %v2265_v25 = vmul.f32 %v4066_v1, %v4144_v16  ;;  %v2211_v10 = vsel %vm1931_vm6, %v2208_v56, %v2210_v58  ;;  %v4289_v30 = vadd.f32 %v1946_v57, %v1888_v61  ;;  %v4721_v47 = vld [vmem:[#allocation87_spill] sm:$0xff]  ;;  %v4723_v42 = vld [vmem:[#allocation69_spill] sm:$0xff]  ;;  %v4724_v57 = vld [vmem:[#allocation76_spill] sm:$0xff] }
 0x8d0   : > { %v1951_v34 = vsel %vm1931_vm6, %v1948_v18, %v1950_v62  ;;  %v2294_v50 = vrot.slane %v2266_v7, 4  ;;  %v2295_v19 = vrot.slane %v2267_v26, 4  ;;  %v2291_v43 = vsel %vm1931_vm6, %v2289_v4, %v2290_v3  ;;  %v4722_v62 = vld [vmem:[#allocation61_spill] sm:$0xff] }
 0x8d1   : > { %v908_v5 = vadd.f32 %v4719_v28, %v816_v55  ;;  %v1061_v20 = vsel %vm1041_vm4, %v1058_v22, %v1060_v51  ;;  %v1473_v16 = vmul.f32 %v4000_v32, %v4721_v47  ;;  %v2292_v56 = vrot.slane %v2265_v25, 4  ;;  %v4725_v28 = vld [vmem:[#allocation84_spill] sm:$0xff] }
 0x8d2   : > { %2222 = vrot.lane.b32.xlu1 %v2206_v11, %s2817_s24  ;;  %2304 = vrot.lane.b32.xlu0 %v2286_v23, %s2818_s25  ;;  %v4298_v11 = vmul.f32 %v3996_v8, %v4721_v47  ;;  %v2268_v61 = vmul.f32 %v3989_v15, %v4165_v24  ;;  %v2288_v58 = vsel %vm1931_vm6, %v2285_v39, %v2287_v48  ;;  %v2299_v23 = vrot.slane %v2269_v53, 4 }
 0x8d3   : > { %v1000_v45 = vadd.f32 %v4720_v21, %v908_v5  ;;  %v2300_v4 = vrot.slane %v2270_v35, 4  ;;  %v2296_v8 = vsel %vm1931_vm6, %v2294_v50, %v2295_v19  ;;  %v1505_v51 = vrot.slane %v1473_v16, 3  ;;  %v4727_v16 = vld [vmem:[#allocation6_spill] sm:$0xff] }
 0x8d4   : > { %v1503_v26 = vrot.slane %v4298_v11, 3  ;;  %v2271_v15 = vmul.f32 %v4000_v32, %v4118_v33  ;;  %v2297_v24 = vrot.slane %v2268_v61, 4  ;;  %v2293_v39 = vsel %vm1931_vm6, %v2290_v3, %v2292_v56  ;;  %v4726_v3 = vld [vmem:[#allocation92_spill] sm:$0xff] }
 0x8d5   : > { %v1077_v1 = vadd.f32 %v1061_v20, %v1000_v45  ;;  %v2301_v53 = vsel %vm1931_vm6, %v2299_v23, %v2300_v4  ;;  %v285_v61 = vmul.f32 %v4040_v13, %v4160_v44 }
 0x8d6   : > { %2226 = vrot.lane.b32.xlu1 %v2211_v10, %s2817_s24  ;;  %2308 = vrot.lane.b32.xlu0 %v2291_v43, %s2818_s25  ;;  %v2302_v35 = vrot.slane %v2271_v15, 4  ;;  %v1506_v25 = vsel %vm1486_vm5, %v1503_v26, %v1505_v51  ;;  %v2298_v32 = vsel %vm1931_vm6, %v2295_v19, %v2297_v24  ;;  %v1874_v43 = vpop.permute.xlu0 %1873  ;;  %v284_v19 = vmul.f32 %v4036_v46, %v4160_v44  ;;  %v4732_v15 = vld [vmem:[#allocation10_spill] sm:$0xff]  ;;  %v4733_v44 = vld [vmem:[#allocation12_spill] sm:$0xff]  ;;  %s2463_s24 = sshll.u32 %s3018_s19, 4  ;;  %s4524_s24 = int_to_ptr.vmem [resolvable:$true] %s2463_s24 }
 0x8d7   : > { %v1169_v7 = vadd.f32 %v4722_v62, %v1077_v1  ;;  %v4730_v62 = vld [vmem:[#allocation5_spill] sm:$0xff]  ;;  %s2745_s16 = scalar_lea.vmem %s4524_s24, 2048  ;;  %p2752_p0 = scmp.lt.s32.totalorder %s4524_s24, %s2750_s26 }
 0x8d8   : > { %v2303_v50 = vsel %vm1931_vm6, %v2300_v4, %v2302_v35  ;;  %v356_v56 = vadd.f32 %v4727_v16, %v284_v19  ;;  %v4729_v4 = vld [vmem:[#allocation28_spill] sm:$0xff]  ;;  %v4360_v19 = vpop.permute.xlu1 %1871  ;;  %p2746_p11 = scmp.ne.s32.totalorder %s4524_s24, %s2745_s16  ;;  %p2753_p1 = scmp.lt.s32.totalorder %s2751_s28, %s2745_s16 }
 0x8d9   : > { %v1261_v55 = vadd.f32 %v4723_v42, %v1169_v7  ;;  %v357_v7 = vadd.f32 %v4730_v62, %v285_v61  ;;  %v4740_v61 = vld [vmem:[#allocation27_spill] sm:$0xff] }
 0x8da   : > { %2306 = vrot.lane.b32.xlu1 %v2288_v58, %s2818_s25  ;;  %2312 = vrot.lane.b32.xlu0 %v2296_v8, %s2818_s25  ;;  %v4728_v58 = vld [vmem:[#allocation11_spill] sm:$0xff]  ;;  %v4731_v8 = vld [vmem:[#allocation18_spill] sm:$0xff]  ;;  %p2747_p12 = pnand %p2746_p11, %p2899_p5  ;;  %p2754_p2 = por %p2753_p1, %p2752_p0 }
 0x8db   : > { %v1353_v48 = vadd.f32 %v4724_v57, %v1261_v55  ;;  %v420_v23 = vadd.f32 %v4728_v58, %v356_v56  ;;  %v4734_v57 = vld [vmem:[#allocation23_spill] sm:$0xff] }
 0x8dc   : > { %p2748_p13 = pneg %p2747_p12 }
 0x8dd   : > { %v1445_v5 = vadd.f32 %v4725_v28, %v1353_v48  ;;  %v484_v42 = vadd.f32 %v4731_v8, %v420_v23 }
 0x8de   : > { %2310 = vrot.lane.b32.xlu1 %v2293_v39, %s2818_s25  ;;  %2316 = vrot.lane.b32.xlu0 %v2301_v53, %s2818_s25  ;;  %v421_v39 = vadd.f32 %v4733_v44, %v357_v7  ;;  %v574_v53 = vmul.f32 %v4044_v0, %v4729_v4  ;;  %v4743_v7 = vld [vmem:[#allocation55_spill] sm:$0xff]  ;;  %p2755_p3 = pnand %p2754_p2, %p2748_p13 }
 0x8df   : > { %v1522_v33 = vadd.f32 %v1506_v25, %v1445_v5  ;;  %v548_v48 = vadd.f32 %v4734_v57, %v484_v42  ;;  %v4735_v5 = vld [vmem:[#allocation15_spill] sm:$0xff]  ;;  %v1017_v8 = vmul.f32 %v4036_v46, %v4743_v7  ;;  %v1018_v42 = vmul.f32 %v4040_v13, %v4743_v7 }
 0x8e1   : > { %v1614_v10 = vadd.f32 %v4726_v3, %v1522_v33  ;;  %v581_v33 = vmul.f32 %v4008_v14, %v4709_v49  ;;  %v600_v3 = vrot.slane %v574_v53, 1  ;;  %v1043_v57 = vrot.slane %v1018_v42, 2 }
 0x8e2   : > { %2314 = vrot.lane.b32.xlu1 %v2298_v32, %s2818_s25 }
 0x8e3   : > { %v1706_v21 = vadd.f32 %v3838_v37, %v1614_v10  ;;  %v572_v37 = vmul.f32 %v4036_v46, %v4729_v4  ;;  %v4737_v10 = vld [vmem:[#allocation22_spill] sm:$0xff]  ;;  %v612_v16 = vrot.slane %v581_v33, 1 }
 0x8e5   : > { %v1798_v45 = vadd.f32 %v3950_v54, %v1706_v21  ;;  %v573_v54 = vmul.f32 %v4040_v13, %v4729_v4  ;;  %v597_v55 = vrot.slane %v572_v37, 1  ;;  %v4738_v21 = vld [vmem:[#allocation24_spill] sm:$0xff]  ;;  %v4741_v4 = vld [vmem:[#allocation38_spill] sm:$0xff] }
 0x8e6   : > { %2318 = vrot.lane.b32.xlu1 %v2303_v50, %s2818_s25 }
 0x8e7   : > { %v1890_v20 = vadd.f32 %v1874_v43, %v1798_v45  ;;  %v598_v51 = vrot.slane %v573_v54, 1  ;;  %v4739_v43 = vld [vmem:[#allocation32_spill] sm:$0xff] }
 0x8e9   : > { %v4331_v1 = vadd.f32 %v1951_v34, %v1890_v20  ;;  %v290_v34 = vmul.f32 %v4008_v14, %v4183_v52  ;;  %v599_v28 = vsel %vm596_vm3, %v597_v55, %v598_v51  ;;  %v4736_v52 = vld [vmem:[#allocation17_spill] sm:$0xff]  ;;  %v601_v56 = vsel %vm596_vm3, %v598_v51, %v600_v3  ;;  %v4744_v51 = vld [vmem:[#allocation31_spill] sm:$0xff]  ;;  %v4749_v3 = vld [vmem:[#allocation42_spill] sm:$0xff] }
 0x8ea   : > { %v485_v25 = vadd.f32 %v4736_v52, %v421_v39  ;;  %v625_v32 = vadd.f32 %v599_v28, %v548_v48  ;;  %v1042_v39 = vrot.slane %v1017_v8, 2  ;;  %v4746_v48 = vld [vmem:[#allocation36_spill] sm:$0xff]  ;;  %v4748_v52 = vld [vmem:[#allocation50_spill] sm:$0xff] }
 0x8eb   : > { %v362_v24 = vadd.f32 %v4732_v15, %v290_v34  ;;  %v4742_v34 = vrot.slane %v4156_v60, 1  ;;  %v4754_v8 = vld [vmem:[#allocation54_spill] sm:$0xff] }
 0x8ec   : > { %v549_v45 = vadd.f32 %v4738_v21, %v485_v25  ;;  %v717_v20 = vadd.f32 %v4739_v43, %v625_v32  ;;  %v1019_v32 = vmul.f32 %v4044_v0, %v4743_v7  ;;  %v1044_v33 = vsel %vm1041_vm4, %v1042_v39, %v1043_v57  ;;  %v4756_v39 = vld [vmem:[#allocation86_spill] sm:$0xff] }
 0x8ed   : > { %v426_v35 = vadd.f32 %v4735_v5, %v362_v24  ;;  %v614_v62 = vsel %vm596_vm3, %v612_v16, %v4742_v34  ;;  %v4745_v24 = vld [vmem:[#allocation44_spill] sm:$0xff]  ;;  %v4747_v5 = vld [vmem:[#allocation37_spill] sm:$0xff]  ;;  %v1026_v16 = vmul.f32 %v4008_v14, %v4713_v27 }
 0x8ee   : > { %v626_v23 = vadd.f32 %v601_v56, %v549_v45  ;;  %v809_v37 = vadd.f32 %v4741_v4, %v717_v20  ;;  %v1045_v56 = vrot.slane %v1019_v32, 2  ;;  %v4758_v32 = vld [vmem:[#allocation57_spill] sm:$0xff] }
 0x8ef   : > { %v490_v50 = vadd.f32 %v4737_v10, %v426_v35 }
 0x8f0   : > { %v718_v15 = vadd.f32 %v4744_v51, %v626_v23  ;;  %v901_v44 = vadd.f32 %v4745_v24, %v809_v37  ;;  %v4752_v23 = vld [vmem:[#allocation49_spill] sm:$0xff]  ;;  %v4753_v37 = vld [vmem:[#allocation58_spill] sm:$0xff]  ;;  %v1046_v7 = vsel %vm1041_vm4, %v1043_v57, %v1045_v56  ;;  %v4761_v56 = vld [vmem:[#allocation64_spill] sm:$0xff] }
 0x8f1   : > { %v554_v58 = vadd.f32 %v4740_v61, %v490_v50  ;;  %v4750_v50 = vld [vmem:[#allocation43_spill] sm:$0xff]  ;;  %v4751_v61 = vld [vmem:[#allocation48_spill] sm:$0xff]  ;;  %v4755_v24 = vld [vmem:[#allocation65_spill] sm:$0xff] }
 0x8f2   : > { %v810_v35 = vadd.f32 %v4747_v5, %v718_v15  ;;  %v993_v25 = vadd.f32 %v4748_v52, %v901_v44  ;;  %v4757_v52 = vld [vmem:[#allocation72_spill] sm:$0xff] }
 0x8f3   : > { %v631_v55 = vadd.f32 %v614_v62, %v554_v58  ;;  %v1057_v62 = vrot.slane %v1026_v16, 2 }
 0x8f4   : > { %v902_v21 = vadd.f32 %v4750_v50, %v810_v35  ;;  %v1070_v45 = vadd.f32 %v1044_v33, %v993_v25 }
 0x8f5   : > { %v723_v53 = vadd.f32 %v4746_v48, %v631_v55  ;;  %v1059_v27 = vsel %vm1041_vm4, %v1057_v62, %v1058_v22  ;;  %v1462_v48 = vmul.f32 %v4036_v46, %v4756_v39 }
 0x8f6   : > { %v994_v4 = vadd.f32 %v4752_v23, %v902_v21  ;;  %v1162_v34 = vadd.f32 %v4753_v37, %v1070_v45  ;;  %v4760_v45 = vld [vmem:[#allocation79_spill] sm:$0xff] }
 0x8f7   : > { %v815_v10 = vadd.f32 %v4749_v3, %v723_v53  ;;  %v1463_v53 = vmul.f32 %v4040_v13, %v4756_v39  ;;  %v1487_v3 = vrot.slane %v1462_v48, 3 }
 0x8f8   : > { %v1071_v15 = vadd.f32 %v1046_v7, %v994_v4  ;;  %v1254_v44 = vadd.f32 %v4755_v24, %v1162_v34  ;;  %v4762_v4 = vld [vmem:[#allocation70_spill] sm:$0xff] }
 0x8f9   : > { %v907_v58 = vadd.f32 %v4751_v61, %v815_v10  ;;  %v1488_v10 = vrot.slane %v1463_v53, 3 }
 0x8fa   : > { %v1346_v25 = vadd.f32 %v4757_v52, %v1254_v44  ;;  %v1163_v33 = vadd.f32 %v4758_v32, %v1071_v15  ;;  %v1471_v15 = vmul.f32 %v4008_v14, %v4721_v47  ;;  %v4764_v44 = vld [vmem:[#allocation77_spill] sm:$0xff]  ;;  %v4766_v52 = vld [vmem:[#allocation78_spill] sm:$0xff] }
 0x8fb   : > { %v999_v42 = vadd.f32 %v4754_v8, %v907_v58  ;;  %v1464_v58 = vmul.f32 %v4044_v0, %v4756_v39  ;;  %v1489_v23 = vsel %vm1486_vm5, %v1487_v3, %v1488_v10  ;;  %v4763_v8 = vld [vmem:[#allocation71_spill] sm:$0xff]  ;;  %v4767_v3 = vld [vmem:[#allocation85_spill] sm:$0xff] }
 0x8fc   : > { %v1438_v16 = vadd.f32 %v4760_v45, %v1346_v25  ;;  %v1255_v61 = vadd.f32 %v4761_v56, %v1163_v33  ;;  %v1502_v32 = vrot.slane %v1471_v15, 3  ;;  %v1907_v56 = vmul.f32 %v4036_v46, %v4193_v2  ;;  %v4769_v15 = vld [vmem:[#allocation93_spill] sm:$0xff] }
 0x8fd   : > { %v1076_v57 = vadd.f32 %v1059_v27, %v999_v42  ;;  %v1490_v24 = vrot.slane %v1464_v58, 3 }
 0x8fe   : > { %v1515_v7 = vadd.f32 %v1489_v23, %v1438_v16  ;;  %v1347_v42 = vadd.f32 %v4763_v8, %v1255_v61  ;;  %v1908_v61 = vmul.f32 %v4040_v13, %v4193_v2  ;;  %v1504_v58 = vsel %vm1486_vm5, %v1502_v32, %v1503_v26 }
 0x8ff   : > { %v1168_v50 = vadd.f32 %v4759_v17, %v1076_v57  ;;  %v4765_v57 = vld [vmem:[#allocation89_spill] sm:$0xff]  ;;  %v1491_v33 = vsel %vm1486_vm5, %v1488_v10, %v1490_v24  ;;  %v1909_v26 = vmul.f32 %v4044_v0, %v4193_v2 }
 0x900   : > { %v1607_v39 = vadd.f32 %v4765_v57, %v1515_v7  ;;  %v1439_v25 = vadd.f32 %v4766_v52, %v1347_v42  ;;  %v4768_v7 = vld [vmem:[#allocation88_spill] sm:$0xff]  ;;  %v1933_v42 = vrot.slane %v1908_v61, 4  ;;  %v1916_v52 = vmul.f32 %v4008_v14, %v4249_v38 }
 0x901   : > { %v1260_v37 = vadd.f32 %v4762_v4, %v1168_v50 }
 0x902   : > { %v1699_v16 = vadd.f32 %v3830_v36, %v1607_v39  ;;  %v1516_v47 = vadd.f32 %v1491_v33, %v1439_v25  ;;  %v1932_v36 = vrot.slane %v1907_v56, 4  ;;  %v1935_v33 = vrot.slane %v1909_v26, 4 }
 0x903   : > { %v1352_v27 = vadd.f32 %v4764_v44, %v1260_v37  ;;  %v1947_v0 = vrot.slane %v1916_v52, 4 }
 0x904   : > { %v1791_v37 = vadd.f32 %v3933_v41, %v1699_v16  ;;  %v1608_v8 = vadd.f32 %v4768_v7, %v1516_v47  ;;  %v4770_v47 = vld [vmem:[#allocation67_spill] sm:$0xff] }
 0x905   : > { %v1444_v17 = vadd.f32 %v4767_v3, %v1352_v27  ;;  %v1934_v27 = vsel %vm1931_vm6, %v1932_v36, %v1933_v42 }
 0x906   : > { %v1883_v13 = vadd.f32 %v4024_v12, %v1791_v37  ;;  %v1700_v11 = vadd.f32 %v3819_v31, %v1608_v8 }
 0x907   : > { %v1521_v23 = vadd.f32 %v1504_v58, %v1444_v17 }
 0x908   : > { %v1960_v25 = vadd.f32 %v1934_v27, %v1883_v13  ;;  %v1792_v32 = vadd.f32 %v3928_v9, %v1700_v11 }
 0x909   : > { %v1613_v24 = vadd.f32 %v4769_v15, %v1521_v23 }
 0x90a   : > { %v1884_v2 = vadd.f32 %v4022_v63, %v1792_v32 }
 0x90b   : > { %v1705_v41 = vadd.f32 %v3840_v59, %v1613_v24  ;;  %v1936_v59 = vsel %vm1931_vm6, %v1933_v42, %v1935_v33 }
 0x90c   : > { %v1961_v58 = vadd.f32 %v1936_v59, %v1884_v2 }
 0x90d   : > { %v1797_v31 = vadd.f32 %v3952_v29, %v1705_v41  ;;  %v1949_v29 = vsel %vm1931_vm6, %v1947_v0, %v1948_v18  ;;  %v4771_v18 = vld [vmem:[#allocation80_spill] sm:$0xff] }
 0x90f   : > { %v4365_v54 = vpop.permute.xlu1 %2028  ;;  %v1889_v38 = vadd.f32 %v4360_v19, %v1797_v31 }
 0x910   : > { %v4367_v49 = vpop.permute.xlu0 %2030  ;;  %v2052_v12 = vadd.f32 %v4365_v54, %v1960_v25 }
 0x911   : > { %v2053_v63 = vadd.f32 %v4367_v49, %v1961_v58 }
 0x914   : > { %v4379_v28 = vpop.permute.xlu1 %2032  ;;  %v4381_v60 = vpop.permute.xlu0 %2034 }
 0x915   : > { %v2054_v56 = vadd.f32 %v4379_v28, %v4770_v47 }
 0x918   : > { %v4390_v43 = vpop.permute.xlu1 %2036  ;;  %v4392_v20 = vpop.permute.xlu0 %2038 }
 0x91c   : > { %v4401_v55 = vpop.permute.xlu1 %2040  ;;  %v4403_v51 = vpop.permute.xlu0 %2042 }
 0x92d   : > { %v4413_v5 = vpop.permute.xlu1 %2361  ;;  %v4415_v35 = vpop.permute.xlu0 %2365 }
 0x931   : > { %v4420_v22 = vpop.permute.xlu1 %2369  ;;  %v2121_v21 = vpop.permute.xlu0 %2120 }
 0x932   : > { %v2144_v16 = vadd.f32 %v2121_v21, %v2052_v12  ;;  %v2056_v21 = vadd.f32 %v4390_v43, %v4266_v40  ;;  %v2059_v12 = vadd.f32 %v4403_v51, %v4331_v1 }
 0x935   : > { %v4428_v34 = vpop.permute.xlu1 %2373  ;;  %v2125_v62 = vpop.permute.xlu0 %2124 }
 0x936   : > { %v2146_v54 = vadd.f32 %v2125_v62, %v2054_v56  ;;  %v2055_v62 = vadd.f32 %v4381_v60, %v4771_v18  ;;  %v2057_v60 = vadd.f32 %v4392_v20, %v4289_v30 }
 0x939   : > { %v2123_v48 = vpop.permute.xlu1 %2122  ;;  %v2129_v53 = vpop.permute.xlu0 %2128 }
 0x93a   : > { %v2145_v8 = vadd.f32 %v2123_v48, %v2053_v63  ;;  %v2148_v36 = vadd.f32 %v2129_v53, %v2056_v21 }
 0x93d   : > { %v2127_v50 = vpop.permute.xlu1 %2126  ;;  %v4438_v45 = vpop.permute.xlu0 %2132 }
 0x93e   : > { %v2147_v43 = vadd.f32 %v2127_v50, %v2055_v62 }
 0x941   : > { %v4448_v10 = vpop.permute.xlu1 %2130  ;;  %v2213_v4 = vpop.permute.xlu0 %2212 }
 0x942   : > { %v2236_v14 = vadd.f32 %v2213_v4, %v2144_v16  ;;  %v1966_v4 = vadd.f32 %v1949_v29, %v1889_v38  ;;  %v2149_v50 = vadd.f32 %v4448_v10, %v2057_v60 }
 0x944   : > { %v2058_v49 = vadd.f32 %v4401_v55, %v1966_v4 }
 0x945   : > { %v4453_v46 = vpop.permute.xlu1 %2134  ;;  %v2217_v44 = vpop.permute.xlu0 %2216 }
 0x946   : > { %v2238_v37 = vadd.f32 %v2217_v44, %v2146_v54  ;;  %v2150_v48 = vadd.f32 %v4438_v45, %v2058_v49  ;;  %v2151_v10 = vadd.f32 %v4453_v46, %v2059_v12 }
 0x949   : > { %v2215_v57 = vpop.permute.xlu1 %2214  ;;  %v2221_v39 = vpop.permute.xlu0 %2220 }
 0x94a   : > { %v2237_v15 = vadd.f32 %v2215_v57, %v2145_v8  ;;  %v2240_v24 = vadd.f32 %v2221_v39, %v2148_v36 }
 0x94d   : > { %v2219_v3 = vpop.permute.xlu1 %2218  ;;  %v2225_v17 = vpop.permute.xlu0 %2224 }
 0x94e   : > { %v2239_v27 = vadd.f32 %v2219_v3, %v2147_v43  ;;  %v2242_v55 = vadd.f32 %v2225_v17, %v2150_v48 }
 0x951   : > { %v2223_v9 = vpop.permute.xlu1 %2222  ;;  %v2305_v61 = vpop.permute.xlu0 %2304 }
 0x952   : > { %v2328_v23 = vadd.f32 %v2305_v61, %v2236_v14  ;;  %v2241_v31 = vadd.f32 %v2223_v9, %v2149_v50 }
 0x954   : > { %v4478_v28 = vadd.f32 %v4413_v5, %v2328_v23 }
 0x955   : > { %v2227_v19 = vpop.permute.xlu1 %2226  ;;  %v2309_v7 = vpop.permute.xlu0 %2308 }
 0x956   : > { %v2539_v6 = vmul.f32 -1.442695, %v4478_v28  ;;  %v2330_v42 = vadd.f32 %v2309_v7, %v2238_v37  ;;  %v2243_v59 = vadd.f32 %v2227_v19, %v2151_v10 }
 0x958   : > { %2683 = vpow2.f32 %v2539_v6  ;;  %v4485_v40 = vadd.f32 %v4415_v35, %v2330_v42 }
 0x959   : > { %v2307_v44 = vpop.permute.xlu1 %2306  ;;  %v2313_v13 = vpop.permute.xlu0 %2312 }
 0x95a   : > { %v2541_v53 = vmul.f32 -1.442695, %v4485_v40  ;;  %v2329_v11 = vadd.f32 %v2307_v44, %v2237_v15  ;;  %v2332_v26 = vadd.f32 %v2313_v13, %v2240_v24 }
 0x95c   : > { %2685 = vpow2.f32 %v2541_v53  ;;  %v2377_v41 = vadd.f32 %v4413_v5, %v2329_v11  ;;  %v2380_v57 = vadd.f32 %v4420_v22, %v2332_v26 }
 0x95d   : > { %v2311_v39 = vpop.permute.xlu1 %2310  ;;  %v2317_v52 = vpop.permute.xlu0 %2316 }
 0x95e   : > { %v2540_v25 = vmul.f32 -1.442695, %v2377_v41  ;;  %v2543_v45 = vmul.f32 -1.442695, %v2380_v57  ;;  %v2331_v32 = vadd.f32 %v2311_v39, %v2239_v27  ;;  %v2334_v33 = vadd.f32 %v2317_v52, %v2242_v55 }
 0x960   : > { %2687 = vpow2.f32 %v2540_v25  ;;  %v2379_v30 = vadd.f32 %v4415_v35, %v2331_v32  ;;  %v2382_v20 = vadd.f32 %v4428_v34, %v2334_v33 }
 0x961   : > { %2689 = vpow2.f32 %v2543_v45  ;;  %v2315_v5 = vpop.permute.xlu1 %2314 }
 0x962   : > { %v2684_v3 = vpop.eup %2683  ;;  %v2542_v17 = vmul.f32 -1.442695, %v2379_v30  ;;  %v2545_v0 = vmul.f32 -1.442695, %v2382_v20  ;;  %v2333_v2 = vadd.f32 %v2315_v5, %v2241_v31 }
 0x963   : > { %v2408_v16 = vadd.f32 1.0, %v2684_v3 }
 0x964   : > { %2691 = vpow2.f32 %v2542_v17  ;;  %v2381_v47 = vadd.f32 %v4420_v22, %v2333_v2 }
 0x965   : > { %2693 = vrcp.f32 %v2408_v16  ;;  %v2319_v1 = vpop.permute.xlu1 %2318 }
 0x966   : > { %v2686_v51 = vpop.eup %2685  ;;  %2695 = vpow2.f32 %v2545_v0  ;;  %v2544_v35 = vmul.f32 -1.442695, %v2381_v47  ;;  %v2335_v56 = vadd.f32 %v2319_v1, %v2243_v59 }
 0x967   : > { %v2410_v14 = vadd.f32 1.0, %v2686_v51 }
 0x968   : > { %2697 = vpow2.f32 %v2544_v35  ;;  %v2383_v38 = vadd.f32 %v4428_v34, %v2335_v56 }
 0x969   : > { %2699 = vrcp.f32 %v2410_v14 }
 0x96a   : > { %v2688_v46 = vpop.eup %2687  ;;  %v2546_v9 = vmul.f32 -1.442695, %v2383_v38 }
 0x96b   : > { %v2690_v61 = vpop.eup %2689  ;;  %v2409_v58 = vadd.f32 1.0, %v2688_v46 }
 0x96c   : > { %v2412_v29 = vadd.f32 1.0, %v2690_v61  ;;  %2701 = vpow2.f32 %v2546_v9 }
 0x96d   : > { %2703 = vrcp.f32 %v2409_v58 }
 0x96e   : > { %v2692_v22 = vpop.eup %2691  ;;  %2705 = vrcp.f32 %v2412_v29 }
 0x96f   : > { %v2694_v54 = vpop.eup %2693  ;;  %v2411_v23 = vadd.f32 1.0, %v2692_v22 }
 0x970   : > { %v2696_v63 = vpop.eup %2695  ;;  %v2432_v21 = vmul.f32 %v2694_v54, %v4478_v28 }
 0x971   : > { %2707 = vrcp.f32 %v2411_v23  ;;  %v2414_v37 = vadd.f32 1.0, %v2696_v63 }
 0x972   : > { %v2698_v34 = vpop.eup %2697  ;;  %2547 = vst.msk [vmem:[%s3018_s19 + $0x40] sm:$0xff] %vm231_vm2, %v2432_v21 }
 0x973   : > { %v2700_v4 = vpop.eup %2699  ;;  %2709 = vrcp.f32 %v2414_v37  ;;  %v2413_v19 = vadd.f32 1.0, %v2698_v34 }
 0x974   : > { %v2434_v7 = vmul.f32 %v2700_v4, %v4485_v40 }
 0x975   : > { %2711 = vrcp.f32 %v2413_v19 }
 0x976   : > { %v2702_v8 = vpop.eup %2701  ;;  %2549 = vst.msk [vmem:[%s3018_s19 + $0x50] sm:$0xff] %vm231_vm2, %v2434_v7 }
 0x977   : > { %v2704_v36 = vpop.eup %2703  ;;  %v2415_v28 = vadd.f32 1.0, %v2702_v8 }
 0x978   : > { %v2706_v6 = vpop.eup %2705  ;;  %v2433_v42 = vmul.f32 %v2704_v36, %v2377_v41 }
 0x979   : > { %v2436_v18 = vmul.f32 %v2706_v6, %v2380_v57  ;;  %2713 = vrcp.f32 %v2415_v28 }
 0x97a   : > { %2548 = vst.msk [vmem:[%s3018_s19 + $0x48] sm:$0xff] %vm231_vm2, %v2433_v42 }
 0x97b   : > { %v2708_v62 = vpop.eup %2707  ;;  %2551 = vst.msk [vmem:[%s3018_s19 + $0x60] sm:$0xff] %vm231_vm2, %v2436_v18 }
 0x97c   : > { %v2435_v49 = vmul.f32 %v2708_v62, %v2379_v30 }
 0x97d   : > { %v2710_v15 = vpop.eup %2709 }
 0x97e   : > { %2550 = vst.msk [vmem:[%s3018_s19 + $0x58] sm:$0xff] %vm231_vm2, %v2435_v49  ;;  %v2438_v24 = vmul.f32 %v2710_v15, %v2382_v20 }
 0x97f   : > { %v2712_v40 = vpop.eup %2711 }
 0x980   : > { %2553 = vst.msk [vmem:[%s3018_s19 + $0x70] sm:$0xff] %vm231_vm2, %v2438_v24  ;;  %v2437_v43 = vmul.f32 %v2712_v40, %v2381_v47 }
 0x982   : > { %2552 = vst.msk [vmem:[%s3018_s19 + $0x68] sm:$0xff] %vm231_vm2, %v2437_v43 }
 0x983   : > { %v2714_v44 = vpop.eup %2713 }
 0x984   : > { %v2439_v13 = vmul.f32 %v2714_v44, %v2383_v38 }
 0x986   : > { %2554 = vst.msk [vmem:[%s3018_s19 + $0x78] sm:$0xff] %vm231_vm2, %v2439_v13 }
 0x987   : > { %2758 = shalt.err (!%p2755_p3)
}
 0x988   : > { %s2759_s11 = scalar_lea.hbm %s4522_s9, 2048  ;;  %s2763_s30 = scalar_lea.hbm %s4574_s3, 4096 }
 0x989   : > { %p2760_p4 = scmp.ne.s32.totalorder %s4522_s9, %s2759_s11  ;;  %p2764_p9 = scmp.lt.u32.totalorder %s4522_s9, %s4574_s3 }
 0x98a   : > { %p2765_p10 = scmp.lt.u32.totalorder %s2763_s30, %s2759_s11  ;;  %p2767_p12 = scmp.lt.u32.totalorder %s2759_s11, %s4522_s9 }
 0x98b   : > { %p2761_p7 = pnand %p2760_p4, %p2899_p5 }
 0x98c   : > { %p2766_p11 = por %p2765_p10, %p2764_p9 }
 0x98d   : > { %p2762_p8 = pneg %p2761_p7 }
 0x98e   : > { %p2768_p13 = por %p2767_p12, %p2766_p11 }
 0x990   : > { %p2769_p0 = pnand %p2768_p13, %p2762_p8 }
 0x992   : > { %2772 = shalt.err (!%p2769_p0)
}
 0x993   : > { %s2839_s5 = smov 128   ;;  %s2840_s6 = smov 8  }
 0x994   : > { %2562 = dma.vmem_to_hbm [thread:$0]  (%p2899_p5), %s4524_s24, 2048, %s4522_s9, %s4530_s10, %s2839_s5, %s2839_s5, %s2840_s6  }
 0x995 PF: > { %p2568_p1 = scmp.ge.s32.totalorder %s2807_s15, 2  ;;  %s2478_s7 = sand.u32 1, %s2795_s12  }
 0x996   : > { %s2479_s29 = scalar_lea.sflag [#allocation3], %s2478_s7 }
 0x997   : > { %p2565_p2 = pnand %p2568_p1, %p2903_p6 }
 0x999   : > { %2790 = dma.done.wait (!%p2565_p2), %s2479_s29, 2048  }
 0x99a   : > { %2792 = vsyncadd (!%p2565_p2), %s2479_s29, 4294965248  ;;  %p13_p3 = scmp.ge.s32.totalorder %s2886_s18, 4   ;;  %s4772_s12 = smov %s2799_s13 }
 0x99b   : > { %s4773_s13 = smov %s2803_s14  ;;  %s4774_s14 = smov %s2897_s21 }
 0x99c   : > { %s4775_s15 = smov %s2886_s18  ;;  %15 = sbr.rel (!%p13_p3) target bundleno = 3 (0x3), region = 68 }
 0x9a3   :  { %2484 = vsyncpa [#allocation3], 1 }
 0x9a4   :  { %2486 = vsyncpa [#allocation3 + $0x1], 1 }

</bundles_post_ra>
